<compile_context>
chip_gen: v7x
topology: tpu7x:2x2x1
jax: 0.10.0
libtpu: 0.0.40
codegen_flags: <defaults>
</compile_context>

<pallas_src>
import functools

import jax
import jax.numpy as jnp
from jax.experimental import pallas as pl
from jax.experimental.pallas import tpu as pltpu

_LANE = 128
_EPS = 1e-5


def _round_up(x, m):
    return (x + m - 1) // m * m


def _compiler_params(dims):
    return pltpu.CompilerParams(dimension_semantics=dims,
                                vmem_limit_bytes=32 * 1024 * 1024)


def _mish(x):
    # mish(x) = x * tanh(softplus(x)) = x * u / (u + 2) with u = e^x (e^x + 2).
    # 1 exp + approx reciprocal (EUP) instead of exp + log + tanh.
    # Clamp: for x >= 20, tanh(softplus(x)) == 1 in f32, and e^{2x} would overflow.
    t = jnp.exp(jnp.minimum(x, 20.0))
    u = t * (t + 2.0)
    return x * u * pl.reciprocal(u + 2.0, approx=True)


def _mish_ref(x):
    # plain-JAX Mish for the tiny (N, C) SE MLP glue.
    return x * jnp.tanh(jax.nn.softplus(x))


def _pick_strip_rows(h, w, hw, cap):
    for t in range(min(cap, h), 0, -1):
        if h % t == 0 and ((t * w) % 8 == 0 or t * w == hw):
            return t
    return h


def _pick_hw_tile(hw, cap):
    for t in range(min(cap, hw), 7, -1):
        if hw % t == 0 and t % 8 == 0:
            return t
    # TODO(synk): fall back to one tile per sample (latent VMEM risk at huge hw).
    return hw


# --------------------------- kernel A: depthwise conv + BN1 partial stats -----------
def _dw_conv_stats_kernel(body_ref, halo_ref, w_ref, out_ref, sum_ref, sq_ref,
                          *, ksize, th, wo):
    # body_ref: (1, th, Wp, Cpad) f32   rows [t*th, t*th+th) of the halo-padded sample
    # halo_ref: (1, 1, ksize-1, Wp, Cpad) f32   rows [t*th+th, t*th+th+ksize-1)
    # w_ref:    (ksize*ksize, Cpad) f32  depthwise taps (VMEM-resident, constant map)
    # out_ref:  (1, th*wo, Cpad) bf16 raw depthwise output strip
    # sum_ref/sq_ref: (1, 1, 1, Cpad) f32 per-strip channel sum / sum-of-squares
    w = w_ref[...]
    cpad = w.shape[-1]
    s_acc = jnp.zeros((1, cpad), jnp.float32)
    q_acc = jnp.zeros((1, cpad), jnp.float32)
    for r in range(th):                                # static unroll over strip rows
        acc = jnp.zeros((wo, cpad), jnp.float32)       # per-row acc stays in vregs
        for kh in range(ksize):
            rr = r + kh
            xrow = body_ref[0, rr] if rr < th else halo_ref[0, 0, rr - th]  # (Wp,Cpad)
            for kw in range(ksize):
                tap = kh * ksize + kw
                acc = acc + xrow[kw:kw + wo, :] * w[tap:tap + 1, :]
        out_ref[0, r * wo:(r + 1) * wo, :] = acc.astype(out_ref.dtype)
        s_acc = s_acc + jnp.sum(acc, axis=0, keepdims=True)
        q_acc = q_acc + jnp.sum(acc * acc, axis=0, keepdims=True)
    sum_ref[0, 0] = s_acc
    sq_ref[0, 0] = q_acc


# --------------------------- kernel B: BN1 + Mish -> per-strip SE pool only ---------
def _bn_mish_pool_kernel(x_ref, scale_ref, shift_ref, pool_ref):
    x = x_ref[0].astype(jnp.float32)                   # (TM, Cpad)
    y = _mish(x * scale_ref[...] + shift_ref[...])
    pool_ref[0, 0] = jnp.sum(y, axis=0, keepdims=True)  # per-(sample, strip) sum


# --------------------------- kernel C: BN1+Mish recompute + SE gate + project -------
def _se_project_stats_kernel(x_ref, scale_ref, shift_ref, gate_ref, w_ref,
                             out_ref, sum_ref, sq_ref):
    x = x_ref[0].astype(jnp.float32)                   # (TM, Cpad)
    y = _mish(x * scale_ref[...] + shift_ref[...])     # recompute (hides under MXU)
    xs = y * gate_ref[0]                               # SE channel gating
    acc = jnp.dot(xs.astype(jnp.bfloat16), w_ref[...],  # bf16 MXU, f32 accumulation
                  preferred_element_type=jnp.float32)
    out_ref[0] = acc.astype(out_ref.dtype)
    sum_ref[0, 0] = jnp.sum(acc, axis=0, keepdims=True)
    sq_ref[0, 0] = jnp.sum(acc * acc, axis=0, keepdims=True)


# --------------------------- kernel D: BN2 affine (+ residual add) ------------------
def _bn_skip_kernel(p_ref, scale_ref, shift_ref, xin_ref, out_ref):
    y = p_ref[0].astype(jnp.float32) * scale_ref[...] + shift_ref[...]
    # TODO(synk): drop_connect (stochastic depth) treated as identity (eval behaviour).
    out_ref[0] = (y + xin_ref[0]).astype(out_ref.dtype)


def _bn_noskip_kernel(p_ref, scale_ref, shift_ref, out_ref):
    y = p_ref[0].astype(jnp.float32) * scale_ref[...] + shift_ref[...]
    out_ref[0] = y.astype(out_ref.dtype)


# ===================================== wrapper ======================================
def mbconv_forward(x_nchw, params, *, ksize=3, stride=1, expand_ratio=1,
                   eps=_EPS, row_tile=512, strip_rows=8):
    """MBConv forward (training-mode BN batch stats). x_nchw: (N, Cin, H, W)."""
    assert expand_ratio == 1 and stride == 1
    N, C, H, W = x_nchw.shape
    cout = params["w_proj"].shape[0]
    pad = (ksize - 1) // 2                       # static same padding, stride 1
    hw = H * W
    wp = W + 2 * pad
    cpad = _round_up(C, _LANE)
    copad = _round_up(cout, _LANE)
    th = _pick_strip_rows(H, W, hw, strip_rows)  # rows per kernel-A strip
    n_strips = H // th
    tm = _pick_hw_tile(hw, row_tile)             # row tile for kernels B/C/D
    nt = hw // tm
    f32 = jnp.float32
    bf16 = jnp.bfloat16
    count = float(N * hw)

    # ---- layout glue: NCHW -> NHWC, channel pad, spatial halo pad --------------------
    x_nhwc = jnp.transpose(x_nchw, (0, 2, 3, 1)).astype(f32)
    x_cpad = jnp.pad(x_nhwc, ((0, 0), (0, 0), (0, 0), (0, cpad - C)))
    x_halo = jnp.pad(x_cpad, ((0, 0), (pad, pad), (pad, pad), (0, 0)))  # (N,H+2p,Wp,Cp)

    # halo rows for strip t are padded rows [(t+1)*th, (t+1)*th + ksize-1):
    # materialized once as a small side input so kernel A is pure BlockSpec fetches.
    halo_rows = jnp.stack(
        [x_halo[:, th + k::th, :, :] for k in range(ksize - 1)],
        axis=2)                                   # (N, n_strips, ksize-1, Wp, Cpad)

    # depthwise taps (C,1,k,k) -> (k*k, Cpad)
    w_dw = jnp.transpose(params["w_dw"][:, 0], (1, 2, 0)).reshape(ksize * ksize, C)
    w_dw = jnp.pad(w_dw, ((0, 0), (0, cpad - C))).astype(f32)

    # ---- kernel A: depthwise conv strips + per-strip BN1 partial sums ----------------
    dw_raw, s1, q1 = pl.pallas_call(
        functools.partial(_dw_conv_stats_kernel, ksize=ksize, th=th, wo=W),
        grid=(N, n_strips),
        in_specs=(
            pl.BlockSpec((1, th, wp, cpad), lambda n, t: (n, t, 0, 0)),
            pl.BlockSpec((1, 1, ksize - 1, wp, cpad), lambda n, t: (n, t, 0, 0, 0)),
            pl.BlockSpec((ksize * ksize, cpad), lambda n, t: (0, 0)),
        ),
        out_specs=(
            pl.BlockSpec((1, th * W, cpad), lambda n, t: (n, t, 0)),
            pl.BlockSpec((1, 1, 1, cpad), lambda n, t: (n, t, 0, 0)),
            pl.BlockSpec((1, 1, 1, cpad), lambda n, t: (n, t, 0, 0)),
        ),
        out_shape=(
            jax.ShapeDtypeStruct((N, hw, cpad), bf16),
            jax.ShapeDtypeStruct((N, n_strips, 1, cpad), f32),
            jax.ShapeDtypeStruct((N, n_strips, 1, cpad), f32),
        ),
        compiler_params=_compiler_params(("parallel", "parallel")),
    )(x_halo, halo_rows, w_dw)

    # ---- tiny per-channel BN glue (scale = gamma*rsqrt(var+eps), shift = beta-mean*scale)
    def bn_scale_shift(s, q, gamma, beta, cp):
        gamma_p = jnp.pad(gamma.astype(f32), (0, cp - gamma.shape[0]))
        beta_p = jnp.pad(beta.astype(f32), (0, cp - beta.shape[0]))
        tot = jnp.sum(s, axis=(0, 1, 2))
        tot_sq = jnp.sum(q, axis=(0, 1, 2))
        mean = tot / count
        var = jnp.maximum(tot_sq / count - mean * mean, 0.0)   # biased (training) var
        scale = gamma_p * jax.lax.rsqrt(var + eps)
        shift = beta_p - mean * scale
        return scale.reshape(1, cp), shift.reshape(1, cp)

    scale1, shift1 = bn_scale_shift(s1, q1, params["bn1_gamma"], params["bn1_beta"], cpad)

    # ---- kernel B: BN1 + Mish, per-strip SE pooling only (no activated tensor in HBM)
    pool_strips = pl.pallas_call(
        _bn_mish_pool_kernel,
        grid=(N, nt),
        in_specs=(
            pl.BlockSpec((1, tm, cpad), lambda n, t: (n, t, 0)),
            pl.BlockSpec((1, cpad), lambda n, t: (0, 0)),
            pl.BlockSpec((1, cpad), lambda n, t: (0, 0)),
        ),
        out_specs=pl.BlockSpec((1, 1, 1, cpad), lambda n, t: (n, t, 0, 0)),
        out_shape=jax.ShapeDtypeStruct((N, nt, 1, cpad), f32),
        compiler_params=_compiler_params(("parallel", "parallel")),
    )(dw_raw, scale1, shift1)

    # ---- SE squeeze MLP on the (N, C) pooled vector: tiny plain-JAX glue -------------
    pool_mean = jnp.sum(pool_strips, axis=(1, 2))[:, :C] / float(hw)   # (N, C)
    w_red = params["w_se_reduce"].reshape(-1, C)                       # (Csq, C)
    w_exp = params["w_se_expand"].reshape(C, -1)                       # (C, Csq)
    z = _mish_ref(pool_mean @ w_red.T + params["b_se_reduce"][None, :])
    gate = jax.nn.sigmoid(z @ w_exp.T + params["b_se_expand"][None, :])  # (N, C)
    gate = jnp.pad(gate, ((0, 0), (0, cpad - C))).reshape(N, 1, cpad).astype(f32)

    # project weights (Cout, Cin, 1, 1) -> (Cpad, Coutpad) bf16 (VMEM-resident)
    w_proj = params["w_proj"][:, :, 0, 0].T
    w_proj = jnp.pad(w_proj, ((0, cpad - C), (0, copad - cout))).astype(bf16)

    # ---- kernel C: recompute BN1+Mish, SE gate, project 1x1 matmul + BN2 partial stats
    proj_raw, s2, q2 = pl.pallas_call(
        _se_project_stats_kernel,
        grid=(N, nt),
        in_specs=(
            pl.BlockSpec((1, tm, cpad), lambda n, t: (n, t, 0)),
            pl.BlockSpec((1, cpad), lambda n, t: (0, 0)),
            pl.BlockSpec((1, cpad), lambda n, t: (0, 0)),
            pl.BlockSpec((1, 1, cpad), lambda n, t: (n, 0, 0)),
            pl.BlockSpec((cpad, copad), lambda n, t: (0, 0)),
        ),
        out_specs=(
            pl.BlockSpec((1, tm, copad), lambda n, t: (n, t, 0)),
            pl.BlockSpec((1, 1, 1, copad), lambda n, t: (n, t, 0, 0)),
            pl.BlockSpec((1, 1, 1, copad), lambda n, t: (n, t, 0, 0)),
        ),
        out_shape=(
            jax.ShapeDtypeStruct((N, hw, copad), bf16),
            jax.ShapeDtypeStruct((N, nt, 1, copad), f32),
            jax.ShapeDtypeStruct((N, nt, 1, copad), f32),
        ),
        compiler_params=_compiler_params(("parallel", "parallel")),
    )(dw_raw, scale1, shift1, gate, w_proj)

    scale2, shift2 = bn_scale_shift(s2, q2, params["bn2_gamma"], params["bn2_beta"], copad)

    # ---- kernel D: BN2 affine (+ residual add), specialized on the skip path ---------
    skip = (stride == 1 and C == cout)
    out_shape = jax.ShapeDtypeStruct((N, hw, copad), f32)
    if skip:
        x_flat = x_cpad.reshape(N, hw, cpad)            # residual input (cpad == copad)
        y = pl.pallas_call(
            _bn_skip_kernel,
            grid=(N, nt),
            in_specs=(
                pl.BlockSpec((1, tm, copad), lambda n, t: (n, t, 0)),
                pl.BlockSpec((1, copad), lambda n, t: (0, 0)),
                pl.BlockSpec((1, copad), lambda n, t: (0, 0)),
                pl.BlockSpec((1, tm, cpad), lambda n, t: (n, t, 0)),
            ),
            out_specs=pl.BlockSpec((1, tm, copad), lambda n, t: (n, t, 0)),
            out_shape=out_shape,
            compiler_params=_compiler_params(("parallel", "parallel")),
        )(proj_raw, scale2, shift2, x_flat)
    else:
        y = pl.pallas_call(
            _bn_noskip_kernel,
            grid=(N, nt),
            in_specs=(
                pl.BlockSpec((1, tm, copad), lambda n, t: (n, t, 0)),
                pl.BlockSpec((1, copad), lambda n, t: (0, 0)),
                pl.BlockSpec((1, copad), lambda n, t: (0, 0)),
            ),
            out_specs=pl.BlockSpec((1, tm, copad), lambda n, t: (n, t, 0)),
            out_shape=out_shape,
            compiler_params=_compiler_params(("parallel", "parallel")),
        )(proj_raw, scale2, shift2)

    out = y[:, :, :cout].reshape(N, H, W, cout)
    return jnp.transpose(out, (0, 3, 1, 2)).astype(x_nchw.dtype)


# ===================================== reference ====================================
def _reference(x, params, eps=_EPS):
    N, C, H, W = x.shape

    def bn_train(v, gamma, beta):
        mean = jnp.mean(v, axis=(0, 2, 3), keepdims=True)
        var = jnp.mean((v - mean) ** 2, axis=(0, 2, 3), keepdims=True)
        return ((v - mean) * jax.lax.rsqrt(var + eps) * gamma.reshape(1, -1, 1, 1)
                + beta.reshape(1, -1, 1, 1))

    def mish(v):
        return v * jnp.tanh(jax.nn.softplus(v))

    dw = jax.lax.conv_general_dilated(
        x, params["w_dw"], (1, 1), ((1, 1), (1, 1)),
        dimension_numbers=("NCHW", "OIHW", "NCHW"), feature_group_count=C)
    dw = mish(bn_train(dw, params["bn1_gamma"], params["bn1_beta"]))

    pool = jnp.mean(dw, axis=(2, 3))                                    # (N, C)
    z = mish(pool @ params["w_se_reduce"].reshape(-1, C).T + params["b_se_reduce"])
    g = jax.nn.sigmoid(z @ params["w_se_expand"].reshape(C, -1).T + params["b_se_expand"])
    xse = dw * g[:, :, None, None]

    proj = jnp.einsum("nchw,oc->nohw", xse, params["w_proj"][:, :, 0, 0])
    proj = bn_train(proj, params["bn2_gamma"], params["bn2_beta"])
    return proj + x


if __name__ == "__main__":
    key = jax.random.PRNGKey(0)
    keys = jax.random.split(key, 11)
    N, C, H, W = 2, 4, 16, 16
    csq = max(int(C * 0.25), 1)

    params = {
        "w_dw": jax.random.normal(keys[0], (C, 1, 3, 3), jnp.float32) * 0.3,
        "bn1_gamma": 1.0 + 0.1 * jax.random.normal(keys[1], (C,), jnp.float32),
        "bn1_beta": 0.1 * jax.random.normal(keys[2], (C,), jnp.float32),
        "w_se_reduce": jax.random.normal(keys[3], (csq, C, 1, 1), jnp.float32) * 0.5,
        "b_se_reduce": 0.1 * jax.random.normal(keys[4], (csq,), jnp.float32),
        "w_se_expand": jax.random.normal(keys[5], (C, csq, 1, 1), jnp.float32) * 0.5,
        "b_se_expand": 0.1 * jax.random.normal(keys[6], (C,), jnp.float32),
        "w_proj": jax.random.normal(keys[7], (C, C, 1, 1), jnp.float32) * 0.5,
        "bn2_gamma": 1.0 + 0.1 * jax.random.normal(keys[8], (C,), jnp.float32),
        "bn2_beta": 0.1 * jax.random.normal(keys[9], (C,), jnp.float32),
    }
    x = jax.random.normal(keys[10], (N, C, H, W), jnp.float32)

    out = jax.block_until_ready(jax.jit(mbconv_forward)(x, params))
    ref = _reference(x, params)

    assert out.shape == (N, C, H, W), out.shape
    err = float(jnp.max(jnp.abs(out - ref)))
    # bf16 storage of dw_raw/proj_raw + bf16 MXU operands + approx-reciprocal Mish
    # (stats and accumulation stay f32, then BN re-normalizes) -> loosened tolerance.
    assert err < 1e-1, err
    print("KERNEL_OK")
</pallas_src>

<mosaic_0001>
module attributes {stable_mosaic.version = 11 : i64} {
  func.func @_se_project_stats_kernel(%arg0: i32, %arg1: i32, %arg2: memref<1x256x128xbf16, #tpu.memory_space<vmem>>, %arg3: memref<1x128xf32, #tpu.memory_space<vmem>>, %arg4: memref<1x128xf32, #tpu.memory_space<vmem>>, %arg5: memref<1x1x128xf32, #tpu.memory_space<vmem>>, %arg6: memref<128x128xbf16, #tpu.memory_space<vmem>>, %arg7: memref<1x256x128xbf16, #tpu.memory_space<vmem>>, %arg8: memref<1x1x1x128xf32, #tpu.memory_space<vmem>>, %arg9: memref<1x1x1x128xf32, #tpu.memory_space<vmem>>) attributes {dimension_semantics = [#tpu.dimension_semantics<parallel>, #tpu.dimension_semantics<parallel>], iteration_bounds = array<i64: 2, 1>, scalar_prefetch = 0 : i64, scratch_operands = 0 : i64, tpu.core_type = #tpu.core_type<tc>, window_params = [{transform_indices = @transform_0, window_bounds = array<i64: 1, 256, 128>}, {pipeline_mode = #tpu.pipeline_mode<synchronous>, transform_indices = @transform_1, window_bounds = array<i64: 1, 128>}, {pipeline_mode = #tpu.pipeline_mode<synchronous>, transform_indices = @transform_2, window_bounds = array<i64: 1, 128>}, {transform_indices = @transform_3, window_bounds = array<i64: 1, 1, 128>}, {pipeline_mode = #tpu.pipeline_mode<synchronous>, transform_indices = @transform_4, window_bounds = array<i64: 128, 128>}, {transform_indices = @transform_5, window_bounds = array<i64: 1, 256, 128>}, {transform_indices = @transform_6, window_bounds = array<i64: 1, 1, 1, 128>}, {transform_indices = @transform_7, window_bounds = array<i64: 1, 1, 1, 128>}]} {
    %c0 = arith.constant 0 : index
    %c0_0 = arith.constant 0 : index
    %c0_1 = arith.constant 0 : index
    %0 = vector.load %arg2[%c0, %c0_0, %c0_1] : memref<1x256x128xbf16, #tpu.memory_space<vmem>>, vector<1x256x128xbf16>
    %1 = vector.shape_cast %0 : vector<1x256x128xbf16> to vector<256x128xbf16>
    %2 = arith.extf %1 : vector<256x128xbf16> to vector<256x128xf32>
    %c0_2 = arith.constant 0 : index
    %c0_3 = arith.constant 0 : index
    %3 = vector.load %arg3[%c0_2, %c0_3] : memref<1x128xf32, #tpu.memory_space<vmem>>, vector<1x128xf32>
    %4 = vector.broadcast %3 : vector<1x128xf32> to vector<256x128xf32>
    %5 = arith.mulf %2, %4 : vector<256x128xf32>
    %c0_4 = arith.constant 0 : index
    %c0_5 = arith.constant 0 : index
    %6 = vector.load %arg4[%c0_4, %c0_5] : memref<1x128xf32, #tpu.memory_space<vmem>>, vector<1x128xf32>
    %7 = vector.broadcast %6 : vector<1x128xf32> to vector<256x128xf32>
    %8 = arith.addf %5, %7 : vector<256x128xf32>
    %cst = arith.constant 2.000000e+01 : f32
    %9 = vector.broadcast %cst : f32 to vector<256x128xf32>
    %10 = arith.minimumf %8, %9 : vector<256x128xf32>
    %11 = math.exp %10 : vector<256x128xf32>
    %cst_6 = arith.constant 2.000000e+00 : f32
    %12 = vector.broadcast %cst_6 : f32 to vector<256x128xf32>
    %13 = arith.addf %11, %12 : vector<256x128xf32>
    %14 = arith.mulf %11, %13 : vector<256x128xf32>
    %15 = arith.mulf %8, %14 : vector<256x128xf32>
    %cst_7 = arith.constant 2.000000e+00 : f32
    %16 = vector.broadcast %cst_7 : f32 to vector<256x128xf32>
    %17 = arith.addf %14, %16 : vector<256x128xf32>
    %18 = tpu.reciprocal %17 {approx = true} : vector<256x128xf32> -> vector<256x128xf32>
    %19 = arith.mulf %15, %18 : vector<256x128xf32>
    %c0_8 = arith.constant 0 : index
    %c0_9 = arith.constant 0 : index
    %c0_10 = arith.constant 0 : index
    %20 = vector.load %arg5[%c0_8, %c0_9, %c0_10] : memref<1x1x128xf32, #tpu.memory_space<vmem>>, vector<1x1x128xf32>
    %21 = vector.shape_cast %20 : vector<1x1x128xf32> to vector<1x128xf32>
    %22 = vector.broadcast %21 : vector<1x128xf32> to vector<256x128xf32>
    %23 = arith.mulf %19, %22 : vector<256x128xf32>
    %24 = arith.truncf %23 : vector<256x128xf32> to vector<256x128xbf16>
    %c0_11 = arith.constant 0 : index
    %c0_12 = arith.constant 0 : index
    %25 = vector.load %arg6[%c0_11, %c0_12] : memref<128x128xbf16, #tpu.memory_space<vmem>>, vector<128x128xbf16>
    %cst_13 = arith.constant dense<0.000000e+00> : vector<256x128xf32>
    %26 = tpu.matmul %24, %25, %cst_13 {dimension_numbers = #tpu.dot_dimension_numbers<[1], [0], [0], [1], [0, 0, 1, 1], [], []>} : vector<256x128xbf16>, vector<128x128xbf16>, vector<256x128xf32> -> vector<256x128xf32>
    %27 = arith.truncf %26 : vector<256x128xf32> to vector<256x128xbf16>
    %c0_14 = arith.constant 0 : index
    %c0_15 = arith.constant 0 : index
    %c0_16 = arith.constant 0 : index
    %28 = vector.load %arg7[%c0_14, %c0_15, %c0_16] : memref<1x256x128xbf16, #tpu.memory_space<vmem>>, vector<1x256x128xbf16>
    %29 = vector.shape_cast %28 : vector<1x256x128xbf16> to vector<256x128xbf16>
    %30 = vector.shape_cast %27 : vector<256x128xbf16> to vector<1x256x128xbf16>
    tpu.vector_store %arg7[%c0_14, %c0_15, %c0_16], %30 {strides = array<i32>} : memref<1x256x128xbf16, #tpu.memory_space<vmem>>, vector<1x256x128xbf16>,
    %cst_17 = arith.constant dense<0.000000e+00> : vector<128xf32>
    %31 = vector.multi_reduction <add>, %26, %cst_17 [0] : vector<256x128xf32> to vector<128xf32>
    %32 = vector.shape_cast %31 : vector<128xf32> to vector<1x128xf32>
    %c0_18 = arith.constant 0 : index
    %c0_19 = arith.constant 0 : index
    %c0_20 = arith.constant 0 : index
    %c0_21 = arith.constant 0 : index
    %33 = vector.load %arg8[%c0_18, %c0_19, %c0_20, %c0_21] : memref<1x1x1x128xf32, #tpu.memory_space<vmem>>, vector<1x1x1x128xf32>
    %34 = vector.shape_cast %33 : vector<1x1x1x128xf32> to vector<1x128xf32>
    %35 = vector.shape_cast %32 : vector<1x128xf32> to vector<1x1x1x128xf32>
    tpu.vector_store %arg8[%c0_18, %c0_19, %c0_20, %c0_21], %35 {strides = array<i32>} : memref<1x1x1x128xf32, #tpu.memory_space<vmem>>, vector<1x1x1x128xf32>,
    %36 = arith.mulf %26, %26 : vector<256x128xf32>
    %cst_22 = arith.constant dense<0.000000e+00> : vector<128xf32>
    %37 = vector.multi_reduction <add>, %36, %cst_22 [0] : vector<256x128xf32> to vector<128xf32>
    %38 = vector.shape_cast %37 : vector<128xf32> to vector<1x128xf32>
    %c0_23 = arith.constant 0 : index
    %c0_24 = arith.constant 0 : index
    %c0_25 = arith.constant 0 : index
    %c0_26 = arith.constant 0 : index
    %39 = vector.load %arg9[%c0_23, %c0_24, %c0_25, %c0_26] : memref<1x1x1x128xf32, #tpu.memory_space<vmem>>, vector<1x1x1x128xf32>
    %40 = vector.shape_cast %39 : vector<1x1x1x128xf32> to vector<1x128xf32>
    %41 = vector.shape_cast %38 : vector<1x128xf32> to vector<1x1x1x128xf32>
    tpu.vector_store %arg9[%c0_23, %c0_24, %c0_25, %c0_26], %41 {strides = array<i32>} : memref<1x1x1x128xf32, #tpu.memory_space<vmem>>, vector<1x1x1x128xf32>,
    return
  }
  func.func @transform_0(%arg0: i32, %arg1: i32) -> (i32, i32, i32) {
    %c0_i32 = arith.constant 0 : i32
    %c0_i32_0 = arith.constant 0 : i32
    return %arg0, %arg1, %c0_i32 : i32, i32, i32
  }
  func.func @transform_1(%arg0: i32, %arg1: i32) -> (i32, i32) {
    %c0_i32 = arith.constant 0 : i32
    %c0_i32_0 = arith.constant 0 : i32
    %c0_i32_1 = arith.constant 0 : i32
    return %c0_i32, %c0_i32_0 : i32, i32
  }
  func.func @transform_2(%arg0: i32, %arg1: i32) -> (i32, i32) {
    %c0_i32 = arith.constant 0 : i32
    %c0_i32_0 = arith.constant 0 : i32
    %c0_i32_1 = arith.constant 0 : i32
    return %c0_i32, %c0_i32_0 : i32, i32
  }
  func.func @transform_3(%arg0: i32, %arg1: i32) -> (i32, i32, i32) {
    %c0_i32 = arith.constant 0 : i32
    %c0_i32_0 = arith.constant 0 : i32
    %c0_i32_1 = arith.constant 0 : i32
    return %arg0, %c0_i32, %c0_i32_0 : i32, i32, i32
  }
  func.func @transform_4(%arg0: i32, %arg1: i32) -> (i32, i32) {
    %c0_i32 = arith.constant 0 : i32
    %c0_i32_0 = arith.constant 0 : i32
    %c0_i32_1 = arith.constant 0 : i32
    return %c0_i32, %c0_i32_0 : i32, i32
  }
  func.func @transform_5(%arg0: i32, %arg1: i32) -> (i32, i32, i32) {
    %c0_i32 = arith.constant 0 : i32
    %c0_i32_0 = arith.constant 0 : i32
    return %arg0, %arg1, %c0_i32 : i32, i32, i32
  }
  func.func @transform_6(%arg0: i32, %arg1: i32) -> (i32, i32, i32, i32) {
    %c0_i32 = arith.constant 0 : i32
    %c0_i32_0 = arith.constant 0 : i32
    %c0_i32_1 = arith.constant 0 : i32
    return %arg0, %arg1, %c0_i32, %c0_i32_0 : i32, i32, i32, i32
  }
  func.func @transform_7(%arg0: i32, %arg1: i32) -> (i32, i32, i32, i32) {
    %c0_i32 = arith.constant 0 : i32
    %c0_i32_0 = arith.constant 0 : i32
    %c0_i32_1 = arith.constant 0 : i32
    return %arg0, %arg1, %c0_i32, %c0_i32_0 : i32, i32, i32, i32
  }
}

module attributes {stable_mosaic.version = 11 : i64} {
  func.func @_bn_mish_pool_kernel(%arg0: i32, %arg1: i32, %arg2: memref<1x256x128xbf16, #tpu.memory_space<vmem>>, %arg3: memref<1x128xf32, #tpu.memory_space<vmem>>, %arg4: memref<1x128xf32, #tpu.memory_space<vmem>>, %arg5: memref<1x1x1x128xf32, #tpu.memory_space<vmem>>) attributes {dimension_semantics = [#tpu.dimension_semantics<parallel>, #tpu.dimension_semantics<parallel>], iteration_bounds = array<i64: 2, 1>, scalar_prefetch = 0 : i64, scratch_operands = 0 : i64, tpu.core_type = #tpu.core_type<tc>, window_params = [{transform_indices = @transform_0, window_bounds = array<i64: 1, 256, 128>}, {pipeline_mode = #tpu.pipeline_mode<synchronous>, transform_indices = @transform_1, window_bounds = array<i64: 1, 128>}, {pipeline_mode = #tpu.pipeline_mode<synchronous>, transform_indices = @transform_2, window_bounds = array<i64: 1, 128>}, {transform_indices = @transform_3, window_bounds = array<i64: 1, 1, 1, 128>}]} {
    %c0 = arith.constant 0 : index
    %c0_0 = arith.constant 0 : index
    %c0_1 = arith.constant 0 : index
    %0 = vector.load %arg2[%c0, %c0_0, %c0_1] : memref<1x256x128xbf16, #tpu.memory_space<vmem>>, vector<1x256x128xbf16>
    %1 = vector.shape_cast %0 : vector<1x256x128xbf16> to vector<256x128xbf16>
    %2 = arith.extf %1 : vector<256x128xbf16> to vector<256x128xf32>
    %c0_2 = arith.constant 0 : index
    %c0_3 = arith.constant 0 : index
    %3 = vector.load %arg3[%c0_2, %c0_3] : memref<1x128xf32, #tpu.memory_space<vmem>>, vector<1x128xf32>
    %4 = vector.broadcast %3 : vector<1x128xf32> to vector<256x128xf32>
    %5 = arith.mulf %2, %4 : vector<256x128xf32>
    %c0_4 = arith.constant 0 : index
    %c0_5 = arith.constant 0 : index
    %6 = vector.load %arg4[%c0_4, %c0_5] : memref<1x128xf32, #tpu.memory_space<vmem>>, vector<1x128xf32>
    %7 = vector.broadcast %6 : vector<1x128xf32> to vector<256x128xf32>
    %8 = arith.addf %5, %7 : vector<256x128xf32>
    %cst = arith.constant 2.000000e+01 : f32
    %9 = vector.broadcast %cst : f32 to vector<256x128xf32>
    %10 = arith.minimumf %8, %9 : vector<256x128xf32>
    %11 = math.exp %10 : vector<256x128xf32>
    %cst_6 = arith.constant 2.000000e+00 : f32
    %12 = vector.broadcast %cst_6 : f32 to vector<256x128xf32>
    %13 = arith.addf %11, %12 : vector<256x128xf32>
    %14 = arith.mulf %11, %13 : vector<256x128xf32>
    %15 = arith.mulf %8, %14 : vector<256x128xf32>
    %cst_7 = arith.constant 2.000000e+00 : f32
    %16 = vector.broadcast %cst_7 : f32 to vector<256x128xf32>
    %17 = arith.addf %14, %16 : vector<256x128xf32>
    %18 = tpu.reciprocal %17 {approx = true} : vector<256x128xf32> -> vector<256x128xf32>
    %19 = arith.mulf %15, %18 : vector<256x128xf32>
    %cst_8 = arith.constant dense<0.000000e+00> : vector<128xf32>
    %20 = vector.multi_reduction <add>, %19, %cst_8 [0] : vector<256x128xf32> to vector<128xf32>
    %21 = vector.shape_cast %20 : vector<128xf32> to vector<1x128xf32>
    %c0_9 = arith.constant 0 : index
    %c0_10 = arith.constant 0 : index
    %c0_11 = arith.constant 0 : index
    %c0_12 = arith.constant 0 : index
    %22 = vector.load %arg5[%c0_9, %c0_10, %c0_11, %c0_12] : memref<1x1x1x128xf32, #tpu.memory_space<vmem>>, vector<1x1x1x128xf32>
    %23 = vector.shape_cast %22 : vector<1x1x1x128xf32> to vector<1x128xf32>
    %24 = vector.shape_cast %21 : vector<1x128xf32> to vector<1x1x1x128xf32>
    tpu.vector_store %arg5[%c0_9, %c0_10, %c0_11, %c0_12], %24 {strides = array<i32>} : memref<1x1x1x128xf32, #tpu.memory_space<vmem>>, vector<1x1x1x128xf32>,
    return
  }
  func.func @transform_0(%arg0: i32, %arg1: i32) -> (i32, i32, i32) {
    %c0_i32 = arith.constant 0 : i32
    %c0_i32_0 = arith.constant 0 : i32
    return %arg0, %arg1, %c0_i32 : i32, i32, i32
  }
  func.func @transform_1(%arg0: i32, %arg1: i32) -> (i32, i32) {
    %c0_i32 = arith.constant 0 : i32
    %c0_i32_0 = arith.constant 0 : i32
    %c0_i32_1 = arith.constant 0 : i32
    return %c0_i32, %c0_i32_0 : i32, i32
  }
  func.func @transform_2(%arg0: i32, %arg1: i32) -> (i32, i32) {
    %c0_i32 = arith.constant 0 : i32
    %c0_i32_0 = arith.constant 0 : i32
    %c0_i32_1 = arith.constant 0 : i32
    return %c0_i32, %c0_i32_0 : i32, i32
  }
  func.func @transform_3(%arg0: i32, %arg1: i32) -> (i32, i32, i32, i32) {
    %c0_i32 = arith.constant 0 : i32
    %c0_i32_0 = arith.constant 0 : i32
    %c0_i32_1 = arith.constant 0 : i32
    return %arg0, %arg1, %c0_i32, %c0_i32_0 : i32, i32, i32, i32
  }
}

module attributes {stable_mosaic.version = 11 : i64} {
  func.func @_dw_conv_stats_kernel(%arg0: i32, %arg1: i32, %arg2: memref<1x8x18x128xf32, #tpu.memory_space<vmem>>, %arg3: memref<1x1x2x18x128xf32, #tpu.memory_space<vmem>>, %arg4: memref<9x128xf32, #tpu.memory_space<vmem>>, %arg5: memref<1x128x128xbf16, #tpu.memory_space<vmem>>, %arg6: memref<1x1x1x128xf32, #tpu.memory_space<vmem>>, %arg7: memref<1x1x1x128xf32, #tpu.memory_space<vmem>>) attributes {dimension_semantics = [#tpu.dimension_semantics<parallel>, #tpu.dimension_semantics<parallel>], iteration_bounds = array<i64: 2, 2>, scalar_prefetch = 0 : i64, scratch_operands = 0 : i64, tpu.core_type = #tpu.core_type<tc>, window_params = [{transform_indices = @transform_0, window_bounds = array<i64: 1, 8, 18, 128>}, {transform_indices = @transform_1, window_bounds = array<i64: 1, 1, 2, 18, 128>}, {pipeline_mode = #tpu.pipeline_mode<synchronous>, transform_indices = @transform_2, window_bounds = array<i64: 9, 128>}, {transform_indices = @transform_3, window_bounds = array<i64: 1, 128, 128>}, {transform_indices = @transform_4, window_bounds = array<i64: 1, 1, 1, 128>}, {transform_indices = @transform_5, window_bounds = array<i64: 1, 1, 1, 128>}]} {
    %c0 = arith.constant 0 : index
    %c0_0 = arith.constant 0 : index
    %0 = vector.load %arg4[%c0, %c0_0] : memref<9x128xf32, #tpu.memory_space<vmem>>, vector<9x128xf32>
    %cst = arith.constant 0.000000e+00 : f32
    %1 = vector.broadcast %cst : f32 to vector<1x128xf32>
    %cst_1 = arith.constant 0.000000e+00 : f32
    %2 = vector.broadcast %cst_1 : f32 to vector<1x128xf32>
    %cst_2 = arith.constant 0.000000e+00 : f32
    %3 = vector.broadcast %cst_2 : f32 to vector<16x128xf32>
    %c0_3 = arith.constant 0 : index
    %c0_4 = arith.constant 0 : index
    %c0_5 = arith.constant 0 : index
    %c0_6 = arith.constant 0 : index
    %4 = vector.load %arg2[%c0_3, %c0_4, %c0_5, %c0_6] : memref<1x8x18x128xf32, #tpu.memory_space<vmem>>, vector<1x1x18x128xf32>
    %5 = vector.shape_cast %4 : vector<1x1x18x128xf32> to vector<18x128xf32>
    %6 = vector.extract_strided_slice %5 {offsets = [0, 0], sizes = [16, 128], strides = [1, 1]} : vector<18x128xf32> to vector<16x128xf32>
    %7 = vector.extract_strided_slice %0 {offsets = [0, 0], sizes = [1, 128], strides = [1, 1]} : vector<9x128xf32> to vector<1x128xf32>
    %8 = vector.broadcast %7 : vector<1x128xf32> to vector<16x128xf32>
    %9 = arith.mulf %6, %8 : vector<16x128xf32>
    %10 = arith.addf %3, %9 : vector<16x128xf32>
    %11 = vector.extract_strided_slice %5 {offsets = [1, 0], sizes = [16, 128], strides = [1, 1]} : vector<18x128xf32> to vector<16x128xf32>
    %12 = vector.extract_strided_slice %0 {offsets = [1, 0], sizes = [1, 128], strides = [1, 1]} : vector<9x128xf32> to vector<1x128xf32>
    %13 = vector.broadcast %12 : vector<1x128xf32> to vector<16x128xf32>
    %14 = arith.mulf %11, %13 : vector<16x128xf32>
    %15 = arith.addf %10, %14 : vector<16x128xf32>
    %16 = vector.extract_strided_slice %5 {offsets = [2, 0], sizes = [16, 128], strides = [1, 1]} : vector<18x128xf32> to vector<16x128xf32>
    %17 = vector.extract_strided_slice %0 {offsets = [2, 0], sizes = [1, 128], strides = [1, 1]} : vector<9x128xf32> to vector<1x128xf32>
    %18 = vector.broadcast %17 : vector<1x128xf32> to vector<16x128xf32>
    %19 = arith.mulf %16, %18 : vector<16x128xf32>
    %20 = arith.addf %15, %19 : vector<16x128xf32>
    %c0_7 = arith.constant 0 : index
    %c1 = arith.constant 1 : index
    %c0_8 = arith.constant 0 : index
    %c0_9 = arith.constant 0 : index
    %21 = vector.load %arg2[%c0_7, %c1, %c0_8, %c0_9] : memref<1x8x18x128xf32, #tpu.memory_space<vmem>>, vector<1x1x18x128xf32>
    %22 = vector.shape_cast %21 : vector<1x1x18x128xf32> to vector<18x128xf32>
    %23 = vector.extract_strided_slice %22 {offsets = [0, 0], sizes = [16, 128], strides = [1, 1]} : vector<18x128xf32> to vector<16x128xf32>
    %24 = vector.extract_strided_slice %0 {offsets = [3, 0], sizes = [1, 128], strides = [1, 1]} : vector<9x128xf32> to vector<1x128xf32>
    %25 = vector.broadcast %24 : vector<1x128xf32> to vector<16x128xf32>
    %26 = arith.mulf %23, %25 : vector<16x128xf32>
    %27 = arith.addf %20, %26 : vector<16x128xf32>
    %28 = vector.extract_strided_slice %22 {offsets = [1, 0], sizes = [16, 128], strides = [1, 1]} : vector<18x128xf32> to vector<16x128xf32>
    %29 = vector.extract_strided_slice %0 {offsets = [4, 0], sizes = [1, 128], strides = [1, 1]} : vector<9x128xf32> to vector<1x128xf32>
    %30 = vector.broadcast %29 : vector<1x128xf32> to vector<16x128xf32>
    %31 = arith.mulf %28, %30 : vector<16x128xf32>
    %32 = arith.addf %27, %31 : vector<16x128xf32>
    %33 = vector.extract_strided_slice %22 {offsets = [2, 0], sizes = [16, 128], strides = [1, 1]} : vector<18x128xf32> to vector<16x128xf32>
    %34 = vector.extract_strided_slice %0 {offsets = [5, 0], sizes = [1, 128], strides = [1, 1]} : vector<9x128xf32> to vector<1x128xf32>
    %35 = vector.broadcast %34 : vector<1x128xf32> to vector<16x128xf32>
    %36 = arith.mulf %33, %35 : vector<16x128xf32>
    %37 = arith.addf %32, %36 : vector<16x128xf32>
    %c0_10 = arith.constant 0 : index
    %c2 = arith.constant 2 : index
    %c0_11 = arith.constant 0 : index
    %c0_12 = arith.constant 0 : index
    %38 = vector.load %arg2[%c0_10, %c2, %c0_11, %c0_12] : memref<1x8x18x128xf32, #tpu.memory_space<vmem>>, vector<1x1x18x128xf32>
    %39 = vector.shape_cast %38 : vector<1x1x18x128xf32> to vector<18x128xf32>
    %40 = vector.extract_strided_slice %39 {offsets = [0, 0], sizes = [16, 128], strides = [1, 1]} : vector<18x128xf32> to vector<16x128xf32>
    %41 = vector.extract_strided_slice %0 {offsets = [6, 0], sizes = [1, 128], strides = [1, 1]} : vector<9x128xf32> to vector<1x128xf32>
    %42 = vector.broadcast %41 : vector<1x128xf32> to vector<16x128xf32>
    %43 = arith.mulf %40, %42 : vector<16x128xf32>
    %44 = arith.addf %37, %43 : vector<16x128xf32>
    %45 = vector.extract_strided_slice %39 {offsets = [1, 0], sizes = [16, 128], strides = [1, 1]} : vector<18x128xf32> to vector<16x128xf32>
    %46 = vector.extract_strided_slice %0 {offsets = [7, 0], sizes = [1, 128], strides = [1, 1]} : vector<9x128xf32> to vector<1x128xf32>
    %47 = vector.broadcast %46 : vector<1x128xf32> to vector<16x128xf32>
    %48 = arith.mulf %45, %47 : vector<16x128xf32>
    %49 = arith.addf %44, %48 : vector<16x128xf32>
    %50 = vector.extract_strided_slice %39 {offsets = [2, 0], sizes = [16, 128], strides = [1, 1]} : vector<18x128xf32> to vector<16x128xf32>
    %51 = vector.extract_strided_slice %0 {offsets = [8, 0], sizes = [1, 128], strides = [1, 1]} : vector<9x128xf32> to vector<1x128xf32>
    %52 = vector.broadcast %51 : vector<1x128xf32> to vector<16x128xf32>
    %53 = arith.mulf %50, %52 : vector<16x128xf32>
    %54 = arith.addf %49, %53 : vector<16x128xf32>
    %55 = arith.truncf %54 : vector<16x128xf32> to vector<16x128xbf16>
    %c0_13 = arith.constant 0 : index
    %c0_14 = arith.constant 0 : index
    %c0_15 = arith.constant 0 : index
    %56 = vector.load %arg5[%c0_13, %c0_14, %c0_15] : memref<1x128x128xbf16, #tpu.memory_space<vmem>>, vector<1x16x128xbf16>
    %57 = vector.shape_cast %56 : vector<1x16x128xbf16> to vector<16x128xbf16>
    %58 = vector.shape_cast %55 : vector<16x128xbf16> to vector<1x16x128xbf16>
    tpu.vector_store %arg5[%c0_13, %c0_14, %c0_15], %58 {strides = array<i32>} : memref<1x128x128xbf16, #tpu.memory_space<vmem>>, vector<1x16x128xbf16>,
    %cst_16 = arith.constant dense<0.000000e+00> : vector<128xf32>
    %59 = vector.multi_reduction <add>, %54, %cst_16 [0] : vector<16x128xf32> to vector<128xf32>
    %60 = vector.shape_cast %59 : vector<128xf32> to vector<1x128xf32>
    %61 = arith.addf %1, %60 : vector<1x128xf32>
    %62 = arith.mulf %54, %54 : vector<16x128xf32>
    %cst_17 = arith.constant dense<0.000000e+00> : vector<128xf32>
    %63 = vector.multi_reduction <add>, %62, %cst_17 [0] : vector<16x128xf32> to vector<128xf32>
    %64 = vector.shape_cast %63 : vector<128xf32> to vector<1x128xf32>
    %65 = arith.addf %2, %64 : vector<1x128xf32>
    %cst_18 = arith.constant 0.000000e+00 : f32
    %66 = vector.broadcast %cst_18 : f32 to vector<16x128xf32>
    %c0_19 = arith.constant 0 : index
    %c1_20 = arith.constant 1 : index
    %c0_21 = arith.constant 0 : index
    %c0_22 = arith.constant 0 : index
    %67 = vector.load %arg2[%c0_19, %c1_20, %c0_21, %c0_22] : memref<1x8x18x128xf32, #tpu.memory_space<vmem>>, vector<1x1x18x128xf32>
    %68 = vector.shape_cast %67 : vector<1x1x18x128xf32> to vector<18x128xf32>
    %69 = vector.extract_strided_slice %68 {offsets = [0, 0], sizes = [16, 128], strides = [1, 1]} : vector<18x128xf32> to vector<16x128xf32>
    %70 = vector.extract_strided_slice %0 {offsets = [0, 0], sizes = [1, 128], strides = [1, 1]} : vector<9x128xf32> to vector<1x128xf32>
    %71 = vector.broadcast %70 : vector<1x128xf32> to vector<16x128xf32>
    %72 = arith.mulf %69, %71 : vector<16x128xf32>
    %73 = arith.addf %66, %72 : vector<16x128xf32>
    %74 = vector.extract_strided_slice %68 {offsets = [1, 0], sizes = [16, 128], strides = [1, 1]} : vector<18x128xf32> to vector<16x128xf32>
    %75 = vector.extract_strided_slice %0 {offsets = [1, 0], sizes = [1, 128], strides = [1, 1]} : vector<9x128xf32> to vector<1x128xf32>
    %76 = vector.broadcast %75 : vector<1x128xf32> to vector<16x128xf32>
    %77 = arith.mulf %74, %76 : vector<16x128xf32>
    %78 = arith.addf %73, %77 : vector<16x128xf32>
    %79 = vector.extract_strided_slice %68 {offsets = [2, 0], sizes = [16, 128], strides = [1, 1]} : vector<18x128xf32> to vector<16x128xf32>
    %80 = vector.extract_strided_slice %0 {offsets = [2, 0], sizes = [1, 128], strides = [1, 1]} : vector<9x128xf32> to vector<1x128xf32>
    %81 = vector.broadcast %80 : vector<1x128xf32> to vector<16x128xf32>
    %82 = arith.mulf %79, %81 : vector<16x128xf32>
    %83 = arith.addf %78, %82 : vector<16x128xf32>
    %c0_23 = arith.constant 0 : index
    %c2_24 = arith.constant 2 : index
    %c0_25 = arith.constant 0 : index
    %c0_26 = arith.constant 0 : index
    %84 = vector.load %arg2[%c0_23, %c2_24, %c0_25, %c0_26] : memref<1x8x18x128xf32, #tpu.memory_space<vmem>>, vector<1x1x18x128xf32>
    %85 = vector.shape_cast %84 : vector<1x1x18x128xf32> to vector<18x128xf32>
    %86 = vector.extract_strided_slice %85 {offsets = [0, 0], sizes = [16, 128], strides = [1, 1]} : vector<18x128xf32> to vector<16x128xf32>
    %87 = vector.extract_strided_slice %0 {offsets = [3, 0], sizes = [1, 128], strides = [1, 1]} : vector<9x128xf32> to vector<1x128xf32>
    %88 = vector.broadcast %87 : vector<1x128xf32> to vector<16x128xf32>
    %89 = arith.mulf %86, %88 : vector<16x128xf32>
    %90 = arith.addf %83, %89 : vector<16x128xf32>
    %91 = vector.extract_strided_slice %85 {offsets = [1, 0], sizes = [16, 128], strides = [1, 1]} : vector<18x128xf32> to vector<16x128xf32>
    %92 = vector.extract_strided_slice %0 {offsets = [4, 0], sizes = [1, 128], strides = [1, 1]} : vector<9x128xf32> to vector<1x128xf32>
    %93 = vector.broadcast %92 : vector<1x128xf32> to vector<16x128xf32>
    %94 = arith.mulf %91, %93 : vector<16x128xf32>
    %95 = arith.addf %90, %94 : vector<16x128xf32>
    %96 = vector.extract_strided_slice %85 {offsets = [2, 0], sizes = [16, 128], strides = [1, 1]} : vector<18x128xf32> to vector<16x128xf32>
    %97 = vector.extract_strided_slice %0 {offsets = [5, 0], sizes = [1, 128], strides = [1, 1]} : vector<9x128xf32> to vector<1x128xf32>
    %98 = vector.broadcast %97 : vector<1x128xf32> to vector<16x128xf32>
    %99 = arith.mulf %96, %98 : vector<16x128xf32>
    %100 = arith.addf %95, %99 : vector<16x128xf32>
    %c0_27 = arith.constant 0 : index
    %c3 = arith.constant 3 : index
    %c0_28 = arith.constant 0 : index
    %c0_29 = arith.constant 0 : index
    %101 = vector.load %arg2[%c0_27, %c3, %c0_28, %c0_29] : memref<1x8x18x128xf32, #tpu.memory_space<vmem>>, vector<1x1x18x128xf32>
    %102 = vector.shape_cast %101 : vector<1x1x18x128xf32> to vector<18x128xf32>
    %103 = vector.extract_strided_slice %102 {offsets = [0, 0], sizes = [16, 128], strides = [1, 1]} : vector<18x128xf32> to vector<16x128xf32>
    %104 = vector.extract_strided_slice %0 {offsets = [6, 0], sizes = [1, 128], strides = [1, 1]} : vector<9x128xf32> to vector<1x128xf32>
    %105 = vector.broadcast %104 : vector<1x128xf32> to vector<16x128xf32>
    %106 = arith.mulf %103, %105 : vector<16x128xf32>
    %107 = arith.addf %100, %106 : vector<16x128xf32>
    %108 = vector.extract_strided_slice %102 {offsets = [1, 0], sizes = [16, 128], strides = [1, 1]} : vector<18x128xf32> to vector<16x128xf32>
    %109 = vector.extract_strided_slice %0 {offsets = [7, 0], sizes = [1, 128], strides = [1, 1]} : vector<9x128xf32> to vector<1x128xf32>
    %110 = vector.broadcast %109 : vector<1x128xf32> to vector<16x128xf32>
    %111 = arith.mulf %108, %110 : vector<16x128xf32>
    %112 = arith.addf %107, %111 : vector<16x128xf32>
    %113 = vector.extract_strided_slice %102 {offsets = [2, 0], sizes = [16, 128], strides = [1, 1]} : vector<18x128xf32> to vector<16x128xf32>
    %114 = vector.extract_strided_slice %0 {offsets = [8, 0], sizes = [1, 128], strides = [1, 1]} : vector<9x128xf32> to vector<1x128xf32>
    %115 = vector.broadcast %114 : vector<1x128xf32> to vector<16x128xf32>
    %116 = arith.mulf %113, %115 : vector<16x128xf32>
    %117 = arith.addf %112, %116 : vector<16x128xf32>
    %118 = arith.truncf %117 : vector<16x128xf32> to vector<16x128xbf16>
    %c0_30 = arith.constant 0 : index
    %c16 = arith.constant 16 : index
    %c0_31 = arith.constant 0 : index
    %119 = vector.load %arg5[%c0_30, %c16, %c0_31] : memref<1x128x128xbf16, #tpu.memory_space<vmem>>, vector<1x16x128xbf16>
    %120 = vector.shape_cast %119 : vector<1x16x128xbf16> to vector<16x128xbf16>
    %121 = vector.shape_cast %118 : vector<16x128xbf16> to vector<1x16x128xbf16>
    tpu.vector_store %arg5[%c0_30, %c16, %c0_31], %121 {strides = array<i32>} : memref<1x128x128xbf16, #tpu.memory_space<vmem>>, vector<1x16x128xbf16>,
    %cst_32 = arith.constant dense<0.000000e+00> : vector<128xf32>
    %122 = vector.multi_reduction <add>, %117, %cst_32 [0] : vector<16x128xf32> to vector<128xf32>
    %123 = vector.shape_cast %122 : vector<128xf32> to vector<1x128xf32>
    %124 = arith.addf %61, %123 : vector<1x128xf32>
    %125 = arith.mulf %117, %117 : vector<16x128xf32>
    %cst_33 = arith.constant dense<0.000000e+00> : vector<128xf32>
    %126 = vector.multi_reduction <add>, %125, %cst_33 [0] : vector<16x128xf32> to vector<128xf32>
    %127 = vector.shape_cast %126 : vector<128xf32> to vector<1x128xf32>
    %128 = arith.addf %65, %127 : vector<1x128xf32>
    %cst_34 = arith.constant 0.000000e+00 : f32
    %129 = vector.broadcast %cst_34 : f32 to vector<16x128xf32>
    %c0_35 = arith.constant 0 : index
    %c2_36 = arith.constant 2 : index
    %c0_37 = arith.constant 0 : index
    %c0_38 = arith.constant 0 : index
    %130 = vector.load %arg2[%c0_35, %c2_36, %c0_37, %c0_38] : memref<1x8x18x128xf32, #tpu.memory_space<vmem>>, vector<1x1x18x128xf32>
    %131 = vector.shape_cast %130 : vector<1x1x18x128xf32> to vector<18x128xf32>
    %132 = vector.extract_strided_slice %131 {offsets = [0, 0], sizes = [16, 128], strides = [1, 1]} : vector<18x128xf32> to vector<16x128xf32>
    %133 = vector.extract_strided_slice %0 {offsets = [0, 0], sizes = [1, 128], strides = [1, 1]} : vector<9x128xf32> to vector<1x128xf32>
    %134 = vector.broadcast %133 : vector<1x128xf32> to vector<16x128xf32>
    %135 = arith.mulf %132, %134 : vector<16x128xf32>
    %136 = arith.addf %129, %135 : vector<16x128xf32>
    %137 = vector.extract_strided_slice %131 {offsets = [1, 0], sizes = [16, 128], strides = [1, 1]} : vector<18x128xf32> to vector<16x128xf32>
    %138 = vector.extract_strided_slice %0 {offsets = [1, 0], sizes = [1, 128], strides = [1, 1]} : vector<9x128xf32> to vector<1x128xf32>
    %139 = vector.broadcast %138 : vector<1x128xf32> to vector<16x128xf32>
    %140 = arith.mulf %137, %139 : vector<16x128xf32>
    %141 = arith.addf %136, %140 : vector<16x128xf32>
    %142 = vector.extract_strided_slice %131 {offsets = [2, 0], sizes = [16, 128], strides = [1, 1]} : vector<18x128xf32> to vector<16x128xf32>
    %143 = vector.extract_strided_slice %0 {offsets = [2, 0], sizes = [1, 128], strides = [1, 1]} : vector<9x128xf32> to vector<1x128xf32>
    %144 = vector.broadcast %143 : vector<1x128xf32> to vector<16x128xf32>
    %145 = arith.mulf %142, %144 : vector<16x128xf32>
    %146 = arith.addf %141, %145 : vector<16x128xf32>
    %c0_39 = arith.constant 0 : index
    %c3_40 = arith.constant 3 : index
    %c0_41 = arith.constant 0 : index
    %c0_42 = arith.constant 0 : index
    %147 = vector.load %arg2[%c0_39, %c3_40, %c0_41, %c0_42] : memref<1x8x18x128xf32, #tpu.memory_space<vmem>>, vector<1x1x18x128xf32>
    %148 = vector.shape_cast %147 : vector<1x1x18x128xf32> to vector<18x128xf32>
    %149 = vector.extract_strided_slice %148 {offsets = [0, 0], sizes = [16, 128], strides = [1, 1]} : vector<18x128xf32> to vector<16x128xf32>
    %150 = vector.extract_strided_slice %0 {offsets = [3, 0], sizes = [1, 128], strides = [1, 1]} : vector<9x128xf32> to vector<1x128xf32>
    %151 = vector.broadcast %150 : vector<1x128xf32> to vector<16x128xf32>
    %152 = arith.mulf %149, %151 : vector<16x128xf32>
    %153 = arith.addf %146, %152 : vector<16x128xf32>
    %154 = vector.extract_strided_slice %148 {offsets = [1, 0], sizes = [16, 128], strides = [1, 1]} : vector<18x128xf32> to vector<16x128xf32>
    %155 = vector.extract_strided_slice %0 {offsets = [4, 0], sizes = [1, 128], strides = [1, 1]} : vector<9x128xf32> to vector<1x128xf32>
    %156 = vector.broadcast %155 : vector<1x128xf32> to vector<16x128xf32>
    %157 = arith.mulf %154, %156 : vector<16x128xf32>
    %158 = arith.addf %153, %157 : vector<16x128xf32>
    %159 = vector.extract_strided_slice %148 {offsets = [2, 0], sizes = [16, 128], strides = [1, 1]} : vector<18x128xf32> to vector<16x128xf32>
    %160 = vector.extract_strided_slice %0 {offsets = [5, 0], sizes = [1, 128], strides = [1, 1]} : vector<9x128xf32> to vector<1x128xf32>
    %161 = vector.broadcast %160 : vector<1x128xf32> to vector<16x128xf32>
    %162 = arith.mulf %159, %161 : vector<16x128xf32>
    %163 = arith.addf %158, %162 : vector<16x128xf32>
    %c0_43 = arith.constant 0 : index
    %c4 = arith.constant 4 : index
    %c0_44 = arith.constant 0 : index
    %c0_45 = arith.constant 0 : index
    %164 = vector.load %arg2[%c0_43, %c4, %c0_44, %c0_45] : memref<1x8x18x128xf32, #tpu.memory_space<vmem>>, vector<1x1x18x128xf32>
    %165 = vector.shape_cast %164 : vector<1x1x18x128xf32> to vector<18x128xf32>
    %166 = vector.extract_strided_slice %165 {offsets = [0, 0], sizes = [16, 128], strides = [1, 1]} : vector<18x128xf32> to vector<16x128xf32>
    %167 = vector.extract_strided_slice %0 {offsets = [6, 0], sizes = [1, 128], strides = [1, 1]} : vector<9x128xf32> to vector<1x128xf32>
    %168 = vector.broadcast %167 : vector<1x128xf32> to vector<16x128xf32>
    %169 = arith.mulf %166, %168 : vector<16x128xf32>
    %170 = arith.addf %163, %169 : vector<16x128xf32>
    %171 = vector.extract_strided_slice %165 {offsets = [1, 0], sizes = [16, 128], strides = [1, 1]} : vector<18x128xf32> to vector<16x128xf32>
    %172 = vector.extract_strided_slice %0 {offsets = [7, 0], sizes = [1, 128], strides = [1, 1]} : vector<9x128xf32> to vector<1x128xf32>
    %173 = vector.broadcast %172 : vector<1x128xf32> to vector<16x128xf32>
    %174 = arith.mulf %171, %173 : vector<16x128xf32>
    %175 = arith.addf %170, %174 : vector<16x128xf32>
    %176 = vector.extract_strided_slice %165 {offsets = [2, 0], sizes = [16, 128], strides = [1, 1]} : vector<18x128xf32> to vector<16x128xf32>
    %177 = vector.extract_strided_slice %0 {offsets = [8, 0], sizes = [1, 128], strides = [1, 1]} : vector<9x128xf32> to vector<1x128xf32>
    %178 = vector.broadcast %177 : vector<1x128xf32> to vector<16x128xf32>
    %179 = arith.mulf %176, %178 : vector<16x128xf32>
    %180 = arith.addf %175, %179 : vector<16x128xf32>
    %181 = arith.truncf %180 : vector<16x128xf32> to vector<16x128xbf16>
    %c0_46 = arith.constant 0 : index
    %c32 = arith.constant 32 : index
    %c0_47 = arith.constant 0 : index
    %182 = vector.load %arg5[%c0_46, %c32, %c0_47] : memref<1x128x128xbf16, #tpu.memory_space<vmem>>, vector<1x16x128xbf16>
    %183 = vector.shape_cast %182 : vector<1x16x128xbf16> to vector<16x128xbf16>
    %184 = vector.shape_cast %181 : vector<16x128xbf16> to vector<1x16x128xbf16>
    tpu.vector_store %arg5[%c0_46, %c32, %c0_47], %184 {strides = array<i32>} : memref<1x128x128xbf16, #tpu.memory_space<vmem>>, vector<1x16x128xbf16>,
    %cst_48 = arith.constant dense<0.000000e+00> : vector<128xf32>
    %185 = vector.multi_reduction <add>, %180, %cst_48 [0] : vector<16x128xf32> to vector<128xf32>
    %186 = vector.shape_cast %185 : vector<128xf32> to vector<1x128xf32>
    %187 = arith.addf %124, %186 : vector<1x128xf32>
    %188 = arith.mulf %180, %180 : vector<16x128xf32>
    %cst_49 = arith.constant dense<0.000000e+00> : vector<128xf32>
    %189 = vector.multi_reduction <add>, %188, %cst_49 [0] : vector<16x128xf32> to vector<128xf32>
    %190 = vector.shape_cast %189 : vector<128xf32> to vector<1x128xf32>
    %191 = arith.addf %128, %190 : vector<1x128xf32>
    %cst_50 = arith.constant 0.000000e+00 : f32
    %192 = vector.broadcast %cst_50 : f32 to vector<16x128xf32>
    %c0_51 = arith.constant 0 : index
    %c3_52 = arith.constant 3 : index
    %c0_53 = arith.constant 0 : index
    %c0_54 = arith.constant 0 : index
    %193 = vector.load %arg2[%c0_51, %c3_52, %c0_53, %c0_54] : memref<1x8x18x128xf32, #tpu.memory_space<vmem>>, vector<1x1x18x128xf32>
    %194 = vector.shape_cast %193 : vector<1x1x18x128xf32> to vector<18x128xf32>
    %195 = vector.extract_strided_slice %194 {offsets = [0, 0], sizes = [16, 128], strides = [1, 1]} : vector<18x128xf32> to vector<16x128xf32>
    %196 = vector.extract_strided_slice %0 {offsets = [0, 0], sizes = [1, 128], strides = [1, 1]} : vector<9x128xf32> to vector<1x128xf32>
    %197 = vector.broadcast %196 : vector<1x128xf32> to vector<16x128xf32>
    %198 = arith.mulf %195, %197 : vector<16x128xf32>
    %199 = arith.addf %192, %198 : vector<16x128xf32>
    %200 = vector.extract_strided_slice %194 {offsets = [1, 0], sizes = [16, 128], strides = [1, 1]} : vector<18x128xf32> to vector<16x128xf32>
    %201 = vector.extract_strided_slice %0 {offsets = [1, 0], sizes = [1, 128], strides = [1, 1]} : vector<9x128xf32> to vector<1x128xf32>
    %202 = vector.broadcast %201 : vector<1x128xf32> to vector<16x128xf32>
    %203 = arith.mulf %200, %202 : vector<16x128xf32>
    %204 = arith.addf %199, %203 : vector<16x128xf32>
    %205 = vector.extract_strided_slice %194 {offsets = [2, 0], sizes = [16, 128], strides = [1, 1]} : vector<18x128xf32> to vector<16x128xf32>
    %206 = vector.extract_strided_slice %0 {offsets = [2, 0], sizes = [1, 128], strides = [1, 1]} : vector<9x128xf32> to vector<1x128xf32>
    %207 = vector.broadcast %206 : vector<1x128xf32> to vector<16x128xf32>
    %208 = arith.mulf %205, %207 : vector<16x128xf32>
    %209 = arith.addf %204, %208 : vector<16x128xf32>
    %c0_55 = arith.constant 0 : index
    %c4_56 = arith.constant 4 : index
    %c0_57 = arith.constant 0 : index
    %c0_58 = arith.constant 0 : index
    %210 = vector.load %arg2[%c0_55, %c4_56, %c0_57, %c0_58] : memref<1x8x18x128xf32, #tpu.memory_space<vmem>>, vector<1x1x18x128xf32>
    %211 = vector.shape_cast %210 : vector<1x1x18x128xf32> to vector<18x128xf32>
    %212 = vector.extract_strided_slice %211 {offsets = [0, 0], sizes = [16, 128], strides = [1, 1]} : vector<18x128xf32> to vector<16x128xf32>
    %213 = vector.extract_strided_slice %0 {offsets = [3, 0], sizes = [1, 128], strides = [1, 1]} : vector<9x128xf32> to vector<1x128xf32>
    %214 = vector.broadcast %213 : vector<1x128xf32> to vector<16x128xf32>
    %215 = arith.mulf %212, %214 : vector<16x128xf32>
    %216 = arith.addf %209, %215 : vector<16x128xf32>
    %217 = vector.extract_strided_slice %211 {offsets = [1, 0], sizes = [16, 128], strides = [1, 1]} : vector<18x128xf32> to vector<16x128xf32>
    %218 = vector.extract_strided_slice %0 {offsets = [4, 0], sizes = [1, 128], strides = [1, 1]} : vector<9x128xf32> to vector<1x128xf32>
    %219 = vector.broadcast %218 : vector<1x128xf32> to vector<16x128xf32>
    %220 = arith.mulf %217, %219 : vector<16x128xf32>
    %221 = arith.addf %216, %220 : vector<16x128xf32>
    %222 = vector.extract_strided_slice %211 {offsets = [2, 0], sizes = [16, 128], strides = [1, 1]} : vector<18x128xf32> to vector<16x128xf32>
    %223 = vector.extract_strided_slice %0 {offsets = [5, 0], sizes = [1, 128], strides = [1, 1]} : vector<9x128xf32> to vector<1x128xf32>
    %224 = vector.broadcast %223 : vector<1x128xf32> to vector<16x128xf32>
    %225 = arith.mulf %222, %224 : vector<16x128xf32>
    %226 = arith.addf %221, %225 : vector<16x128xf32>
    %c0_59 = arith.constant 0 : index
    %c5 = arith.constant 5 : index
    %c0_60 = arith.constant 0 : index
    %c0_61 = arith.constant 0 : index
    %227 = vector.load %arg2[%c0_59, %c5, %c0_60, %c0_61] : memref<1x8x18x128xf32, #tpu.memory_space<vmem>>, vector<1x1x18x128xf32>
    %228 = vector.shape_cast %227 : vector<1x1x18x128xf32> to vector<18x128xf32>
    %229 = vector.extract_strided_slice %228 {offsets = [0, 0], sizes = [16, 128], strides = [1, 1]} : vector<18x128xf32> to vector<16x128xf32>
    %230 = vector.extract_strided_slice %0 {offsets = [6, 0], sizes = [1, 128], strides = [1, 1]} : vector<9x128xf32> to vector<1x128xf32>
    %231 = vector.broadcast %230 : vector<1x128xf32> to vector<16x128xf32>
    %232 = arith.mulf %229, %231 : vector<16x128xf32>
    %233 = arith.addf %226, %232 : vector<16x128xf32>
    %234 = vector.extract_strided_slice %228 {offsets = [1, 0], sizes = [16, 128], strides = [1, 1]} : vector<18x128xf32> to vector<16x128xf32>
    %235 = vector.extract_strided_slice %0 {offsets = [7, 0], sizes = [1, 128], strides = [1, 1]} : vector<9x128xf32> to vector<1x128xf32>
    %236 = vector.broadcast %235 : vector<1x128xf32> to vector<16x128xf32>
    %237 = arith.mulf %234, %236 : vector<16x128xf32>
    %238 = arith.addf %233, %237 : vector<16x128xf32>
    %239 = vector.extract_strided_slice %228 {offsets = [2, 0], sizes = [16, 128], strides = [1, 1]} : vector<18x128xf32> to vector<16x128xf32>
    %240 = vector.extract_strided_slice %0 {offsets = [8, 0], sizes = [1, 128], strides = [1, 1]} : vector<9x128xf32> to vector<1x128xf32>
    %241 = vector.broadcast %240 : vector<1x128xf32> to vector<16x128xf32>
    %242 = arith.mulf %239, %241 : vector<16x128xf32>
    %243 = arith.addf %238, %242 : vector<16x128xf32>
    %244 = arith.truncf %243 : vector<16x128xf32> to vector<16x128xbf16>
    %c0_62 = arith.constant 0 : index
    %c48 = arith.constant 48 : index
    %c0_63 = arith.constant 0 : index
    %245 = vector.load %arg5[%c0_62, %c48, %c0_63] : memref<1x128x128xbf16, #tpu.memory_space<vmem>>, vector<1x16x128xbf16>
    %246 = vector.shape_cast %245 : vector<1x16x128xbf16> to vector<16x128xbf16>
    %247 = vector.shape_cast %244 : vector<16x128xbf16> to vector<1x16x128xbf16>
    tpu.vector_store %arg5[%c0_62, %c48, %c0_63], %247 {strides = array<i32>} : memref<1x128x128xbf16, #tpu.memory_space<vmem>>, vector<1x16x128xbf16>,
    %cst_64 = arith.constant dense<0.000000e+00> : vector<128xf32>
    %248 = vector.multi_reduction <add>, %243, %cst_64 [0] : vector<16x128xf32> to vector<128xf32>
    %249 = vector.shape_cast %248 : vector<128xf32> to vector<1x128xf32>
    %250 = arith.addf %187, %249 : vector<1x128xf32>
    %251 = arith.mulf %243, %243 : vector<16x128xf32>
    %cst_65 = arith.constant dense<0.000000e+00> : vector<128xf32>
    %252 = vector.multi_reduction <add>, %251, %cst_65 [0] : vector<16x128xf32> to vector<128xf32>
    %253 = vector.shape_cast %252 : vector<128xf32> to vector<1x128xf32>
    %254 = arith.addf %191, %253 : vector<1x128xf32>
    %cst_66 = arith.constant 0.000000e+00 : f32
    %255 = vector.broadcast %cst_66 : f32 to vector<16x128xf32>
    %c0_67 = arith.constant 0 : index
    %c4_68 = arith.constant 4 : index
    %c0_69 = arith.constant 0 : index
    %c0_70 = arith.constant 0 : index
    %256 = vector.load %arg2[%c0_67, %c4_68, %c0_69, %c0_70] : memref<1x8x18x128xf32, #tpu.memory_space<vmem>>, vector<1x1x18x128xf32>
    %257 = vector.shape_cast %256 : vector<1x1x18x128xf32> to vector<18x128xf32>
    %258 = vector.extract_strided_slice %257 {offsets = [0, 0], sizes = [16, 128], strides = [1, 1]} : vector<18x128xf32> to vector<16x128xf32>
    %259 = vector.extract_strided_slice %0 {offsets = [0, 0], sizes = [1, 128], strides = [1, 1]} : vector<9x128xf32> to vector<1x128xf32>
    %260 = vector.broadcast %259 : vector<1x128xf32> to vector<16x128xf32>
    %261 = arith.mulf %258, %260 : vector<16x128xf32>
    %262 = arith.addf %255, %261 : vector<16x128xf32>
    %263 = vector.extract_strided_slice %257 {offsets = [1, 0], sizes = [16, 128], strides = [1, 1]} : vector<18x128xf32> to vector<16x128xf32>
    %264 = vector.extract_strided_slice %0 {offsets = [1, 0], sizes = [1, 128], strides = [1, 1]} : vector<9x128xf32> to vector<1x128xf32>
    %265 = vector.broadcast %264 : vector<1x128xf32> to vector<16x128xf32>
    %266 = arith.mulf %263, %265 : vector<16x128xf32>
    %267 = arith.addf %262, %266 : vector<16x128xf32>
    %268 = vector.extract_strided_slice %257 {offsets = [2, 0], sizes = [16, 128], strides = [1, 1]} : vector<18x128xf32> to vector<16x128xf32>
    %269 = vector.extract_strided_slice %0 {offsets = [2, 0], sizes = [1, 128], strides = [1, 1]} : vector<9x128xf32> to vector<1x128xf32>
    %270 = vector.broadcast %269 : vector<1x128xf32> to vector<16x128xf32>
    %271 = arith.mulf %268, %270 : vector<16x128xf32>
    %272 = arith.addf %267, %271 : vector<16x128xf32>
    %c0_71 = arith.constant 0 : index
    %c5_72 = arith.constant 5 : index
    %c0_73 = arith.constant 0 : index
    %c0_74 = arith.constant 0 : index
    %273 = vector.load %arg2[%c0_71, %c5_72, %c0_73, %c0_74] : memref<1x8x18x128xf32, #tpu.memory_space<vmem>>, vector<1x1x18x128xf32>
    %274 = vector.shape_cast %273 : vector<1x1x18x128xf32> to vector<18x128xf32>
    %275 = vector.extract_strided_slice %274 {offsets = [0, 0], sizes = [16, 128], strides = [1, 1]} : vector<18x128xf32> to vector<16x128xf32>
    %276 = vector.extract_strided_slice %0 {offsets = [3, 0], sizes = [1, 128], strides = [1, 1]} : vector<9x128xf32> to vector<1x128xf32>
    %277 = vector.broadcast %276 : vector<1x128xf32> to vector<16x128xf32>
    %278 = arith.mulf %275, %277 : vector<16x128xf32>
    %279 = arith.addf %272, %278 : vector<16x128xf32>
    %280 = vector.extract_strided_slice %274 {offsets = [1, 0], sizes = [16, 128], strides = [1, 1]} : vector<18x128xf32> to vector<16x128xf32>
    %281 = vector.extract_strided_slice %0 {offsets = [4, 0], sizes = [1, 128], strides = [1, 1]} : vector<9x128xf32> to vector<1x128xf32>
    %282 = vector.broadcast %281 : vector<1x128xf32> to vector<16x128xf32>
    %283 = arith.mulf %280, %282 : vector<16x128xf32>
    %284 = arith.addf %279, %283 : vector<16x128xf32>
    %285 = vector.extract_strided_slice %274 {offsets = [2, 0], sizes = [16, 128], strides = [1, 1]} : vector<18x128xf32> to vector<16x128xf32>
    %286 = vector.extract_strided_slice %0 {offsets = [5, 0], sizes = [1, 128], strides = [1, 1]} : vector<9x128xf32> to vector<1x128xf32>
    %287 = vector.broadcast %286 : vector<1x128xf32> to vector<16x128xf32>
    %288 = arith.mulf %285, %287 : vector<16x128xf32>
    %289 = arith.addf %284, %288 : vector<16x128xf32>
    %c0_75 = arith.constant 0 : index
    %c6 = arith.constant 6 : index
    %c0_76 = arith.constant 0 : index
    %c0_77 = arith.constant 0 : index
    %290 = vector.load %arg2[%c0_75, %c6, %c0_76, %c0_77] : memref<1x8x18x128xf32, #tpu.memory_space<vmem>>, vector<1x1x18x128xf32>
    %291 = vector.shape_cast %290 : vector<1x1x18x128xf32> to vector<18x128xf32>
    %292 = vector.extract_strided_slice %291 {offsets = [0, 0], sizes = [16, 128], strides = [1, 1]} : vector<18x128xf32> to vector<16x128xf32>
    %293 = vector.extract_strided_slice %0 {offsets = [6, 0], sizes = [1, 128], strides = [1, 1]} : vector<9x128xf32> to vector<1x128xf32>
    %294 = vector.broadcast %293 : vector<1x128xf32> to vector<16x128xf32>
    %295 = arith.mulf %292, %294 : vector<16x128xf32>
    %296 = arith.addf %289, %295 : vector<16x128xf32>
    %297 = vector.extract_strided_slice %291 {offsets = [1, 0], sizes = [16, 128], strides = [1, 1]} : vector<18x128xf32> to vector<16x128xf32>
    %298 = vector.extract_strided_slice %0 {offsets = [7, 0], sizes = [1, 128], strides = [1, 1]} : vector<9x128xf32> to vector<1x128xf32>
    %299 = vector.broadcast %298 : vector<1x128xf32> to vector<16x128xf32>
    %300 = arith.mulf %297, %299 : vector<16x128xf32>
    %301 = arith.addf %296, %300 : vector<16x128xf32>
    %302 = vector.extract_strided_slice %291 {offsets = [2, 0], sizes = [16, 128], strides = [1, 1]} : vector<18x128xf32> to vector<16x128xf32>
    %303 = vector.extract_strided_slice %0 {offsets = [8, 0], sizes = [1, 128], strides = [1, 1]} : vector<9x128xf32> to vector<1x128xf32>
    %304 = vector.broadcast %303 : vector<1x128xf32> to vector<16x128xf32>
    %305 = arith.mulf %302, %304 : vector<16x128xf32>
    %306 = arith.addf %301, %305 : vector<16x128xf32>
    %307 = arith.truncf %306 : vector<16x128xf32> to vector<16x128xbf16>
    %c0_78 = arith.constant 0 : index
    %c64 = arith.constant 64 : index
    %c0_79 = arith.constant 0 : index
    %308 = vector.load %arg5[%c0_78, %c64, %c0_79] : memref<1x128x128xbf16, #tpu.memory_space<vmem>>, vector<1x16x128xbf16>
    %309 = vector.shape_cast %308 : vector<1x16x128xbf16> to vector<16x128xbf16>
    %310 = vector.shape_cast %307 : vector<16x128xbf16> to vector<1x16x128xbf16>
    tpu.vector_store %arg5[%c0_78, %c64, %c0_79], %310 {strides = array<i32>} : memref<1x128x128xbf16, #tpu.memory_space<vmem>>, vector<1x16x128xbf16>,
    %cst_80 = arith.constant dense<0.000000e+00> : vector<128xf32>
    %311 = vector.multi_reduction <add>, %306, %cst_80 [0] : vector<16x128xf32> to vector<128xf32>
    %312 = vector.shape_cast %311 : vector<128xf32> to vector<1x128xf32>
    %313 = arith.addf %250, %312 : vector<1x128xf32>
    %314 = arith.mulf %306, %306 : vector<16x128xf32>
    %cst_81 = arith.constant dense<0.000000e+00> : vector<128xf32>
    %315 = vector.multi_reduction <add>, %314, %cst_81 [0] : vector<16x128xf32> to vector<128xf32>
    %316 = vector.shape_cast %315 : vector<128xf32> to vector<1x128xf32>
    %317 = arith.addf %254, %316 : vector<1x128xf32>
    %cst_82 = arith.constant 0.000000e+00 : f32
    %318 = vector.broadcast %cst_82 : f32 to vector<16x128xf32>
    %c0_83 = arith.constant 0 : index
    %c5_84 = arith.constant 5 : index
    %c0_85 = arith.constant 0 : index
    %c0_86 = arith.constant 0 : index
    %319 = vector.load %arg2[%c0_83, %c5_84, %c0_85, %c0_86] : memref<1x8x18x128xf32, #tpu.memory_space<vmem>>, vector<1x1x18x128xf32>
    %320 = vector.shape_cast %319 : vector<1x1x18x128xf32> to vector<18x128xf32>
    %321 = vector.extract_strided_slice %320 {offsets = [0, 0], sizes = [16, 128], strides = [1, 1]} : vector<18x128xf32> to vector<16x128xf32>
    %322 = vector.extract_strided_slice %0 {offsets = [0, 0], sizes = [1, 128], strides = [1, 1]} : vector<9x128xf32> to vector<1x128xf32>
    %323 = vector.broadcast %322 : vector<1x128xf32> to vector<16x128xf32>
    %324 = arith.mulf %321, %323 : vector<16x128xf32>
    %325 = arith.addf %318, %324 : vector<16x128xf32>
    %326 = vector.extract_strided_slice %320 {offsets = [1, 0], sizes = [16, 128], strides = [1, 1]} : vector<18x128xf32> to vector<16x128xf32>
    %327 = vector.extract_strided_slice %0 {offsets = [1, 0], sizes = [1, 128], strides = [1, 1]} : vector<9x128xf32> to vector<1x128xf32>
    %328 = vector.broadcast %327 : vector<1x128xf32> to vector<16x128xf32>
    %329 = arith.mulf %326, %328 : vector<16x128xf32>
    %330 = arith.addf %325, %329 : vector<16x128xf32>
    %331 = vector.extract_strided_slice %320 {offsets = [2, 0], sizes = [16, 128], strides = [1, 1]} : vector<18x128xf32> to vector<16x128xf32>
    %332 = vector.extract_strided_slice %0 {offsets = [2, 0], sizes = [1, 128], strides = [1, 1]} : vector<9x128xf32> to vector<1x128xf32>
    %333 = vector.broadcast %332 : vector<1x128xf32> to vector<16x128xf32>
    %334 = arith.mulf %331, %333 : vector<16x128xf32>
    %335 = arith.addf %330, %334 : vector<16x128xf32>
    %c0_87 = arith.constant 0 : index
    %c6_88 = arith.constant 6 : index
    %c0_89 = arith.constant 0 : index
    %c0_90 = arith.constant 0 : index
    %336 = vector.load %arg2[%c0_87, %c6_88, %c0_89, %c0_90] : memref<1x8x18x128xf32, #tpu.memory_space<vmem>>, vector<1x1x18x128xf32>
    %337 = vector.shape_cast %336 : vector<1x1x18x128xf32> to vector<18x128xf32>
    %338 = vector.extract_strided_slice %337 {offsets = [0, 0], sizes = [16, 128], strides = [1, 1]} : vector<18x128xf32> to vector<16x128xf32>
    %339 = vector.extract_strided_slice %0 {offsets = [3, 0], sizes = [1, 128], strides = [1, 1]} : vector<9x128xf32> to vector<1x128xf32>
    %340 = vector.broadcast %339 : vector<1x128xf32> to vector<16x128xf32>
    %341 = arith.mulf %338, %340 : vector<16x128xf32>
    %342 = arith.addf %335, %341 : vector<16x128xf32>
    %343 = vector.extract_strided_slice %337 {offsets = [1, 0], sizes = [16, 128], strides = [1, 1]} : vector<18x128xf32> to vector<16x128xf32>
    %344 = vector.extract_strided_slice %0 {offsets = [4, 0], sizes = [1, 128], strides = [1, 1]} : vector<9x128xf32> to vector<1x128xf32>
    %345 = vector.broadcast %344 : vector<1x128xf32> to vector<16x128xf32>
    %346 = arith.mulf %343, %345 : vector<16x128xf32>
    %347 = arith.addf %342, %346 : vector<16x128xf32>
    %348 = vector.extract_strided_slice %337 {offsets = [2, 0], sizes = [16, 128], strides = [1, 1]} : vector<18x128xf32> to vector<16x128xf32>
    %349 = vector.extract_strided_slice %0 {offsets = [5, 0], sizes = [1, 128], strides = [1, 1]} : vector<9x128xf32> to vector<1x128xf32>
    %350 = vector.broadcast %349 : vector<1x128xf32> to vector<16x128xf32>
    %351 = arith.mulf %348, %350 : vector<16x128xf32>
    %352 = arith.addf %347, %351 : vector<16x128xf32>
    %c0_91 = arith.constant 0 : index
    %c7 = arith.constant 7 : index
    %c0_92 = arith.constant 0 : index
    %c0_93 = arith.constant 0 : index
    %353 = vector.load %arg2[%c0_91, %c7, %c0_92, %c0_93] : memref<1x8x18x128xf32, #tpu.memory_space<vmem>>, vector<1x1x18x128xf32>
    %354 = vector.shape_cast %353 : vector<1x1x18x128xf32> to vector<18x128xf32>
    %355 = vector.extract_strided_slice %354 {offsets = [0, 0], sizes = [16, 128], strides = [1, 1]} : vector<18x128xf32> to vector<16x128xf32>
    %356 = vector.extract_strided_slice %0 {offsets = [6, 0], sizes = [1, 128], strides = [1, 1]} : vector<9x128xf32> to vector<1x128xf32>
    %357 = vector.broadcast %356 : vector<1x128xf32> to vector<16x128xf32>
    %358 = arith.mulf %355, %357 : vector<16x128xf32>
    %359 = arith.addf %352, %358 : vector<16x128xf32>
    %360 = vector.extract_strided_slice %354 {offsets = [1, 0], sizes = [16, 128], strides = [1, 1]} : vector<18x128xf32> to vector<16x128xf32>
    %361 = vector.extract_strided_slice %0 {offsets = [7, 0], sizes = [1, 128], strides = [1, 1]} : vector<9x128xf32> to vector<1x128xf32>
    %362 = vector.broadcast %361 : vector<1x128xf32> to vector<16x128xf32>
    %363 = arith.mulf %360, %362 : vector<16x128xf32>
    %364 = arith.addf %359, %363 : vector<16x128xf32>
    %365 = vector.extract_strided_slice %354 {offsets = [2, 0], sizes = [16, 128], strides = [1, 1]} : vector<18x128xf32> to vector<16x128xf32>
    %366 = vector.extract_strided_slice %0 {offsets = [8, 0], sizes = [1, 128], strides = [1, 1]} : vector<9x128xf32> to vector<1x128xf32>
    %367 = vector.broadcast %366 : vector<1x128xf32> to vector<16x128xf32>
    %368 = arith.mulf %365, %367 : vector<16x128xf32>
    %369 = arith.addf %364, %368 : vector<16x128xf32>
    %370 = arith.truncf %369 : vector<16x128xf32> to vector<16x128xbf16>
    %c0_94 = arith.constant 0 : index
    %c80 = arith.constant 80 : index
    %c0_95 = arith.constant 0 : index
    %371 = vector.load %arg5[%c0_94, %c80, %c0_95] : memref<1x128x128xbf16, #tpu.memory_space<vmem>>, vector<1x16x128xbf16>
    %372 = vector.shape_cast %371 : vector<1x16x128xbf16> to vector<16x128xbf16>
    %373 = vector.shape_cast %370 : vector<16x128xbf16> to vector<1x16x128xbf16>
    tpu.vector_store %arg5[%c0_94, %c80, %c0_95], %373 {strides = array<i32>} : memref<1x128x128xbf16, #tpu.memory_space<vmem>>, vector<1x16x128xbf16>,
    %cst_96 = arith.constant dense<0.000000e+00> : vector<128xf32>
    %374 = vector.multi_reduction <add>, %369, %cst_96 [0] : vector<16x128xf32> to vector<128xf32>
    %375 = vector.shape_cast %374 : vector<128xf32> to vector<1x128xf32>
    %376 = arith.addf %313, %375 : vector<1x128xf32>
    %377 = arith.mulf %369, %369 : vector<16x128xf32>
    %cst_97 = arith.constant dense<0.000000e+00> : vector<128xf32>
    %378 = vector.multi_reduction <add>, %377, %cst_97 [0] : vector<16x128xf32> to vector<128xf32>
    %379 = vector.shape_cast %378 : vector<128xf32> to vector<1x128xf32>
    %380 = arith.addf %317, %379 : vector<1x128xf32>
    %cst_98 = arith.constant 0.000000e+00 : f32
    %381 = vector.broadcast %cst_98 : f32 to vector<16x128xf32>
    %c0_99 = arith.constant 0 : index
    %c6_100 = arith.constant 6 : index
    %c0_101 = arith.constant 0 : index
    %c0_102 = arith.constant 0 : index
    %382 = vector.load %arg2[%c0_99, %c6_100, %c0_101, %c0_102] : memref<1x8x18x128xf32, #tpu.memory_space<vmem>>, vector<1x1x18x128xf32>
    %383 = vector.shape_cast %382 : vector<1x1x18x128xf32> to vector<18x128xf32>
    %384 = vector.extract_strided_slice %383 {offsets = [0, 0], sizes = [16, 128], strides = [1, 1]} : vector<18x128xf32> to vector<16x128xf32>
    %385 = vector.extract_strided_slice %0 {offsets = [0, 0], sizes = [1, 128], strides = [1, 1]} : vector<9x128xf32> to vector<1x128xf32>
    %386 = vector.broadcast %385 : vector<1x128xf32> to vector<16x128xf32>
    %387 = arith.mulf %384, %386 : vector<16x128xf32>
    %388 = arith.addf %381, %387 : vector<16x128xf32>
    %389 = vector.extract_strided_slice %383 {offsets = [1, 0], sizes = [16, 128], strides = [1, 1]} : vector<18x128xf32> to vector<16x128xf32>
    %390 = vector.extract_strided_slice %0 {offsets = [1, 0], sizes = [1, 128], strides = [1, 1]} : vector<9x128xf32> to vector<1x128xf32>
    %391 = vector.broadcast %390 : vector<1x128xf32> to vector<16x128xf32>
    %392 = arith.mulf %389, %391 : vector<16x128xf32>
    %393 = arith.addf %388, %392 : vector<16x128xf32>
    %394 = vector.extract_strided_slice %383 {offsets = [2, 0], sizes = [16, 128], strides = [1, 1]} : vector<18x128xf32> to vector<16x128xf32>
    %395 = vector.extract_strided_slice %0 {offsets = [2, 0], sizes = [1, 128], strides = [1, 1]} : vector<9x128xf32> to vector<1x128xf32>
    %396 = vector.broadcast %395 : vector<1x128xf32> to vector<16x128xf32>
    %397 = arith.mulf %394, %396 : vector<16x128xf32>
    %398 = arith.addf %393, %397 : vector<16x128xf32>
    %c0_103 = arith.constant 0 : index
    %c7_104 = arith.constant 7 : index
    %c0_105 = arith.constant 0 : index
    %c0_106 = arith.constant 0 : index
    %399 = vector.load %arg2[%c0_103, %c7_104, %c0_105, %c0_106] : memref<1x8x18x128xf32, #tpu.memory_space<vmem>>, vector<1x1x18x128xf32>
    %400 = vector.shape_cast %399 : vector<1x1x18x128xf32> to vector<18x128xf32>
    %401 = vector.extract_strided_slice %400 {offsets = [0, 0], sizes = [16, 128], strides = [1, 1]} : vector<18x128xf32> to vector<16x128xf32>
    %402 = vector.extract_strided_slice %0 {offsets = [3, 0], sizes = [1, 128], strides = [1, 1]} : vector<9x128xf32> to vector<1x128xf32>
    %403 = vector.broadcast %402 : vector<1x128xf32> to vector<16x128xf32>
    %404 = arith.mulf %401, %403 : vector<16x128xf32>
    %405 = arith.addf %398, %404 : vector<16x128xf32>
    %406 = vector.extract_strided_slice %400 {offsets = [1, 0], sizes = [16, 128], strides = [1, 1]} : vector<18x128xf32> to vector<16x128xf32>
    %407 = vector.extract_strided_slice %0 {offsets = [4, 0], sizes = [1, 128], strides = [1, 1]} : vector<9x128xf32> to vector<1x128xf32>
    %408 = vector.broadcast %407 : vector<1x128xf32> to vector<16x128xf32>
    %409 = arith.mulf %406, %408 : vector<16x128xf32>
    %410 = arith.addf %405, %409 : vector<16x128xf32>
    %411 = vector.extract_strided_slice %400 {offsets = [2, 0], sizes = [16, 128], strides = [1, 1]} : vector<18x128xf32> to vector<16x128xf32>
    %412 = vector.extract_strided_slice %0 {offsets = [5, 0], sizes = [1, 128], strides = [1, 1]} : vector<9x128xf32> to vector<1x128xf32>
    %413 = vector.broadcast %412 : vector<1x128xf32> to vector<16x128xf32>
    %414 = arith.mulf %411, %413 : vector<16x128xf32>
    %415 = arith.addf %410, %414 : vector<16x128xf32>
    %c0_107 = arith.constant 0 : index
    %c0_108 = arith.constant 0 : index
    %c0_109 = arith.constant 0 : index
    %c0_110 = arith.constant 0 : index
    %c0_111 = arith.constant 0 : index
    %416 = vector.load %arg3[%c0_107, %c0_108, %c0_109, %c0_110, %c0_111] : memref<1x1x2x18x128xf32, #tpu.memory_space<vmem>>, vector<1x1x1x18x128xf32>
    %417 = vector.shape_cast %416 : vector<1x1x1x18x128xf32> to vector<18x128xf32>
    %418 = vector.extract_strided_slice %417 {offsets = [0, 0], sizes = [16, 128], strides = [1, 1]} : vector<18x128xf32> to vector<16x128xf32>
    %419 = vector.extract_strided_slice %0 {offsets = [6, 0], sizes = [1, 128], strides = [1, 1]} : vector<9x128xf32> to vector<1x128xf32>
    %420 = vector.broadcast %419 : vector<1x128xf32> to vector<16x128xf32>
    %421 = arith.mulf %418, %420 : vector<16x128xf32>
    %422 = arith.addf %415, %421 : vector<16x128xf32>
    %423 = vector.extract_strided_slice %417 {offsets = [1, 0], sizes = [16, 128], strides = [1, 1]} : vector<18x128xf32> to vector<16x128xf32>
    %424 = vector.extract_strided_slice %0 {offsets = [7, 0], sizes = [1, 128], strides = [1, 1]} : vector<9x128xf32> to vector<1x128xf32>
    %425 = vector.broadcast %424 : vector<1x128xf32> to vector<16x128xf32>
    %426 = arith.mulf %423, %425 : vector<16x128xf32>
    %427 = arith.addf %422, %426 : vector<16x128xf32>
    %428 = vector.extract_strided_slice %417 {offsets = [2, 0], sizes = [16, 128], strides = [1, 1]} : vector<18x128xf32> to vector<16x128xf32>
    %429 = vector.extract_strided_slice %0 {offsets = [8, 0], sizes = [1, 128], strides = [1, 1]} : vector<9x128xf32> to vector<1x128xf32>
    %430 = vector.broadcast %429 : vector<1x128xf32> to vector<16x128xf32>
    %431 = arith.mulf %428, %430 : vector<16x128xf32>
    %432 = arith.addf %427, %431 : vector<16x128xf32>
    %433 = arith.truncf %432 : vector<16x128xf32> to vector<16x128xbf16>
    %c0_112 = arith.constant 0 : index
    %c96 = arith.constant 96 : index
    %c0_113 = arith.constant 0 : index
    %434 = vector.load %arg5[%c0_112, %c96, %c0_113] : memref<1x128x128xbf16, #tpu.memory_space<vmem>>, vector<1x16x128xbf16>
    %435 = vector.shape_cast %434 : vector<1x16x128xbf16> to vector<16x128xbf16>
    %436 = vector.shape_cast %433 : vector<16x128xbf16> to vector<1x16x128xbf16>
    tpu.vector_store %arg5[%c0_112, %c96, %c0_113], %436 {strides = array<i32>} : memref<1x128x128xbf16, #tpu.memory_space<vmem>>, vector<1x16x128xbf16>,
    %cst_114 = arith.constant dense<0.000000e+00> : vector<128xf32>
    %437 = vector.multi_reduction <add>, %432, %cst_114 [0] : vector<16x128xf32> to vector<128xf32>
    %438 = vector.shape_cast %437 : vector<128xf32> to vector<1x128xf32>
    %439 = arith.addf %376, %438 : vector<1x128xf32>
    %440 = arith.mulf %432, %432 : vector<16x128xf32>
    %cst_115 = arith.constant dense<0.000000e+00> : vector<128xf32>
    %441 = vector.multi_reduction <add>, %440, %cst_115 [0] : vector<16x128xf32> to vector<128xf32>
    %442 = vector.shape_cast %441 : vector<128xf32> to vector<1x128xf32>
    %443 = arith.addf %380, %442 : vector<1x128xf32>
    %cst_116 = arith.constant 0.000000e+00 : f32
    %444 = vector.broadcast %cst_116 : f32 to vector<16x128xf32>
    %c0_117 = arith.constant 0 : index
    %c7_118 = arith.constant 7 : index
    %c0_119 = arith.constant 0 : index
    %c0_120 = arith.constant 0 : index
    %445 = vector.load %arg2[%c0_117, %c7_118, %c0_119, %c0_120] : memref<1x8x18x128xf32, #tpu.memory_space<vmem>>, vector<1x1x18x128xf32>
    %446 = vector.shape_cast %445 : vector<1x1x18x128xf32> to vector<18x128xf32>
    %447 = vector.extract_strided_slice %446 {offsets = [0, 0], sizes = [16, 128], strides = [1, 1]} : vector<18x128xf32> to vector<16x128xf32>
    %448 = vector.extract_strided_slice %0 {offsets = [0, 0], sizes = [1, 128], strides = [1, 1]} : vector<9x128xf32> to vector<1x128xf32>
    %449 = vector.broadcast %448 : vector<1x128xf32> to vector<16x128xf32>
    %450 = arith.mulf %447, %449 : vector<16x128xf32>
    %451 = arith.addf %444, %450 : vector<16x128xf32>
    %452 = vector.extract_strided_slice %446 {offsets = [1, 0], sizes = [16, 128], strides = [1, 1]} : vector<18x128xf32> to vector<16x128xf32>
    %453 = vector.extract_strided_slice %0 {offsets = [1, 0], sizes = [1, 128], strides = [1, 1]} : vector<9x128xf32> to vector<1x128xf32>
    %454 = vector.broadcast %453 : vector<1x128xf32> to vector<16x128xf32>
    %455 = arith.mulf %452, %454 : vector<16x128xf32>
    %456 = arith.addf %451, %455 : vector<16x128xf32>
    %457 = vector.extract_strided_slice %446 {offsets = [2, 0], sizes = [16, 128], strides = [1, 1]} : vector<18x128xf32> to vector<16x128xf32>
    %458 = vector.extract_strided_slice %0 {offsets = [2, 0], sizes = [1, 128], strides = [1, 1]} : vector<9x128xf32> to vector<1x128xf32>
    %459 = vector.broadcast %458 : vector<1x128xf32> to vector<16x128xf32>
    %460 = arith.mulf %457, %459 : vector<16x128xf32>
    %461 = arith.addf %456, %460 : vector<16x128xf32>
    %c0_121 = arith.constant 0 : index
    %c0_122 = arith.constant 0 : index
    %c0_123 = arith.constant 0 : index
    %c0_124 = arith.constant 0 : index
    %c0_125 = arith.constant 0 : index
    %462 = vector.load %arg3[%c0_121, %c0_122, %c0_123, %c0_124, %c0_125] : memref<1x1x2x18x128xf32, #tpu.memory_space<vmem>>, vector<1x1x1x18x128xf32>
    %463 = vector.shape_cast %462 : vector<1x1x1x18x128xf32> to vector<18x128xf32>
    %464 = vector.extract_strided_slice %463 {offsets = [0, 0], sizes = [16, 128], strides = [1, 1]} : vector<18x128xf32> to vector<16x128xf32>
    %465 = vector.extract_strided_slice %0 {offsets = [3, 0], sizes = [1, 128], strides = [1, 1]} : vector<9x128xf32> to vector<1x128xf32>
    %466 = vector.broadcast %465 : vector<1x128xf32> to vector<16x128xf32>
    %467 = arith.mulf %464, %466 : vector<16x128xf32>
    %468 = arith.addf %461, %467 : vector<16x128xf32>
    %469 = vector.extract_strided_slice %463 {offsets = [1, 0], sizes = [16, 128], strides = [1, 1]} : vector<18x128xf32> to vector<16x128xf32>
    %470 = vector.extract_strided_slice %0 {offsets = [4, 0], sizes = [1, 128], strides = [1, 1]} : vector<9x128xf32> to vector<1x128xf32>
    %471 = vector.broadcast %470 : vector<1x128xf32> to vector<16x128xf32>
    %472 = arith.mulf %469, %471 : vector<16x128xf32>
    %473 = arith.addf %468, %472 : vector<16x128xf32>
    %474 = vector.extract_strided_slice %463 {offsets = [2, 0], sizes = [16, 128], strides = [1, 1]} : vector<18x128xf32> to vector<16x128xf32>
    %475 = vector.extract_strided_slice %0 {offsets = [5, 0], sizes = [1, 128], strides = [1, 1]} : vector<9x128xf32> to vector<1x128xf32>
    %476 = vector.broadcast %475 : vector<1x128xf32> to vector<16x128xf32>
    %477 = arith.mulf %474, %476 : vector<16x128xf32>
    %478 = arith.addf %473, %477 : vector<16x128xf32>
    %c0_126 = arith.constant 0 : index
    %c0_127 = arith.constant 0 : index
    %c1_128 = arith.constant 1 : index
    %c0_129 = arith.constant 0 : index
    %c0_130 = arith.constant 0 : index
    %479 = vector.load %arg3[%c0_126, %c0_127, %c1_128, %c0_129, %c0_130] : memref<1x1x2x18x128xf32, #tpu.memory_space<vmem>>, vector<1x1x1x18x128xf32>
    %480 = vector.shape_cast %479 : vector<1x1x1x18x128xf32> to vector<18x128xf32>
    %481 = vector.extract_strided_slice %480 {offsets = [0, 0], sizes = [16, 128], strides = [1, 1]} : vector<18x128xf32> to vector<16x128xf32>
    %482 = vector.extract_strided_slice %0 {offsets = [6, 0], sizes = [1, 128], strides = [1, 1]} : vector<9x128xf32> to vector<1x128xf32>
    %483 = vector.broadcast %482 : vector<1x128xf32> to vector<16x128xf32>
    %484 = arith.mulf %481, %483 : vector<16x128xf32>
    %485 = arith.addf %478, %484 : vector<16x128xf32>
    %486 = vector.extract_strided_slice %480 {offsets = [1, 0], sizes = [16, 128], strides = [1, 1]} : vector<18x128xf32> to vector<16x128xf32>
    %487 = vector.extract_strided_slice %0 {offsets = [7, 0], sizes = [1, 128], strides = [1, 1]} : vector<9x128xf32> to vector<1x128xf32>
    %488 = vector.broadcast %487 : vector<1x128xf32> to vector<16x128xf32>
    %489 = arith.mulf %486, %488 : vector<16x128xf32>
    %490 = arith.addf %485, %489 : vector<16x128xf32>
    %491 = vector.extract_strided_slice %480 {offsets = [2, 0], sizes = [16, 128], strides = [1, 1]} : vector<18x128xf32> to vector<16x128xf32>
    %492 = vector.extract_strided_slice %0 {offsets = [8, 0], sizes = [1, 128], strides = [1, 1]} : vector<9x128xf32> to vector<1x128xf32>
    %493 = vector.broadcast %492 : vector<1x128xf32> to vector<16x128xf32>
    %494 = arith.mulf %491, %493 : vector<16x128xf32>
    %495 = arith.addf %490, %494 : vector<16x128xf32>
    %496 = arith.truncf %495 : vector<16x128xf32> to vector<16x128xbf16>
    %c0_131 = arith.constant 0 : index
    %c112 = arith.constant 112 : index
    %c0_132 = arith.constant 0 : index
    %497 = vector.load %arg5[%c0_131, %c112, %c0_132] : memref<1x128x128xbf16, #tpu.memory_space<vmem>>, vector<1x16x128xbf16>
    %498 = vector.shape_cast %497 : vector<1x16x128xbf16> to vector<16x128xbf16>
    %499 = vector.shape_cast %496 : vector<16x128xbf16> to vector<1x16x128xbf16>
    tpu.vector_store %arg5[%c0_131, %c112, %c0_132], %499 {strides = array<i32>} : memref<1x128x128xbf16, #tpu.memory_space<vmem>>, vector<1x16x128xbf16>,
    %cst_133 = arith.constant dense<0.000000e+00> : vector<128xf32>
    %500 = vector.multi_reduction <add>, %495, %cst_133 [0] : vector<16x128xf32> to vector<128xf32>
    %501 = vector.shape_cast %500 : vector<128xf32> to vector<1x128xf32>
    %502 = arith.addf %439, %501 : vector<1x128xf32>
    %503 = arith.mulf %495, %495 : vector<16x128xf32>
    %cst_134 = arith.constant dense<0.000000e+00> : vector<128xf32>
    %504 = vector.multi_reduction <add>, %503, %cst_134 [0] : vector<16x128xf32> to vector<128xf32>
    %505 = vector.shape_cast %504 : vector<128xf32> to vector<1x128xf32>
    %506 = arith.addf %443, %505 : vector<1x128xf32>
    %c0_135 = arith.constant 0 : index
    %c0_136 = arith.constant 0 : index
    %c0_137 = arith.constant 0 : index
    %c0_138 = arith.constant 0 : index
    %507 = vector.load %arg6[%c0_135, %c0_136, %c0_137, %c0_138] : memref<1x1x1x128xf32, #tpu.memory_space<vmem>>, vector<1x1x1x128xf32>
    %508 = vector.shape_cast %507 : vector<1x1x1x128xf32> to vector<1x128xf32>
    %509 = vector.shape_cast %502 : vector<1x128xf32> to vector<1x1x1x128xf32>
    tpu.vector_store %arg6[%c0_135, %c0_136, %c0_137, %c0_138], %509 {strides = array<i32>} : memref<1x1x1x128xf32, #tpu.memory_space<vmem>>, vector<1x1x1x128xf32>,
    %c0_139 = arith.constant 0 : index
    %c0_140 = arith.constant 0 : index
    %c0_141 = arith.constant 0 : index
    %c0_142 = arith.constant 0 : index
    %510 = vector.load %arg7[%c0_139, %c0_140, %c0_141, %c0_142] : memref<1x1x1x128xf32, #tpu.memory_space<vmem>>, vector<1x1x1x128xf32>
    %511 = vector.shape_cast %510 : vector<1x1x1x128xf32> to vector<1x128xf32>
    %512 = vector.shape_cast %506 : vector<1x128xf32> to vector<1x1x1x128xf32>
    tpu.vector_store %arg7[%c0_139, %c0_140, %c0_141, %c0_142], %512 {strides = array<i32>} : memref<1x1x1x128xf32, #tpu.memory_space<vmem>>, vector<1x1x1x128xf32>,
    return
  }
  func.func @transform_0(%arg0: i32, %arg1: i32) -> (i32, i32, i32, i32) {
    %c0_i32 = arith.constant 0 : i32
    %c0_i32_0 = arith.constant 0 : i32
    %c0_i32_1 = arith.constant 0 : i32
    return %arg0, %arg1, %c0_i32, %c0_i32_0 : i32, i32, i32, i32
  }
  func.func @transform_1(%arg0: i32, %arg1: i32) -> (i32, i32, i32, i32, i32) {
    %c0_i32 = arith.constant 0 : i32
    %c0_i32_0 = arith.constant 0 : i32
    %c0_i32_1 = arith.constant 0 : i32
    %c0_i32_2 = arith.constant 0 : i32
    return %arg0, %arg1, %c0_i32, %c0_i32_0, %c0_i32_1 : i32, i32, i32, i32, i32
  }
  func.func @transform_2(%arg0: i32, %arg1: i32) -> (i32, i32) {
    %c0_i32 = arith.constant 0 : i32
    %c0_i32_0 = arith.constant 0 : i32
    %c0_i32_1 = arith.constant 0 : i32
    return %c0_i32, %c0_i32_0 : i32, i32
  }
  func.func @transform_3(%arg0: i32, %arg1: i32) -> (i32, i32, i32) {
    %c0_i32 = arith.constant 0 : i32
    %c0_i32_0 = arith.constant 0 : i32
    return %arg0, %arg1, %c0_i32 : i32, i32, i32
  }
  func.func @transform_4(%arg0: i32, %arg1: i32) -> (i32, i32, i32, i32) {
    %c0_i32 = arith.constant 0 : i32
    %c0_i32_0 = arith.constant 0 : i32
    %c0_i32_1 = arith.constant 0 : i32
    return %arg0, %arg1, %c0_i32, %c0_i32_0 : i32, i32, i32, i32
  }
  func.func @transform_5(%arg0: i32, %arg1: i32) -> (i32, i32, i32, i32) {
    %c0_i32 = arith.constant 0 : i32
    %c0_i32_0 = arith.constant 0 : i32
    %c0_i32_1 = arith.constant 0 : i32
    return %arg0, %arg1, %c0_i32, %c0_i32_0 : i32, i32, i32, i32
  }
}

module attributes {stable_mosaic.version = 11 : i64} {
  func.func @_bn_skip_kernel(%arg0: i32, %arg1: i32, %arg2: memref<1x256x128xbf16, #tpu.memory_space<vmem>>, %arg3: memref<1x128xf32, #tpu.memory_space<vmem>>, %arg4: memref<1x128xf32, #tpu.memory_space<vmem>>, %arg5: memref<1x256x128xf32, #tpu.memory_space<vmem>>, %arg6: memref<1x256x128xf32, #tpu.memory_space<vmem>>) attributes {dimension_semantics = [#tpu.dimension_semantics<parallel>, #tpu.dimension_semantics<parallel>], iteration_bounds = array<i64: 2, 1>, scalar_prefetch = 0 : i64, scratch_operands = 0 : i64, tpu.core_type = #tpu.core_type<tc>, window_params = [{transform_indices = @transform_0, window_bounds = array<i64: 1, 256, 128>}, {pipeline_mode = #tpu.pipeline_mode<synchronous>, transform_indices = @transform_1, window_bounds = array<i64: 1, 128>}, {pipeline_mode = #tpu.pipeline_mode<synchronous>, transform_indices = @transform_2, window_bounds = array<i64: 1, 128>}, {transform_indices = @transform_3, window_bounds = array<i64: 1, 256, 128>}, {transform_indices = @transform_4, window_bounds = array<i64: 1, 256, 128>}]} {
    %c0 = arith.constant 0 : index
    %c0_0 = arith.constant 0 : index
    %c0_1 = arith.constant 0 : index
    %0 = vector.load %arg2[%c0, %c0_0, %c0_1] : memref<1x256x128xbf16, #tpu.memory_space<vmem>>, vector<1x256x128xbf16>
    %1 = vector.shape_cast %0 : vector<1x256x128xbf16> to vector<256x128xbf16>
    %2 = arith.extf %1 : vector<256x128xbf16> to vector<256x128xf32>
    %c0_2 = arith.constant 0 : index
    %c0_3 = arith.constant 0 : index
    %3 = vector.load %arg3[%c0_2, %c0_3] : memref<1x128xf32, #tpu.memory_space<vmem>>, vector<1x128xf32>
    %4 = vector.broadcast %3 : vector<1x128xf32> to vector<256x128xf32>
    %5 = arith.mulf %2, %4 : vector<256x128xf32>
    %c0_4 = arith.constant 0 : index
    %c0_5 = arith.constant 0 : index
    %6 = vector.load %arg4[%c0_4, %c0_5] : memref<1x128xf32, #tpu.memory_space<vmem>>, vector<1x128xf32>
    %7 = vector.broadcast %6 : vector<1x128xf32> to vector<256x128xf32>
    %8 = arith.addf %5, %7 : vector<256x128xf32>
    %c0_6 = arith.constant 0 : index
    %c0_7 = arith.constant 0 : index
    %c0_8 = arith.constant 0 : index
    %9 = vector.load %arg5[%c0_6, %c0_7, %c0_8] : memref<1x256x128xf32, #tpu.memory_space<vmem>>, vector<1x256x128xf32>
    %10 = vector.shape_cast %9 : vector<1x256x128xf32> to vector<256x128xf32>
    %11 = arith.addf %8, %10 : vector<256x128xf32>
    %c0_9 = arith.constant 0 : index
    %c0_10 = arith.constant 0 : index
    %c0_11 = arith.constant 0 : index
    %12 = vector.load %arg6[%c0_9, %c0_10, %c0_11] : memref<1x256x128xf32, #tpu.memory_space<vmem>>, vector<1x256x128xf32>
    %13 = vector.shape_cast %12 : vector<1x256x128xf32> to vector<256x128xf32>
    %14 = vector.shape_cast %11 : vector<256x128xf32> to vector<1x256x128xf32>
    tpu.vector_store %arg6[%c0_9, %c0_10, %c0_11], %14 {strides = array<i32>} : memref<1x256x128xf32, #tpu.memory_space<vmem>>, vector<1x256x128xf32>,
    return
  }
  func.func @transform_0(%arg0: i32, %arg1: i32) -> (i32, i32, i32) {
    %c0_i32 = arith.constant 0 : i32
    %c0_i32_0 = arith.constant 0 : i32
    return %arg0, %arg1, %c0_i32 : i32, i32, i32
  }
  func.func @transform_1(%arg0: i32, %arg1: i32) -> (i32, i32) {
    %c0_i32 = arith.constant 0 : i32
    %c0_i32_0 = arith.constant 0 : i32
    %c0_i32_1 = arith.constant 0 : i32
    return %c0_i32, %c0_i32_0 : i32, i32
  }
  func.func @transform_2(%arg0: i32, %arg1: i32) -> (i32, i32) {
    %c0_i32 = arith.constant 0 : i32
    %c0_i32_0 = arith.constant 0 : i32
    %c0_i32_1 = arith.constant 0 : i32
    return %c0_i32, %c0_i32_0 : i32, i32
  }
  func.func @transform_3(%arg0: i32, %arg1: i32) -> (i32, i32, i32) {
    %c0_i32 = arith.constant 0 : i32
    %c0_i32_0 = arith.constant 0 : i32
    return %arg0, %arg1, %c0_i32 : i32, i32, i32
  }
  func.func @transform_4(%arg0: i32, %arg1: i32) -> (i32, i32, i32) {
    %c0_i32 = arith.constant 0 : i32
    %c0_i32_0 = arith.constant 0 : i32
    return %arg0, %arg1, %c0_i32 : i32, i32, i32
  }
}

</mosaic_0001>

<bundles_post_ra>
// kernel: mbconv_forward.7
= control target key start
LH: loop header
LB: loop body
LE: loop exit
PB: predicated region body
PF: predicated region fallthrough
CT: control target
= control target key end

     0   :  { %s786_s15 = smov 0   ;;  %s788_s16 = smov 0   ;;  %s990_s0 = inlined_call_operand.vmem [shape: bf16[2,256,128], index: 0, kind: input, shape index: {}]   ;;  %s991_s1 = inlined_call_operand.vmem [shape: f32[1,128], index: 1, kind: input, shape index: {}]   ;;  %s992_s2 = inlined_call_operand.vmem [shape: f32[1,128], index: 2, kind: input, shape index: {}]   ;;  %s993_s3 = inlined_call_operand.vmem [shape: f32[2,256,128], index: 3, kind: input, shape index: {}]   ;;  %s994_s4 = inlined_call_operand.vmem [shape: f32[2,256,128], index: 4, kind: output, shape index: {}]  }
   0x1   :  { %s790_s17 = smov 0  }
   0x2 LB: > { %s26_s18 = sadd.s32 1, %s755_s16  ;;  %p620_p0 = scmp.ge.s32.totalorder %s759_s17, 1  ;;  %s759_s17 = sphi %s790_s17, %s14_s17   ;;  %s755_s16 = sphi %s788_s16, %s996_s16   ;;  %s751_s15 = sphi %s786_s15, %s995_s15  }
   0x3   : > { %p28_p1 = scmp.ge.s32.totalorder %s26_s18, 2  ;;  %p200_p2 = scmp.lt.s32.totalorder %s759_s17, 3 }
   0x5   : > { %s998_s18 = smov (%p28_p1, %s26_s18), 0  ;;  %p201_p3 = pnand %p620_p0, %p200_p2 }
   0x6   : > { %p244_p4 = scmp.lt.s32.totalorder (!%p201_p3), %s751_s15, 1  ;;  %v817_v1 = vld [vmem:[%s991_s1] ss:$0 sm:$0xff] (!%p201_p3) }
   0x7   : > { %204 = sbr.rel (%p201_p3) target bundleno = 53 (0x35), region = 36  ;;  %v830_v5 = vld [vmem:[%s992_s2] ss:$0 sm:$0xff] (!%p201_p3) }
   0xe   : > { %s1000_s15 = smov (!%p244_p4, %s751_s15), 1 }
   0xf   : > { %s631_s19 = sshll.u32 %s1000_s15, 7  ;;  %s632_s20 = sshll.u32 %s1000_s15, 8 }
  0x10   : > { %s811_s23 = scalar_lea.vmem %s990_s0, %s631_s19  ;;  %s824_s28 = scalar_lea.vmem %s993_s3, %s632_s20 }
  0x11   : > { %v635_v0 = vld [vmem:[%s811_s23] sm:$0xff]   ;;  %v698_v4 = vld [vmem:[%s811_s23 + $0x8] sm:$0xff]   ;;  %v699_v8 = vld [vmem:[%s811_s23 + $0x10] sm:$0xff]   ;;  %s851_s7 = scalar_lea.vmem %s994_s4, %s632_s20 }
  0x12   : > { %v636_v2 = vunpack.c.l.bf16 %v635_v0  ;;  %v637_v3 = vunpack.c.h.bf16 %v635_v0  ;;  %v640_v6 = vunpack.c.l.bf16 %v698_v4  ;;  %v641_v7 = vunpack.c.h.bf16 %v698_v4  ;;  %v700_v13 = vld [vmem:[%s811_s23 + $0x18] sm:$0xff]   ;;  %v415_v14 = vld [vmem:[%s824_s28] sm:$0xff]  ;;  %v416_v15 = vld [vmem:[%s824_s28 + $0x8] sm:$0xff] }
  0x13   : > { %v644_v11 = vunpack.c.l.bf16 %v699_v8  ;;  %v645_v12 = vunpack.c.h.bf16 %v699_v8  ;;  %v648_v18 = vunpack.c.l.bf16 %v700_v13  ;;  %v649_v19 = vunpack.c.h.bf16 %v700_v13  ;;  %v417_v22 = vld [vmem:[%s824_s28 + $0x10] sm:$0xff]  ;;  %v418_v23 = vld [vmem:[%s824_s28 + $0x18] sm:$0xff]  ;;  %v419_v28 = vld [vmem:[%s824_s28 + $0x20] sm:$0xff] }
  0x14   : > { %v344_v9 = vmul.f32 %v636_v2, %v817_v1  ;;  %v345_v10 = vmul.f32 %v637_v3, %v817_v1  ;;  %v346_v16 = vmul.f32 %v640_v6, %v817_v1  ;;  %v347_v17 = vmul.f32 %v641_v7, %v817_v1  ;;  %v420_v29 = vld [vmem:[%s824_s28 + $0x28] sm:$0xff]  ;;  %v701_v32 = vld [vmem:[%s811_s23 + $0x20] sm:$0xff]   ;;  %v421_v37 = vld [vmem:[%s824_s28 + $0x30] sm:$0xff] }
  0x15   : > { %v348_v24 = vmul.f32 %v644_v11, %v817_v1  ;;  %v349_v25 = vmul.f32 %v645_v12, %v817_v1  ;;  %v350_v30 = vmul.f32 %v648_v18, %v817_v1  ;;  %v351_v31 = vmul.f32 %v649_v19, %v817_v1  ;;  %v422_v38 = vld [vmem:[%s824_s28 + $0x38] sm:$0xff]  ;;  %v702_v39 = vld [vmem:[%s811_s23 + $0x28] sm:$0xff]   ;;  %v703_v44 = vld [vmem:[%s811_s23 + $0x30] sm:$0xff]  }
  0x16   : > { %v383_v20 = vadd.f32 %v830_v5, %v344_v9  ;;  %v384_v21 = vadd.f32 %v830_v5, %v345_v10  ;;  %v385_v26 = vadd.f32 %v830_v5, %v346_v16  ;;  %v386_v27 = vadd.f32 %v830_v5, %v347_v17  ;;  %v704_v49 = vld [vmem:[%s811_s23 + $0x38] sm:$0xff]   ;;  %v423_v58 = vld [vmem:[%s824_s28 + $0x40] sm:$0xff]  ;;  %v424_v59 = vld [vmem:[%s824_s28 + $0x48] sm:$0xff] }
  0x17   : > { %v387_v35 = vadd.f32 %v830_v5, %v348_v24  ;;  %v388_v36 = vadd.f32 %v830_v5, %v349_v25  ;;  %v389_v42 = vadd.f32 %v830_v5, %v350_v30  ;;  %v390_v43 = vadd.f32 %v830_v5, %v351_v31  ;;  %v425_v3 = vld [vmem:[%s824_s28 + $0x50] sm:$0xff]  ;;  %v426_v4 = vld [vmem:[%s824_s28 + $0x58] sm:$0xff]  ;;  %v427_v10 = vld [vmem:[%s824_s28 + $0x60] sm:$0xff] }
  0x18   : > { %v447_v33 = vadd.f32 %v415_v14, %v383_v20  ;;  %v448_v34 = vadd.f32 %v416_v15, %v384_v21  ;;  %v449_v40 = vadd.f32 %v417_v22, %v385_v26  ;;  %v450_v41 = vadd.f32 %v418_v23, %v386_v27  ;;  %v428_v11 = vld [vmem:[%s824_s28 + $0x68] sm:$0xff]  ;;  %v705_v14 = vld [vmem:[%s811_s23 + $0x40] sm:$0xff]   ;;  %v429_v19 = vld [vmem:[%s824_s28 + $0x70] sm:$0xff] }
  0x19   : > { %v451_v45 = vadd.f32 %v419_v28, %v387_v35  ;;  %v452_v46 = vadd.f32 %v420_v29, %v388_v36  ;;  %v652_v47 = vunpack.c.l.bf16 %v701_v32  ;;  %v653_v48 = vunpack.c.h.bf16 %v701_v32  ;;  %v430_v20 = vld [vmem:[%s824_s28 + $0x78] sm:$0xff]  ;;  %v706_v21 = vld [vmem:[%s811_s23 + $0x48] sm:$0xff]   ;;  %v707_v26 = vld [vmem:[%s811_s23 + $0x50] sm:$0xff]  }
  0x1a   : > { %479 = vst [vmem:[%s851_s7] sm:$0xff] %v447_v33  ;;  %480 = vst [vmem:[%s851_s7 + $0x8] sm:$0xff] %v448_v34  ;;  %v453_v50 = vadd.f32 %v421_v37, %v389_v42  ;;  %v454_v51 = vadd.f32 %v422_v38, %v390_v43  ;;  %v656_v52 = vunpack.c.l.bf16 %v702_v39  ;;  %v657_v53 = vunpack.c.h.bf16 %v702_v39  ;;  %v708_v31 = vld [vmem:[%s811_s23 + $0x58] sm:$0xff]  }
  0x1b   : > { %481 = vst [vmem:[%s851_s7 + $0x10] sm:$0xff] %v449_v40  ;;  %482 = vst [vmem:[%s851_s7 + $0x18] sm:$0xff] %v450_v41  ;;  %v352_v54 = vmul.f32 %v652_v47, %v817_v1  ;;  %v353_v55 = vmul.f32 %v653_v48, %v817_v1  ;;  %v660_v56 = vunpack.c.l.bf16 %v703_v44  ;;  %v661_v57 = vunpack.c.h.bf16 %v703_v44  ;;  %v431_v40 = vld [vmem:[%s824_s28 + $0x80] sm:$0xff]  ;;  %v432_v41 = vld [vmem:[%s824_s28 + $0x88] sm:$0xff] }
  0x1c   : > { %483 = vst [vmem:[%s851_s7 + $0x20] sm:$0xff] %v451_v45  ;;  %484 = vst [vmem:[%s851_s7 + $0x28] sm:$0xff] %v452_v46  ;;  %v354_v60 = vmul.f32 %v656_v52, %v817_v1  ;;  %v355_v61 = vmul.f32 %v657_v53, %v817_v1  ;;  %v664_v62 = vunpack.c.l.bf16 %v704_v49  ;;  %v665_v63 = vunpack.c.h.bf16 %v704_v49  ;;  %v433_v48 = vld [vmem:[%s824_s28 + $0x90] sm:$0xff]  ;;  %v434_v49 = vld [vmem:[%s824_s28 + $0x98] sm:$0xff] }
  0x1d   : > { %485 = vst [vmem:[%s851_s7 + $0x30] sm:$0xff] %v453_v50  ;;  %486 = vst [vmem:[%s851_s7 + $0x38] sm:$0xff] %v454_v51  ;;  %v391_v0 = vadd.f32 %v830_v5, %v352_v54  ;;  %v392_v2 = vadd.f32 %v830_v5, %v353_v55  ;;  %v356_v6 = vmul.f32 %v660_v56, %v817_v1  ;;  %v668_v29 = vunpack.c.l.bf16 %v705_v14  ;;  %v435_v54 = vld [vmem:[%s824_s28 + $0xa0] sm:$0xff]  ;;  %v436_v55 = vld [vmem:[%s824_s28 + $0xa8] sm:$0xff] }
  0x1e   : > { %v357_v7 = vmul.f32 %v661_v57, %v817_v1  ;;  %v393_v8 = vadd.f32 %v830_v5, %v354_v60  ;;  %v394_v9 = vadd.f32 %v830_v5, %v355_v61  ;;  %v358_v12 = vmul.f32 %v664_v62, %v817_v1 }
  0x1f   : > { %v359_v13 = vmul.f32 %v665_v63, %v817_v1  ;;  %v455_v15 = vadd.f32 %v423_v58, %v391_v0  ;;  %v456_v16 = vadd.f32 %v424_v59, %v392_v2  ;;  %v395_v17 = vadd.f32 %v830_v5, %v356_v6  ;;  %v709_v58 = vld [vmem:[%s811_s23 + $0x60] sm:$0xff]   ;;  %v437_v63 = vld [vmem:[%s824_s28 + $0xb0] sm:$0xff]  ;;  %v438_v0 = vld [vmem:[%s824_s28 + $0xb8] sm:$0xff] }
  0x20   : > { %v396_v18 = vadd.f32 %v830_v5, %v357_v7  ;;  %v457_v22 = vadd.f32 %v425_v3, %v393_v8  ;;  %v458_v23 = vadd.f32 %v426_v4, %v394_v9  ;;  %v397_v24 = vadd.f32 %v830_v5, %v358_v12  ;;  %v710_v2 = vld [vmem:[%s811_s23 + $0x68] sm:$0xff]   ;;  %v711_v8 = vld [vmem:[%s811_s23 + $0x70] sm:$0xff]  }
  0x21   : > { %v398_v25 = vadd.f32 %v830_v5, %v359_v13  ;;  %487 = vst [vmem:[%s851_s7 + $0x40] sm:$0xff] %v455_v15  ;;  %488 = vst [vmem:[%s851_s7 + $0x48] sm:$0xff] %v456_v16  ;;  %v459_v27 = vadd.f32 %v427_v10, %v395_v17  ;;  %v669_v30 = vunpack.c.h.bf16 %v705_v14  ;;  %v672_v34 = vunpack.c.l.bf16 %v706_v21  ;;  %v712_v13 = vld [vmem:[%s811_s23 + $0x78] sm:$0xff]  }
  0x22   : > { %v460_v28 = vadd.f32 %v428_v11, %v396_v18  ;;  %489 = vst [vmem:[%s851_s7 + $0x50] sm:$0xff] %v457_v22  ;;  %490 = vst [vmem:[%s851_s7 + $0x58] sm:$0xff] %v458_v23  ;;  %v461_v32 = vadd.f32 %v429_v19, %v397_v24  ;;  %v673_v35 = vunpack.c.h.bf16 %v706_v21  ;;  %v360_v36 = vmul.f32 %v668_v29, %v817_v1  ;;  %v439_v22 = vld [vmem:[%s824_s28 + $0xc0] sm:$0xff]  ;;  %v440_v23 = vld [vmem:[%s824_s28 + $0xc8] sm:$0xff] }
  0x23   : > { %v462_v33 = vadd.f32 %v430_v20, %v398_v25  ;;  %491 = vst [vmem:[%s851_s7 + $0x60] sm:$0xff] %v459_v27  ;;  %v361_v37 = vmul.f32 %v669_v30, %v817_v1  ;;  %v676_v38 = vunpack.c.l.bf16 %v707_v26  ;;  %v677_v39 = vunpack.c.h.bf16 %v707_v26  ;;  %v441_v30 = vld [vmem:[%s824_s28 + $0xd0] sm:$0xff] }
  0x24   : > { %492 = vst [vmem:[%s851_s7 + $0x68] sm:$0xff] %v460_v28  ;;  %493 = vst [vmem:[%s851_s7 + $0x70] sm:$0xff] %v461_v32  ;;  %v362_v42 = vmul.f32 %v672_v34, %v817_v1  ;;  %v363_v43 = vmul.f32 %v673_v35, %v817_v1  ;;  %v680_v44 = vunpack.c.l.bf16 %v708_v31  ;;  %v681_v45 = vunpack.c.h.bf16 %v708_v31  ;;  %v442_v31 = vld [vmem:[%s824_s28 + $0xd8] sm:$0xff] }
  0x25   : > { %494 = vst [vmem:[%s851_s7 + $0x78] sm:$0xff] %v462_v33  ;;  %v399_v46 = vadd.f32 %v830_v5, %v360_v36  ;;  %v400_v47 = vadd.f32 %v830_v5, %v361_v37  ;;  %v364_v50 = vmul.f32 %v676_v38, %v817_v1  ;;  %v365_v51 = vmul.f32 %v677_v39, %v817_v1  ;;  %v443_v36 = vld [vmem:[%s824_s28 + $0xe0] sm:$0xff]  ;;  %v444_v37 = vld [vmem:[%s824_s28 + $0xe8] sm:$0xff] }
  0x26   : > { %v401_v52 = vadd.f32 %v830_v5, %v362_v42  ;;  %v402_v53 = vadd.f32 %v830_v5, %v363_v43  ;;  %v366_v56 = vmul.f32 %v680_v44, %v817_v1  ;;  %v367_v57 = vmul.f32 %v681_v45, %v817_v1  ;;  %v445_v44 = vld [vmem:[%s824_s28 + $0xf0] sm:$0xff]  ;;  %v446_v45 = vld [vmem:[%s824_s28 + $0xf8] sm:$0xff] }
  0x27   : > { %v463_v59 = vadd.f32 %v431_v40, %v399_v46  ;;  %v464_v60 = vadd.f32 %v432_v41, %v400_v47  ;;  %v403_v61 = vadd.f32 %v830_v5, %v364_v50  ;;  %v404_v62 = vadd.f32 %v830_v5, %v365_v51 }
  0x28   : > { %v465_v3 = vadd.f32 %v433_v48, %v401_v52  ;;  %v466_v4 = vadd.f32 %v434_v49, %v402_v53  ;;  %v405_v6 = vadd.f32 %v830_v5, %v366_v56  ;;  %v406_v7 = vadd.f32 %v830_v5, %v367_v57 }
  0x29   : > { %495 = vst [vmem:[%s851_s7 + $0x80] sm:$0xff] %v463_v59  ;;  %496 = vst [vmem:[%s851_s7 + $0x88] sm:$0xff] %v464_v60  ;;  %v467_v9 = vadd.f32 %v435_v54, %v403_v61  ;;  %v468_v10 = vadd.f32 %v436_v55, %v404_v62  ;;  %v684_v11 = vunpack.c.l.bf16 %v709_v58  ;;  %v685_v12 = vunpack.c.h.bf16 %v709_v58 }
  0x2a   : > { %497 = vst [vmem:[%s851_s7 + $0x90] sm:$0xff] %v465_v3  ;;  %498 = vst [vmem:[%s851_s7 + $0x98] sm:$0xff] %v466_v4  ;;  %v469_v14 = vadd.f32 %v437_v63, %v405_v6  ;;  %v470_v15 = vadd.f32 %v438_v0, %v406_v7  ;;  %v688_v16 = vunpack.c.l.bf16 %v710_v2  ;;  %v689_v17 = vunpack.c.h.bf16 %v710_v2 }
  0x2b   : > { %499 = vst [vmem:[%s851_s7 + $0xa0] sm:$0xff] %v467_v9  ;;  %500 = vst [vmem:[%s851_s7 + $0xa8] sm:$0xff] %v468_v10  ;;  %v368_v18 = vmul.f32 %v684_v11, %v817_v1  ;;  %v369_v19 = vmul.f32 %v685_v12, %v817_v1  ;;  %v692_v20 = vunpack.c.l.bf16 %v711_v8  ;;  %v693_v21 = vunpack.c.h.bf16 %v711_v8 }
  0x2c   : > { %501 = vst [vmem:[%s851_s7 + $0xb0] sm:$0xff] %v469_v14  ;;  %502 = vst [vmem:[%s851_s7 + $0xb8] sm:$0xff] %v470_v15  ;;  %v370_v24 = vmul.f32 %v688_v16, %v817_v1  ;;  %v371_v25 = vmul.f32 %v689_v17, %v817_v1  ;;  %v696_v26 = vunpack.c.l.bf16 %v712_v13  ;;  %v697_v27 = vunpack.c.h.bf16 %v712_v13 }
  0x2d   : > { %v407_v28 = vadd.f32 %v830_v5, %v368_v18  ;;  %v408_v29 = vadd.f32 %v830_v5, %v369_v19  ;;  %v372_v32 = vmul.f32 %v692_v20, %v817_v1  ;;  %v373_v33 = vmul.f32 %v693_v21, %v817_v1 }
  0x2e   : > { %v409_v34 = vadd.f32 %v830_v5, %v370_v24  ;;  %v410_v35 = vadd.f32 %v830_v5, %v371_v25  ;;  %v374_v38 = vmul.f32 %v696_v26, %v817_v1  ;;  %v375_v39 = vmul.f32 %v697_v27, %v817_v1 }
  0x2f   : > { %v471_v40 = vadd.f32 %v439_v22, %v407_v28  ;;  %v472_v41 = vadd.f32 %v440_v23, %v408_v29  ;;  %v411_v42 = vadd.f32 %v830_v5, %v372_v32  ;;  %v412_v43 = vadd.f32 %v830_v5, %v373_v33 }
  0x30   : > { %v473_v46 = vadd.f32 %v441_v30, %v409_v34  ;;  %v474_v47 = vadd.f32 %v442_v31, %v410_v35  ;;  %v413_v48 = vadd.f32 %v830_v5, %v374_v38  ;;  %v414_v49 = vadd.f32 %v830_v5, %v375_v39 }
  0x31   : > { %503 = vst [vmem:[%s851_s7 + $0xc0] sm:$0xff] %v471_v40  ;;  %504 = vst [vmem:[%s851_s7 + $0xc8] sm:$0xff] %v472_v41  ;;  %v475_v1 = vadd.f32 %v443_v36, %v411_v42  ;;  %v476_v50 = vadd.f32 %v444_v37, %v412_v43 }
  0x32   : > { %505 = vst [vmem:[%s851_s7 + $0xd0] sm:$0xff] %v473_v46  ;;  %506 = vst [vmem:[%s851_s7 + $0xd8] sm:$0xff] %v474_v47  ;;  %v477_v51 = vadd.f32 %v445_v44, %v413_v48  ;;  %v478_v52 = vadd.f32 %v446_v45, %v414_v49 }
  0x33   : > { %507 = vst [vmem:[%s851_s7 + $0xe0] sm:$0xff] %v475_v1  ;;  %508 = vst [vmem:[%s851_s7 + $0xe8] sm:$0xff] %v476_v50 }
  0x34   : > { %509 = vst [vmem:[%s851_s7 + $0xf0] sm:$0xff] %v477_v51  ;;  %510 = vst [vmem:[%s851_s7 + $0xf8] sm:$0xff] %v478_v52 }
  0x35 PF: > { %s14_s17 = sadd.s32 1, %s759_s17   ;;  %s995_s15 = smov %s755_s16 }
  0x36   : > { %p11_p5 = scmp.ge.s32.totalorder %s14_s17, 4   ;;  %s996_s16 = smov %s998_s18 }
  0x38   :  { %13 = sbr.rel (!%p11_p5) target bundleno = 2 (0x2), region = 69 }

// kernel: mbconv_forward.5
= control target key start
LH: loop header
LB: loop body
LE: loop exit
PB: predicated region body
PF: predicated region fallthrough
CT: control target
= control target key end

     0   :  { %s1029_s12 = smov 0   ;;  %s1031_s13 = smov 0   ;;  %s1429_s0 = inlined_call_operand.vmem [shape: bf16[2,256,128], index: 0, kind: input, shape index: {}]   ;;  %s1430_s1 = inlined_call_operand.vmem [shape: f32[1,128], index: 1, kind: input, shape index: {}]   ;;  %s1431_s2 = inlined_call_operand.vmem [shape: f32[1,128], index: 2, kind: input, shape index: {}]   ;;  %s1432_s3 = inlined_call_operand.vmem [shape: f32[2,1,1,128], index: 3, kind: output, shape index: {}]  }
   0x1   :  { %s1033_s14 = smov 0  }
   0x2 LB: > { %s25_s15 = sadd.s32 1, %s1003_s13  ;;  %p746_p0 = scmp.ge.s32.totalorder %s1007_s14, 1  ;;  %s1007_s14 = sphi %s1033_s14, %s13_s14   ;;  %s1003_s13 = sphi %s1031_s13, %s1476_s13   ;;  %s999_s12 = sphi %s1029_s12, %s1475_s12  }
   0x3   : > { %p27_p1 = scmp.ge.s32.totalorder %s25_s15, 2  ;;  %p158_p2 = scmp.lt.s32.totalorder %s1007_s14, 3 }
   0x5   : > { %s1478_s15 = smov (%p27_p1, %s25_s15), 0  ;;  %p159_p3 = pnand %p746_p0, %p158_p2 }
   0x7   : > { %162 = sbr.rel (%p159_p3) target bundleno = 156 (0x9c), region = 32 }
   0xe   : > { %p188_p4 = scmp.lt.s32.totalorder %s999_s12, 1  ;;  %v1071_v27 = vld [vmem:[%s1430_s1] ss:$0 sm:$0xff] }
   0xf   : > { %v1081_v47 = vld [vmem:[%s1431_s2] ss:$0 sm:$0xff] }
  0x10   : > { %s1480_s12 = smov (!%p188_p4, %s999_s12), 1 }
  0x11   : > { %s753_s16 = sshll.u32 %s1480_s12, 7  ;;  %s202_s26 = scalar_lea.vmem %s1432_s3, %s1480_s12 }
  0x12   : > { %s1053_s19 = scalar_lea.vmem %s1429_s0, %s753_s16 }
  0x13   : > { %v755_v0 = vld [vmem:[%s1053_s19] sm:$0xff]   ;;  %v818_v1 = vld [vmem:[%s1053_s19 + $0x8] sm:$0xff]   ;;  %v819_v2 = vld [vmem:[%s1053_s19 + $0x10] sm:$0xff]  }
  0x14   : > { %v820_v3 = vld [vmem:[%s1053_s19 + $0x18] sm:$0xff]   ;;  %v821_v4 = vld [vmem:[%s1053_s19 + $0x20] sm:$0xff]   ;;  %v756_v5 = vunpack.c.l.bf16 %v755_v0  ;;  %v757_v6 = vunpack.c.h.bf16 %v755_v0  ;;  %v822_v7 = vld [vmem:[%s1053_s19 + $0x28] sm:$0xff]   ;;  %v760_v9 = vunpack.c.l.bf16 %v818_v1  ;;  %v761_v10 = vunpack.c.h.bf16 %v818_v1 }
  0x15   : > { %v823_v8 = vld [vmem:[%s1053_s19 + $0x30] sm:$0xff]   ;;  %v764_v11 = vunpack.c.l.bf16 %v819_v2  ;;  %v765_v12 = vunpack.c.h.bf16 %v819_v2  ;;  %v824_v13 = vld [vmem:[%s1053_s19 + $0x38] sm:$0xff]   ;;  %v825_v14 = vld [vmem:[%s1053_s19 + $0x40] sm:$0xff]   ;;  %v768_v15 = vunpack.c.l.bf16 %v820_v3  ;;  %v769_v16 = vunpack.c.h.bf16 %v820_v3 }
  0x16   : > { %v772_v17 = vunpack.c.l.bf16 %v821_v4  ;;  %v773_v18 = vunpack.c.h.bf16 %v821_v4  ;;  %v826_v19 = vld [vmem:[%s1053_s19 + $0x48] sm:$0xff]   ;;  %v827_v20 = vld [vmem:[%s1053_s19 + $0x50] sm:$0xff]   ;;  %v776_v21 = vunpack.c.l.bf16 %v822_v7  ;;  %v777_v22 = vunpack.c.h.bf16 %v822_v7  ;;  %v828_v25 = vld [vmem:[%s1053_s19 + $0x58] sm:$0xff]  }
  0x17   : > { %v780_v23 = vunpack.c.l.bf16 %v823_v8  ;;  %v781_v24 = vunpack.c.h.bf16 %v823_v8  ;;  %v829_v26 = vld [vmem:[%s1053_s19 + $0x60] sm:$0xff]   ;;  %v784_v28 = vunpack.c.l.bf16 %v824_v13  ;;  %v785_v29 = vunpack.c.h.bf16 %v824_v13  ;;  %v830_v32 = vld [vmem:[%s1053_s19 + $0x68] sm:$0xff]   ;;  %v831_v37 = vld [vmem:[%s1053_s19 + $0x70] sm:$0xff]  }
  0x18   : > { %v788_v30 = vunpack.c.l.bf16 %v825_v14  ;;  %v789_v31 = vunpack.c.h.bf16 %v825_v14  ;;  %v792_v33 = vunpack.c.l.bf16 %v826_v19  ;;  %v793_v34 = vunpack.c.h.bf16 %v826_v19  ;;  %v832_v38 = vld [vmem:[%s1053_s19 + $0x78] sm:$0xff]  }
  0x19   : > { %v796_v35 = vunpack.c.l.bf16 %v827_v20  ;;  %v797_v36 = vunpack.c.h.bf16 %v827_v20  ;;  %v800_v39 = vunpack.c.l.bf16 %v828_v25  ;;  %v801_v40 = vunpack.c.h.bf16 %v828_v25 }
  0x1a   : > { %v804_v41 = vunpack.c.l.bf16 %v829_v26  ;;  %v274_v42 = vmul.f32 %v756_v5, %v1071_v27  ;;  %v805_v43 = vunpack.c.h.bf16 %v829_v26  ;;  %v808_v44 = vunpack.c.l.bf16 %v830_v32 }
  0x1b   : > { %v809_v45 = vunpack.c.h.bf16 %v830_v32  ;;  %v275_v46 = vmul.f32 %v757_v6, %v1071_v27  ;;  %v812_v48 = vunpack.c.l.bf16 %v831_v37  ;;  %v813_v49 = vunpack.c.h.bf16 %v831_v37 }
  0x1c   : > { %v816_v50 = vunpack.c.l.bf16 %v832_v38  ;;  %v276_v51 = vmul.f32 %v760_v9, %v1071_v27  ;;  %v817_v52 = vunpack.c.h.bf16 %v832_v38  ;;  %v277_v53 = vmul.f32 %v761_v10, %v1071_v27 }
  0x1d   : > { %v278_v54 = vmul.f32 %v764_v11, %v1071_v27  ;;  %v279_v55 = vmul.f32 %v765_v12, %v1071_v27  ;;  %v280_v56 = vmul.f32 %v768_v15, %v1071_v27  ;;  %v281_v57 = vmul.f32 %v769_v16, %v1071_v27 }
  0x1e   : > { %v282_v58 = vmul.f32 %v772_v17, %v1071_v27  ;;  %v1091_v59 = vadd.f32 %v1081_v47, %v274_v42  ;;  %v283_v60 = vmul.f32 %v773_v18, %v1071_v27  ;;  %v284_v61 = vmul.f32 %v776_v21, %v1071_v27 }
  0x1f   : > { %v285_v62 = vmul.f32 %v777_v22, %v1071_v27  ;;  %v1097_v63 = vadd.f32 %v1081_v47, %v275_v46  ;;  %v286_v0 = vmul.f32 %v780_v23, %v1071_v27  ;;  %v287_v1 = vmul.f32 %v781_v24, %v1071_v27 }
  0x20   : > { %v288_v2 = vmul.f32 %v784_v28, %v1071_v27  ;;  %v1103_v3 = vadd.f32 %v1081_v47, %v276_v51  ;;  %v289_v4 = vmul.f32 %v785_v29, %v1071_v27  ;;  %v290_v5 = vmul.f32 %v788_v30, %v1071_v27 }
  0x21   : > { %v291_v6 = vmul.f32 %v789_v31, %v1071_v27  ;;  %v1109_v7 = vadd.f32 %v1081_v47, %v277_v53  ;;  %v292_v8 = vmul.f32 %v792_v33, %v1071_v27  ;;  %v293_v9 = vmul.f32 %v793_v34, %v1071_v27 }
  0x22   : > { %v1114_v10 = vadd.f32 %v1081_v47, %v278_v54  ;;  %v345_v11 = vmin.f32 %v1091_v59, 20.0  ;;  %v294_v12 = vmul.f32 %v796_v35, %v1071_v27  ;;  %v295_v13 = vmul.f32 %v797_v36, %v1071_v27 }
  0x23   : > { %v1120_v14 = vadd.f32 %v1081_v47, %v279_v55  ;;  %v346_v15 = vmin.f32 %v1097_v63, 20.0  ;;  %v296_v16 = vmul.f32 %v800_v39, %v1071_v27  ;;  %v297_v17 = vmul.f32 %v801_v40, %v1071_v27 }
  0x24   : > { %v298_v18 = vmul.f32 %v804_v41, %v1071_v27  ;;  %v347_v19 = vmin.f32 %v1103_v3, 20.0  ;;  %v299_v20 = vmul.f32 %v805_v43, %v1071_v27  ;;  %v300_v21 = vmul.f32 %v808_v44, %v1071_v27 }
  0x25   : > { %v1130_v22 = vadd.f32 %v1081_v47, %v280_v56  ;;  %v348_v23 = vmin.f32 %v1109_v7, 20.0  ;;  %v301_v24 = vmul.f32 %v809_v45, %v1071_v27  ;;  %v302_v25 = vmul.f32 %v812_v48, %v1071_v27 }
  0x26   : > { %v349_v26 = vmin.f32 %v1114_v10, 20.0  ;;  %v377_v28 = vmul.f32 1.442695, %v345_v11  ;;  %v303_v29 = vmul.f32 %v813_v49, %v1071_v27  ;;  %v1138_v30 = vadd.f32 %v1081_v47, %v281_v57 }
  0x27   : > { %v350_v31 = vmin.f32 %v1120_v14, 20.0  ;;  %v379_v32 = vmul.f32 1.442695, %v346_v15  ;;  %v304_v33 = vmul.f32 %v816_v50, %v1071_v27  ;;  %v305_v34 = vmul.f32 %v817_v52, %v1071_v27 }
  0x28   : > { %v1144_v35 = vadd.f32 %v1081_v47, %v282_v58  ;;  %v381_v36 = vmul.f32 1.442695, %v347_v19  ;;  %v1147_v37 = vadd.f32 %v1081_v47, %v283_v60  ;;  %v1150_v38 = vadd.f32 %v1081_v47, %v284_v61 }
  0x29   : > { %v351_v39 = vmin.f32 %v1130_v22, 20.0  ;;  %v383_v40 = vmul.f32 1.442695, %v348_v23  ;;  %v1154_v41 = vadd.f32 %v1081_v47, %v285_v62  ;;  %v1157_v42 = vadd.f32 %v1081_v47, %v286_v0 }
  0x2a   : > { %857 = vpow2.f32 %v377_v28  ;;  %v385_v27 = vmul.f32 1.442695, %v349_v26  ;;  %v1160_v43 = vadd.f32 %v1081_v47, %v287_v1  ;;  %v352_v44 = vmin.f32 %v1138_v30, 20.0 }
  0x2b   : > { %859 = vpow2.f32 %v379_v32  ;;  %v387_v45 = vmul.f32 1.442695, %v350_v31  ;;  %v1164_v46 = vadd.f32 %v1081_v47, %v288_v2  ;;  %v1167_v48 = vadd.f32 %v1081_v47, %v289_v4 }
  0x2c   : > { %v1170_v49 = vadd.f32 %v1081_v47, %v290_v5  ;;  %861 = vpow2.f32 %v381_v36  ;;  %v1173_v50 = vadd.f32 %v1081_v47, %v291_v6  ;;  %v353_v51 = vmin.f32 %v1144_v35, 20.0 }
  0x2d   : > { %863 = vpow2.f32 %v383_v40  ;;  %v389_v52 = vmul.f32 1.442695, %v351_v39  ;;  %v1177_v53 = vadd.f32 %v1081_v47, %v292_v8  ;;  %v1180_v54 = vadd.f32 %v1081_v47, %v293_v9 }
  0x2e   : > { %v1183_v55 = vadd.f32 %v1081_v47, %v294_v12  ;;  %865 = vpow2.f32 %v385_v27  ;;  %v1186_v56 = vadd.f32 %v1081_v47, %v295_v13  ;;  %v354_v57 = vmin.f32 %v1147_v37, 20.0 }
  0x2f   : > { %867 = vpow2.f32 %v387_v45  ;;  %v391_v58 = vmul.f32 1.442695, %v352_v44  ;;  %v1190_v60 = vadd.f32 %v1081_v47, %v296_v16  ;;  %v1193_v61 = vadd.f32 %v1081_v47, %v297_v17 }
  0x30   : > { %1445 = vst [vmem:[#allocation2_spill] sm:$0xff] %v1183_v55  ;;  %1446 = vst [vmem:[#allocation3_spill] sm:$0xff] %v1186_v56  ;;  %v1196_v62 = vadd.f32 %v1081_v47, %v298_v18  ;;  %v1199_v0 = vadd.f32 %v1081_v47, %v299_v20  ;;  %v1202_v1 = vadd.f32 %v1081_v47, %v300_v21  ;;  %v355_v2 = vmin.f32 %v1150_v38, 20.0 }
  0x31   : > { %1447 = vst [vmem:[#allocation4_spill] sm:$0xff] %v1190_v60  ;;  %1448 = vst [vmem:[#allocation5_spill] sm:$0xff] %v1193_v61  ;;  %869 = vpow2.f32 %v389_v52  ;;  %v393_v4 = vmul.f32 1.442695, %v353_v51  ;;  %v1206_v5 = vadd.f32 %v1081_v47, %v301_v24  ;;  %v1209_v6 = vadd.f32 %v1081_v47, %v302_v25 }
  0x32   : > { %1449 = vst [vmem:[#allocation6_spill] sm:$0xff] %v1196_v62  ;;  %1450 = vst [vmem:[#allocation7_spill] sm:$0xff] %v1199_v0  ;;  %v1212_v8 = vadd.f32 %v1081_v47, %v303_v29  ;;  %v1215_v9 = vadd.f32 %v1081_v47, %v304_v33  ;;  %v1218_v11 = vadd.f32 %v1081_v47, %v305_v34  ;;  %v356_v12 = vmin.f32 %v1154_v41, 20.0 }
  0x33   : > { %1451 = vst [vmem:[#allocation8_spill] sm:$0xff] %v1202_v1  ;;  %1452 = vst [vmem:[#allocation9_spill] sm:$0xff] %v1206_v5  ;;  %871 = vpow2.f32 %v391_v58  ;;  %v395_v13 = vmul.f32 1.442695, %v354_v57  ;;  %v357_v16 = vmin.f32 %v1157_v42, 20.0  ;;  %v358_v17 = vmin.f32 %v1160_v43, 20.0 }
  0x34   : > { %1453 = vst [vmem:[#allocation10_spill] sm:$0xff] %v1209_v6  ;;  %1454 = vst [vmem:[#allocation11_spill] sm:$0xff] %v1212_v8  ;;  %v858_v15 = vpop.eup %857  ;;  %v359_v18 = vmin.f32 %v1164_v46, 20.0  ;;  %v360_v19 = vmin.f32 %v1167_v48, 20.0  ;;  %v361_v21 = vmin.f32 %v1170_v49, 20.0  ;;  %v362_v23 = vmin.f32 %v1173_v50, 20.0 }
  0x35   : > { %1455 = vst [vmem:[#allocation12_spill] sm:$0xff] %v1215_v9  ;;  %1456 = vst [vmem:[#allocation13_spill] sm:$0xff] %v1218_v11  ;;  %v860_v20 = vpop.eup %859  ;;  %873 = vpow2.f32 %v393_v4  ;;  %v397_v47 = vmul.f32 1.442695, %v355_v2  ;;  %v363_v25 = vmin.f32 %v1177_v53, 20.0  ;;  %v364_v26 = vmin.f32 %v1180_v54, 20.0 }
  0x36   : > { %v862_v24 = vpop.eup %861  ;;  %v365_v28 = vmin.f32 %v1183_v55, 20.0  ;;  %v366_v29 = vmin.f32 %v1186_v56, 20.0  ;;  %875 = vpow2.f32 %v395_v13  ;;  %v399_v33 = vmul.f32 1.442695, %v356_v12 }
  0x37   : > { %v864_v31 = vpop.eup %863  ;;  %v441_v34 = vadd.f32 2.0, %v858_v15  ;;  %v368_v39 = vmin.f32 %v1193_v61, 20.0  ;;  %v369_v40 = vmin.f32 %v1196_v62, 20.0  ;;  %v442_v44 = vadd.f32 2.0, %v860_v20 }
  0x38   : > { %v866_v36 = vpop.eup %865  ;;  %877 = vpow2.f32 %v397_v47  ;;  %v401_v52 = vmul.f32 1.442695, %v357_v16  ;;  %v443_v57 = vadd.f32 2.0, %v862_v24  ;;  %v372_v58 = vmin.f32 %v1206_v5, 20.0 }
  0x39   : > { %v868_v45 = vpop.eup %867  ;;  %v403_v4 = vmul.f32 1.442695, %v358_v17  ;;  %v444_v12 = vadd.f32 2.0, %v864_v31  ;;  %879 = vpow2.f32 %v399_v33  ;;  %v405_v32 = vmul.f32 1.442695, %v359_v18 }
  0x3a   : > { %v445_v61 = vadd.f32 2.0, %v866_v36  ;;  %v1238_v62 = vmul.f32 %v858_v15, %v441_v34  ;;  %v374_v27 = vmin.f32 %v1212_v8, 20.0  ;;  %v407_v56 = vmul.f32 1.442695, %v360_v19 }
  0x3b   : > { %v870_v13 = vpop.eup %869  ;;  %v446_v55 = vadd.f32 2.0, %v868_v45  ;;  %v1241_v51 = vmul.f32 %v860_v20, %v442_v44  ;;  %881 = vpow2.f32 %v401_v52  ;;  %v409_v5 = vmul.f32 1.442695, %v361_v21 }
  0x3c   : > { %v1244_v2 = vmul.f32 %v862_v24, %v443_v57  ;;  %883 = vpow2.f32 %v403_v4  ;;  %v411_v17 = vmul.f32 1.442695, %v362_v23  ;;  %v447_v33 = vadd.f32 2.0, %v870_v13 }
  0x3d   : > { %v872_v16 = vpop.eup %871  ;;  %v1246_v18 = vmul.f32 %v864_v31, %v444_v12  ;;  %885 = vpow2.f32 %v405_v32  ;;  %v1249_v19 = vmul.f32 %v866_v36, %v445_v61  ;;  %v537_v20 = vadd.f32 2.0, %v1238_v62 }
  0x3e   : > { %887 = vpow2.f32 %v407_v56  ;;  %v448_v44 = vadd.f32 2.0, %v872_v16  ;;  %v1252_v47 = vmul.f32 %v868_v45, %v446_v55  ;;  %v538_v21 = vadd.f32 2.0, %v1241_v51 }
  0x3f   : > { %v874_v15 = vpop.eup %873  ;;  %889 = vpow2.f32 %v409_v5  ;;  %v413_v23 = vmul.f32 1.442695, %v363_v25  ;;  %v415_v52 = vmul.f32 1.442695, %v364_v26  ;;  %v539_v31 = vadd.f32 2.0, %v1244_v2 }
  0x40   : > { %v876_v24 = vpop.eup %875  ;;  %891 = vpow2.f32 %v411_v17  ;;  %v449_v57 = vadd.f32 2.0, %v874_v15  ;;  %v1256_v4 = vmul.f32 %v870_v13, %v447_v33  ;;  %v540_v61 = vadd.f32 2.0, %v1246_v18 }
  0x41   : > { %v417_v36 = vmul.f32 1.442695, %v365_v28  ;;  %v419_v56 = vmul.f32 1.442695, %v366_v29  ;;  %v541_v55 = vadd.f32 2.0, %v1249_v19  ;;  %893 = vrcp.f32 %v537_v20 }
  0x42   : > { %v878_v32 = vpop.eup %877  ;;  %v450_v45 = vadd.f32 2.0, %v876_v24  ;;  %v1260_v12 = vmul.f32 %v872_v16, %v448_v44  ;;  %v542_v5 = vadd.f32 2.0, %v1252_v47  ;;  %895 = vrcp.f32 %v538_v21 }
  0x43   : > { %v880_v25 = vpop.eup %879  ;;  %v1457_v26 = vmin.f32 %v1190_v60, 20.0  ;;  %v1265_v13 = vmul.f32 1.442695, %v368_v39  ;;  %v1267_v33 = vmul.f32 1.442695, %v369_v40  ;;  %897 = vrcp.f32 %v539_v31 }
  0x44   : > { %v451_v28 = vadd.f32 2.0, %v878_v32  ;;  %v1269_v29 = vmul.f32 %v874_v15, %v449_v57  ;;  %v543_v20 = vadd.f32 2.0, %v1256_v4  ;;  %899 = vrcp.f32 %v540_v61 }
  0x45   : > { %v421_v17 = vmul.f32 1.442695, %v1457_v26  ;;  %v882_v16 = vpop.eup %881  ;;  %v1458_v44 = vmin.f32 %v1199_v0, 20.0  ;;  %v1459_v21 = vmin.f32 %v1202_v1, 20.0  ;;  %v1280_v39 = vmul.f32 1.442695, %v372_v58 }
  0x46   : > { %901 = vrcp.f32 %v541_v55  ;;  %v884_v40 = vpop.eup %883  ;;  %v452_v31 = vadd.f32 2.0, %v880_v25  ;;  %v1282_v26 = vmul.f32 %v876_v24, %v450_v45  ;;  %v544_v15 = vadd.f32 2.0, %v1260_v12 }
  0x47   : > { %v1274_v34 = vmul.f32 1.442695, %v1458_v44  ;;  %v1278_v8 = vmul.f32 1.442695, %v1459_v21  ;;  %903 = vrcp.f32 %v542_v5  ;;  %v886_v57 = vpop.eup %885  ;;  %v1460_v61 = vmin.f32 %v1209_v6, 20.0 }
  0x48   : > { %905 = vpow2.f32 %v413_v23  ;;  %v1289_v0 = vmul.f32 1.442695, %v374_v27  ;;  %v505_v58 = vmul.f32 %v1238_v62, %v1091_v59  ;;  %v888_v21 = vpop.eup %887  ;;  %v453_v55 = vadd.f32 2.0, %v882_v16 }
  0x49   : > { %v1287_v44 = vmul.f32 1.442695, %v1460_v61  ;;  %v1293_v1 = vmul.f32 %v878_v32, %v451_v28  ;;  %v545_v24 = vadd.f32 2.0, %v1269_v29  ;;  %907 = vrcp.f32 %v543_v20  ;;  %v890_v45 = vpop.eup %889 }
  0x4a   : > { %909 = vpow2.f32 %v415_v52  ;;  %v1461_v23 = vmin.f32 %v1215_v9, 20.0  ;;  %v506_v27 = vmul.f32 %v1241_v51, %v1097_v63  ;;  %v507_v61 = vmul.f32 %v1244_v2, %v1103_v3  ;;  %v892_v59 = vpop.eup %891 }
  0x4b   : > { %v454_v62 = vadd.f32 2.0, %v884_v40  ;;  %v1304_v6 = vmul.f32 %v880_v25, %v452_v31  ;;  %v546_v32 = vadd.f32 2.0, %v1282_v26  ;;  %911 = vrcp.f32 %v544_v15  ;;  %v894_v28 = vpop.eup %893 }
  0x4c   : > { %v1298_v5 = vmul.f32 1.442695, %v1461_v23  ;;  %913 = vpow2.f32 %v417_v36  ;;  %v1462_v52 = vmin.f32 %v1218_v11, 20.0  ;;  %v455_v23 = vadd.f32 2.0, %v886_v57  ;;  %v896_v51 = vpop.eup %895 }
  0x4d   : > { %v508_v63 = vmul.f32 %v1246_v18, %v1109_v7  ;;  %v1313_v9 = vmul.f32 %v882_v16, %v453_v55  ;;  %v547_v3 = vadd.f32 2.0, %v1293_v1  ;;  %915 = vrcp.f32 %v545_v24  ;;  %v898_v25 = vpop.eup %897 }
  0x4e   : > { %v1309_v20 = vmul.f32 1.442695, %v1462_v52  ;;  %v601_v2 = vmul.f32 %v894_v28, %v505_v58  ;;  %917 = vpow2.f32 %v419_v56  ;;  %v456_v31 = vadd.f32 2.0, %v888_v21  ;;  %v900_v52 = vpop.eup %899 }
  0x4f   : > { %v509_v36 = vmul.f32 %v1249_v19, %v1114_v10  ;;  %v602_v15 = vmul.f32 %v896_v51, %v506_v27  ;;  %v1318_v11 = vmul.f32 %v884_v40, %v454_v62  ;;  %v548_v60 = vadd.f32 2.0, %v1304_v6 }
  0x50   : > { %919 = vrcp.f32 %v546_v32  ;;  %v603_v7 = vmul.f32 %v898_v25, %v507_v61  ;;  %v902_v18 = vpop.eup %901  ;;  %v510_v16 = vmul.f32 %v1252_v47, %v1120_v14  ;;  %v604_v58 = vmul.f32 %v900_v52, %v508_v63 }
  0x51   : > { %921 = vpow2.f32 %v421_v17  ;;  %v633_v55 = vadd.f32 %v602_v15, %v601_v2  ;;  %v904_v56 = vpop.eup %903  ;;  %v457_v24 = vadd.f32 2.0, %v890_v45  ;;  %v1323_v28 = vmul.f32 %v886_v57, %v455_v23 }
  0x52   : > { %v549_v10 = vadd.f32 2.0, %v1313_v9  ;;  %923 = vrcp.f32 %v547_v3  ;;  %v906_v19 = vpop.eup %905  ;;  %v511_v40 = vmul.f32 %v1256_v4, %v1130_v22  ;;  %v605_v27 = vmul.f32 %v902_v18, %v509_v36 }
  0x53   : > { %925 = vpow2.f32 %v1265_v13  ;;  %v634_v17 = vadd.f32 %v633_v55, %v603_v7  ;;  %v908_v61 = vpop.eup %907  ;;  %v458_v62 = vadd.f32 2.0, %v892_v59  ;;  %v1329_v14 = vmul.f32 %v888_v21, %v456_v31 }
  0x54   : > { %v550_v47 = vadd.f32 2.0, %v1318_v11  ;;  %927 = vrcp.f32 %v548_v60  ;;  %v910_v57 = vpop.eup %909  ;;  %v512_v32 = vmul.f32 %v1260_v12, %v1138_v30  ;;  %v606_v23 = vmul.f32 %v904_v56, %v510_v16 }
  0x55   : > { %929 = vpow2.f32 %v1267_v33  ;;  %v635_v13 = vadd.f32 %v634_v17, %v604_v58  ;;  %v912_v63 = vpop.eup %911  ;;  %v459_v51 = vadd.f32 2.0, %v906_v19  ;;  %v1335_v22 = vmul.f32 %v890_v45, %v457_v24 }
  0x56   : > { %v551_v4 = vadd.f32 2.0, %v1323_v28  ;;  %931 = vrcp.f32 %v549_v10  ;;  %v914_v21 = vpop.eup %913  ;;  %v513_v60 = vmul.f32 %v1269_v29, %v1144_v35  ;;  %v607_v3 = vmul.f32 %v908_v61, %v511_v40 }
  0x57   : > { %933 = vpow2.f32 %v1274_v34  ;;  %v636_v33 = vadd.f32 %v635_v13, %v605_v27  ;;  %v916_v2 = vpop.eup %915  ;;  %v460_v25 = vadd.f32 2.0, %v910_v57  ;;  %v1341_v30 = vmul.f32 %v892_v59, %v458_v62 }
  0x58   : > { %v552_v12 = vadd.f32 2.0, %v1329_v14  ;;  %935 = vrcp.f32 %v550_v47  ;;  %v918_v45 = vpop.eup %917  ;;  %v514_v31 = vmul.f32 %v1282_v26, %v1147_v37  ;;  %v608_v36 = vmul.f32 %v912_v63, %v512_v32 }
  0x59   : > { %937 = vpow2.f32 %v1278_v8  ;;  %v637_v34 = vadd.f32 %v636_v33, %v606_v23  ;;  %v461_v52 = vadd.f32 2.0, %v914_v21  ;;  %v1347_v35 = vmul.f32 %v906_v19, %v459_v51 }
  0x5a   : > { %v920_v15 = vpop.eup %919  ;;  %v553_v29 = vadd.f32 2.0, %v1335_v22  ;;  %939 = vrcp.f32 %v551_v4  ;;  %v515_v7 = vmul.f32 %v1293_v1, %v1150_v38  ;;  %v609_v18 = vmul.f32 %v916_v2, %v513_v60 }
  0x5b   : > { %v922_v59 = vpop.eup %921  ;;  %941 = vpow2.f32 %v1280_v39  ;;  %v638_v8 = vadd.f32 %v637_v34, %v607_v3  ;;  %v462_v58 = vadd.f32 2.0, %v918_v45  ;;  %v1353_v37 = vmul.f32 %v910_v57, %v460_v25 }
  0x5c   : > { %v924_v16 = vpop.eup %923  ;;  %v554_v26 = vadd.f32 2.0, %v1341_v30  ;;  %943 = vrcp.f32 %v552_v12  ;;  %v516_v56 = vmul.f32 %v1304_v6, %v1154_v41  ;;  %v610_v24 = vmul.f32 %v920_v15, %v514_v31 }
  0x5d   : > { %v926_v55 = vpop.eup %925  ;;  %945 = vpow2.f32 %v1287_v44  ;;  %v639_v39 = vadd.f32 %v638_v8, %v608_v36  ;;  %v463_v19 = vadd.f32 2.0, %v922_v59  ;;  %v1359_v38 = vmul.f32 %v914_v21, %v461_v52 }
  0x5e   : > { %v928_v10 = vpop.eup %927  ;;  %v555_v1 = vadd.f32 2.0, %v1347_v35  ;;  %947 = vrcp.f32 %v553_v29  ;;  %v517_v27 = vmul.f32 %v1313_v9, %v1157_v42  ;;  %v611_v17 = vmul.f32 %v924_v16, %v515_v7 }
  0x5f   : > { %v930_v40 = vpop.eup %929  ;;  %949 = vpow2.f32 %v1289_v0  ;;  %v640_v44 = vadd.f32 %v639_v39, %v609_v18  ;;  %v464_v62 = vadd.f32 2.0, %v926_v55  ;;  %v1365_v41 = vmul.f32 %v918_v45, %v462_v58 }
  0x60   : > { %v932_v61 = vpop.eup %931  ;;  %v556_v6 = vadd.f32 2.0, %v1353_v37  ;;  %951 = vrcp.f32 %v554_v26  ;;  %v518_v57 = vmul.f32 %v1318_v11, %v1160_v43  ;;  %v612_v32 = vmul.f32 %v928_v10, %v516_v56 }
  0x61   : > { %v934_v47 = vpop.eup %933  ;;  %953 = vpow2.f32 %v1298_v5  ;;  %v641_v0 = vadd.f32 %v640_v44, %v610_v24  ;;  %v465_v13 = vadd.f32 2.0, %v930_v40  ;;  %v1371_v42 = vmul.f32 %v922_v59, %v463_v19 }
  0x62   : > { %v936_v23 = vpop.eup %935  ;;  %v557_v9 = vadd.f32 2.0, %v1359_v38  ;;  %955 = vrcp.f32 %v555_v1  ;;  %v519_v51 = vmul.f32 %v1323_v28, %v1164_v46  ;;  %v613_v4 = vmul.f32 %v932_v61, %v517_v27 }
  0x63   : > { %v938_v63 = vpop.eup %937  ;;  %957 = vpow2.f32 %v1309_v20  ;;  %v642_v5 = vadd.f32 %v641_v0, %v611_v17  ;;  %v466_v60 = vadd.f32 2.0, %v934_v47  ;;  %v1377_v43 = vmul.f32 %v926_v55, %v464_v62 }
  0x64   : > { %v940_v21 = vpop.eup %939  ;;  %v558_v11 = vadd.f32 2.0, %v1365_v41  ;;  %959 = vrcp.f32 %v556_v6  ;;  %v520_v33 = vmul.f32 %v1329_v14, %v1167_v48  ;;  %v614_v2 = vmul.f32 %v936_v23, %v518_v57  ;;  %v1464_v23 = vld [vmem:[#allocation3_spill] sm:$0xff] }
  0x65   : > { %v942_v3 = vpop.eup %941  ;;  %v643_v25 = vadd.f32 %v642_v5, %v612_v32  ;;  %v467_v20 = vadd.f32 2.0, %v938_v63  ;;  %v1382_v45 = vmul.f32 %v930_v40, %v465_v13  ;;  %v559_v46 = vadd.f32 2.0, %v1371_v42 }
  0x66   : > { %v944_v12 = vpop.eup %943  ;;  %961 = vrcp.f32 %v557_v9  ;;  %v521_v31 = vmul.f32 %v1335_v22, %v1170_v49  ;;  %v615_v36 = vmul.f32 %v940_v21, %v519_v51  ;;  %v468_v52 = vadd.f32 2.0, %v942_v3 }
  0x67   : > { %v946_v28 = vpop.eup %945  ;;  %v644_v34 = vadd.f32 %v643_v25, %v613_v4  ;;  %v1387_v29 = vmul.f32 %v934_v47, %v466_v60  ;;  %v560_v48 = vadd.f32 2.0, %v1377_v43  ;;  %963 = vrcp.f32 %v558_v11  ;;  %v1465_v4 = vld [vmem:[#allocation4_spill] sm:$0xff] }
  0x68   : > { %v948_v15 = vpop.eup %947  ;;  %v522_v59 = vmul.f32 %v1341_v30, %v1173_v50  ;;  %v616_v7 = vmul.f32 %v944_v12, %v520_v33  ;;  %v469_v16 = vadd.f32 2.0, %v946_v28  ;;  %v499_v58 = vmul.f32 %v938_v63, %v467_v20  ;;  %v1466_v33 = vld [vmem:[#allocation5_spill] sm:$0xff] }
  0x69   : > { %v950_v14 = vpop.eup %949  ;;  %v645_v18 = vadd.f32 %v644_v34, %v614_v2  ;;  %v561_v49 = vadd.f32 2.0, %v1382_v45  ;;  %965 = vrcp.f32 %v559_v46  ;;  %v523_v26 = vmul.f32 %v1347_v35, %v1177_v53  ;;  %v1463_v53 = vld [vmem:[#allocation2_spill] sm:$0xff] }
  0x6a   : > { %v952_v8 = vpop.eup %951  ;;  %v617_v55 = vmul.f32 %v948_v15, %v521_v31  ;;  %v470_v39 = vadd.f32 2.0, %v950_v14  ;;  %v500_v10 = vmul.f32 %v942_v3, %v468_v52  ;;  %v562_v19 = vadd.f32 2.0, %v1387_v29  ;;  %v1467_v46 = vld [vmem:[#allocation6_spill] sm:$0xff]  ;;  %v1468_v15 = vld [vmem:[#allocation7_spill] sm:$0xff] }
  0x6b   : > { %v954_v22 = vpop.eup %953  ;;  %v646_v56 = vadd.f32 %v645_v18, %v615_v36  ;;  %967 = vrcp.f32 %v560_v48  ;;  %v524_v30 = vmul.f32 %v1353_v37, %v1180_v54  ;;  %v618_v1 = vmul.f32 %v952_v8, %v522_v59 }
  0x6c   : > { %v956_v24 = vpop.eup %955  ;;  %v471_v17 = vadd.f32 2.0, %v954_v22  ;;  %v501_v44 = vmul.f32 %v946_v28, %v469_v16  ;;  %v563_v61 = vadd.f32 2.0, %v499_v58  ;;  %969 = vrcp.f32 %v561_v49  ;;  %v1470_v49 = vld [vmem:[#allocation9_spill] sm:$0xff] }
  0x6d   : > { %v958_v50 = vpop.eup %957  ;;  %v647_v40 = vadd.f32 %v646_v56, %v616_v7  ;;  %v525_v35 = vmul.f32 %v1359_v38, %v1463_v53  ;;  %v619_v62 = vmul.f32 %v956_v24, %v523_v26  ;;  %v502_v32 = vmul.f32 %v950_v14, %v470_v39  ;;  %v1471_v56 = vld [vmem:[#allocation10_spill] sm:$0xff] }
  0x6e   : > { %v960_v27 = vpop.eup %959  ;;  %v472_v57 = vadd.f32 2.0, %v958_v50  ;;  %v564_v0 = vadd.f32 2.0, %v500_v10  ;;  %971 = vrcp.f32 %v562_v19  ;;  %v526_v54 = vmul.f32 %v1365_v41, %v1464_v23 }
  0x6f   : > { %v648_v6 = vadd.f32 %v647_v40, %v617_v55  ;;  %v620_v37 = vmul.f32 %v960_v27, %v524_v30  ;;  %v503_v63 = vmul.f32 %v954_v22, %v471_v17  ;;  %v565_v51 = vadd.f32 2.0, %v501_v44 }
  0x70   : > { %v962_v47 = vpop.eup %961  ;;  %973 = vrcp.f32 %v563_v61  ;;  %v527_v5 = vmul.f32 %v1371_v42, %v1465_v4  ;;  %v504_v11 = vmul.f32 %v958_v50, %v472_v57  ;;  %v566_v3 = vadd.f32 2.0, %v502_v32  ;;  %v1472_v50 = vld [vmem:[#allocation11_spill] sm:$0xff] }
  0x71   : > { %v649_v13 = vadd.f32 %v648_v6, %v618_v1  ;;  %v964_v9 = vpop.eup %963  ;;  %v621_v38 = vmul.f32 %v962_v47, %v525_v35  ;;  %975 = vrcp.f32 %v564_v0  ;;  %v528_v2 = vmul.f32 %v1377_v43, %v1466_v33  ;;  %v1469_v43 = vld [vmem:[#allocation8_spill] sm:$0xff] }
  0x72   : > { %v622_v25 = vmul.f32 %v964_v9, %v526_v54  ;;  %v567_v20 = vadd.f32 2.0, %v503_v63  ;;  %977 = vrcp.f32 %v565_v51  ;;  %v529_v28 = vmul.f32 %v1382_v45, %v1467_v46 }
  0x73   : > { %v650_v21 = vadd.f32 %v649_v13, %v619_v62  ;;  %v966_v60 = vpop.eup %965  ;;  %v568_v34 = vadd.f32 2.0, %v504_v11  ;;  %979 = vrcp.f32 %v566_v3  ;;  %v530_v52 = vmul.f32 %v1387_v29, %v1468_v15  ;;  %v1474_v62 = vld [vmem:[#allocation13_spill] sm:$0xff] }
  0x74   : > { %v623_v31 = vmul.f32 %v966_v60, %v527_v5  ;;  %981 = vrcp.f32 %v567_v20  ;;  %v531_v7 = vmul.f32 %v499_v58, %v1469_v43  ;;  %v532_v45 = vmul.f32 %v500_v10, %v1470_v49  ;;  %v1473_v58 = vld [vmem:[#allocation12_spill] sm:$0xff] }
  0x75   : > { %v651_v41 = vadd.f32 %v650_v21, %v620_v37  ;;  %v968_v12 = vpop.eup %967  ;;  %983 = vrcp.f32 %v568_v34  ;;  %v533_v24 = vmul.f32 %v501_v44, %v1471_v56  ;;  %v534_v30 = vmul.f32 %v502_v32, %v1472_v50 }
  0x76   : > { %v970_v42 = vpop.eup %969  ;;  %v624_v48 = vmul.f32 %v968_v12, %v528_v2  ;;  %v535_v17 = vmul.f32 %v503_v63, %v1473_v58  ;;  %v536_v10 = vmul.f32 %v504_v11, %v1474_v62 }
  0x77   : > { %v652_v36 = vadd.f32 %v651_v41, %v621_v38  ;;  %v625_v18 = vmul.f32 %v970_v42, %v529_v28 }
  0x78   : > { %v972_v59 = vpop.eup %971 }
  0x79   : > { %v653_v14 = vadd.f32 %v652_v36, %v622_v25  ;;  %v626_v22 = vmul.f32 %v972_v59, %v530_v52 }
  0x7a   : > { %v974_v16 = vpop.eup %973 }
  0x7b   : > { %v654_v8 = vadd.f32 %v653_v14, %v623_v31  ;;  %v976_v55 = vpop.eup %975  ;;  %v627_v39 = vmul.f32 %v974_v16, %v531_v7 }
  0x7c   : > { %v978_v29 = vpop.eup %977  ;;  %v628_v1 = vmul.f32 %v976_v55, %v532_v45 }
  0x7d   : > { %v655_v26 = vadd.f32 %v654_v8, %v624_v48  ;;  %v980_v27 = vpop.eup %979  ;;  %v629_v61 = vmul.f32 %v978_v29, %v533_v24 }
  0x7e   : > { %v982_v35 = vpop.eup %981  ;;  %v630_v6 = vmul.f32 %v980_v27, %v534_v30 }
  0x7f   : > { %v656_v19 = vadd.f32 %v655_v26, %v625_v18  ;;  %v984_v57 = vpop.eup %983  ;;  %v631_v44 = vmul.f32 %v982_v35, %v535_v17 }
  0x80   : > { %v632_v23 = vmul.f32 %v984_v57, %v536_v10 }
  0x81   : > { %v657_v40 = vadd.f32 %v656_v19, %v626_v22 }
  0x83   : > { %v658_v53 = vadd.f32 %v657_v40, %v627_v39 }
  0x85   : > { %v659_v47 = vadd.f32 %v658_v53, %v628_v1 }
  0x87   : > { %v660_v0 = vadd.f32 %v659_v47, %v629_v61 }
  0x89   : > { %v661_v54 = vadd.f32 %v660_v0, %v630_v6 }
  0x8b   : > { %v662_v37 = vadd.f32 %v661_v54, %v631_v44 }
  0x8d   : > { %v663_v32 = vadd.f32 %v662_v37, %v632_v23 }
  0x8f   : > { %v664_v13 = vrot.slane %v663_v32, 4 }
  0x91   : > { %v665_v9 = vadd.f32 %v664_v13, %v663_v32 }
  0x93   : > { %v666_v51 = vrot.slane %v665_v9, 2 }
  0x95   : > { %v667_v4 = vadd.f32 %v666_v51, %v665_v9 }
  0x97   : > { %v668_v63 = vrot.slane %v667_v4, 1 }
  0x99   : > { %v669_v5 = vadd.f32 %v668_v63, %v667_v4 }
  0x9b   : > { %670 = vst [vmem:[%s202_s26] sm:$0x1] %v669_v5 }
  0x9c PF: > { %s13_s14 = sadd.s32 1, %s1007_s14   ;;  %s1475_s12 = smov %s1003_s13 }
  0x9d   : > { %p10_p5 = scmp.ge.s32.totalorder %s13_s14, 4   ;;  %s1476_s13 = smov %s1478_s15 }
  0x9f   :  { %12 = sbr.rel (!%p10_p5) target bundleno = 2 (0x2), region = 62 }

// kernel: mbconv_forward.6
= control target key start
LH: loop header
LB: loop body
LE: loop exit
PB: predicated region body
PF: predicated region fallthrough
CT: control target
= control target key end

     0   :  { %s2084_s24 = smov 0   ;;  %s2086_s25 = smov 0   ;;  %s2493_s0 = inlined_call_operand.vmem [shape: bf16[2,256,128], index: 0, kind: input, shape index: {}]   ;;  %s2494_s1 = inlined_call_operand.vmem [shape: f32[1,128], index: 1, kind: input, shape index: {}]   ;;  %s2495_s2 = inlined_call_operand.vmem [shape: f32[1,128], index: 2, kind: input, shape index: {}]   ;;  %s2496_s3 = inlined_call_operand.vmem [shape: f32[2,1,128], index: 3, kind: input, shape index: {}]   ;;  %s2497_s4 = inlined_call_operand.vmem [shape: bf16[128,128], index: 4, kind: input, shape index: {}]   ;;  %s2498_s5 = inlined_call_operand.vmem [shape: bf16[2,256,128], index: 5, kind: output, shape index: {0}]   ;;  %s2499_s6 = inlined_call_operand.vmem [shape: f32[2,1,1,128], index: 6, kind: output, shape index: {1}]   ;;  %s2500_s7 = inlined_call_operand.vmem [shape: f32[2,1,1,128], index: 7, kind: output, shape index: {2}]  }
   0x1   :  { %s2088_s26 = smov 0  }
   0x2 LB: > { %s30_s27 = sadd.s32 1, %s2038_s25  ;;  %p1514_p0 = scmp.ge.s32.totalorder %s2042_s26, 1  ;;  %s2042_s26 = sphi %s2088_s26, %s18_s26   ;;  %s2038_s25 = sphi %s2086_s25, %s2502_s25   ;;  %s2034_s24 = sphi %s2084_s24, %s2501_s24  }
   0x3   : > { %p32_p1 = scmp.ge.s32.totalorder %s30_s27, 2  ;;  %p275_p2 = scmp.lt.s32.totalorder %s2042_s26, 3 }
   0x5   : > { %s2504_s27 = smov (%p32_p1, %s30_s27), 0  ;;  %p276_p3 = pnand %p1514_p0, %p275_p2 }
   0x6   : > { %v1884_v0 = vld [vmem:[%s2497_s4] sm:$0xff] (!%p276_p3)   ;;  %p331_p4 = scmp.lt.s32.totalorder (!%p276_p3), %s2034_s24, 1  ;;  %v1885_v1 = vld [vmem:[%s2497_s4 + $0x8] sm:$0xff] (!%p276_p3)   ;;  %v1886_v2 = vld [vmem:[%s2497_s4 + $0x10] sm:$0xff] (!%p276_p3)  }
   0x7   : > { %279 = sbr.rel (%p276_p3) target bundleno = 383 (0x17f), region = 40  ;;  %1796 = vmatprep.subr.bf16.mxu0 (!%p276_p3), %v1884_v0  ;;  %1844 = vmatprep.subr.bf16.mxu1 (!%p276_p3), %v1884_v0  ;;  %v1887_v3 = vld [vmem:[%s2497_s4 + $0x18] sm:$0xff] (!%p276_p3)   ;;  %v2128_v5 = vld [vmem:[%s2494_s1] ss:$0 sm:$0xff] (!%p276_p3)  ;;  %v1889_v33 = vld [vmem:[%s2497_s4 + $0x28] sm:$0xff] (!%p276_p3)  }
   0x8   : > { %1797 = vmatpush3.bf16.msra.mxu0 (!%p276_p3), %v1884_v0  ;;  %1852 = vmatpush3.bf16.msra.mxu1 (!%p276_p3), %v1884_v0  ;;  %v2135_v10 = vld [vmem:[%s2495_s2] ss:$0 sm:$0xff] (!%p276_p3)  ;;  %v1890_v56 = vld [vmem:[%s2497_s4 + $0x30] sm:$0xff] (!%p276_p3)  }
   0x9   : > { %1798 = vmatprep.subr.bf16.mxu0 (!%p276_p3), %v1885_v1  ;;  %1845 = vmatprep.subr.bf16.mxu1 (!%p276_p3), %v1885_v1  ;;  %v1888_v20 = vld [vmem:[%s2497_s4 + $0x20] sm:$0xff] (!%p276_p3)  }
   0xc   : > { %1799 = vmatpush3.bf16.msra.mxu0 (!%p276_p3), %v1885_v1  ;;  %1853 = vmatpush3.bf16.msra.mxu1 (!%p276_p3), %v1885_v1 }
   0xd   : > { %1800 = vmatprep.subr.bf16.mxu0 (!%p276_p3), %v1886_v2  ;;  %1846 = vmatprep.subr.bf16.mxu1 (!%p276_p3), %v1886_v2 }
   0xe   : > { %s2506_s24 = smov (!%p331_p4, %s2034_s24), 1 }
   0xf   : > { %s1564_s11 = sshll.u32 %s2506_s24, 7  ;;  %s342_s13 = scalar_lea.vmem %s2496_s3, %s2506_s24 }
  0x10   : > { %s2119_s14 = scalar_lea.vmem %s2493_s0, %s1564_s11  ;;  %1801 = vmatpush3.bf16.msra.mxu0 %v1886_v2  ;;  %1854 = vmatpush3.bf16.msra.mxu1 %v1886_v2  ;;  %s2458_s16 = scalar_lea.vmem %s2498_s5, %s1564_s11 }
  0x11   : > { %v1599_v4 = vld [vmem:[%s2119_s14] sm:$0xff]   ;;  %v1742_v8 = vld [vmem:[%s2119_s14 + $0x8] sm:$0xff]   ;;  %v1743_v9 = vld [vmem:[%s2119_s14 + $0x10] sm:$0xff]   ;;  %1802 = vmatprep.subr.bf16.mxu0 %v1887_v3  ;;  %1847 = vmatprep.subr.bf16.mxu1 %v1887_v3  ;;  %s358_s18 = scalar_lea.vmem %s2499_s6, %s2506_s24  ;;  %s364_s21 = scalar_lea.vmem %s2500_s7, %s2506_s24 }
  0x12   : > { %v1600_v6 = vunpack.c.l.bf16 %v1599_v4  ;;  %v1601_v7 = vunpack.c.h.bf16 %v1599_v4  ;;  %v1604_v11 = vunpack.c.l.bf16 %v1742_v8  ;;  %v1605_v12 = vunpack.c.h.bf16 %v1742_v8  ;;  %v1744_v15 = vld [vmem:[%s2119_s14 + $0x18] sm:$0xff]   ;;  %v1745_v38 = vld [vmem:[%s2119_s14 + $0x20] sm:$0xff]   ;;  %v1746_v43 = vld [vmem:[%s2119_s14 + $0x28] sm:$0xff]  }
  0x13   : > { %v1608_v13 = vunpack.c.l.bf16 %v1743_v9  ;;  %v1609_v14 = vunpack.c.h.bf16 %v1743_v9  ;;  %v1612_v18 = vunpack.c.l.bf16 %v1744_v15  ;;  %v1613_v19 = vunpack.c.h.bf16 %v1744_v15  ;;  %v1747_v44 = vld [vmem:[%s2119_s14 + $0x30] sm:$0xff]  }
  0x14   : > { %v437_v16 = vmul.f32 %v1600_v6, %v2128_v5  ;;  %v438_v17 = vmul.f32 %v1601_v7, %v2128_v5  ;;  %v439_v21 = vmul.f32 %v1604_v11, %v2128_v5  ;;  %v440_v22 = vmul.f32 %v1605_v12, %v2128_v5  ;;  %1803 = vmatpush3.bf16.msra.mxu0 %v1887_v3  ;;  %v1891_v6 = vld [vmem:[%s2497_s4 + $0x38] sm:$0xff]  }
  0x15   : > { %v441_v23 = vmul.f32 %v1608_v13, %v2128_v5  ;;  %v442_v24 = vmul.f32 %v1609_v14, %v2128_v5  ;;  %v443_v27 = vmul.f32 %v1612_v18, %v2128_v5  ;;  %v444_v28 = vmul.f32 %v1613_v19, %v2128_v5  ;;  %1855 = vmatpush3.bf16.msra.mxu1 %v1887_v3  ;;  %v1748_v11 = vld [vmem:[%s2119_s14 + $0x38] sm:$0xff]  }
  0x16   : > { %v2148_v25 = vadd.f32 %v2135_v10, %v437_v16  ;;  %v2151_v26 = vadd.f32 %v2135_v10, %v438_v17  ;;  %v2156_v29 = vadd.f32 %v2135_v10, %v439_v21  ;;  %v2159_v30 = vadd.f32 %v2135_v10, %v440_v22  ;;  %1804 = vmatprep.subr.bf16.mxu0 %v1888_v20  ;;  %v2225_v22 = vld [vmem:[%s2119_s14 + $0x40] sm:$0xff]  }
  0x17   : > { %v2162_v31 = vadd.f32 %v2135_v10, %v441_v23  ;;  %v2165_v32 = vadd.f32 %v2135_v10, %v442_v24  ;;  %v2173_v36 = vadd.f32 %v2135_v10, %v443_v27  ;;  %v2176_v37 = vadd.f32 %v2135_v10, %v444_v28  ;;  %1848 = vmatprep.subr.bf16.mxu1 %v1888_v20 }
  0x18   : > { %v508_v34 = vmin.f32 %v2148_v25, 20.0  ;;  %v509_v35 = vmin.f32 %v2151_v26, 20.0  ;;  %v510_v39 = vmin.f32 %v2156_v29, 20.0  ;;  %v511_v40 = vmin.f32 %v2159_v30, 20.0  ;;  %1805 = vmatpush3.bf16.msra.mxu0 %v1888_v20 }
  0x19   : > { %v512_v41 = vmin.f32 %v2162_v31, 20.0  ;;  %v513_v42 = vmin.f32 %v2165_v32, 20.0  ;;  %v514_v47 = vmin.f32 %v2173_v36, 20.0  ;;  %v515_v48 = vmin.f32 %v2176_v37, 20.0  ;;  %1856 = vmatpush3.bf16.msra.mxu1 %v1888_v20  ;;  %1806 = vmatprep.subr.bf16.mxu0 %v1889_v33 }
  0x1a   : > { %v540_v45 = vmul.f32 1.442695, %v508_v34  ;;  %v542_v46 = vmul.f32 1.442695, %v509_v35  ;;  %v544_v49 = vmul.f32 1.442695, %v510_v39  ;;  %v1616_v52 = vunpack.c.l.bf16 %v1745_v38  ;;  %1849 = vmatprep.subr.bf16.mxu1 %v1889_v33 }
  0x1b   : > { %v546_v50 = vmul.f32 1.442695, %v511_v40  ;;  %v548_v51 = vmul.f32 1.442695, %v512_v41  ;;  %v550_v53 = vmul.f32 1.442695, %v513_v42  ;;  %v1617_v57 = vunpack.c.h.bf16 %v1745_v38 }
  0x1c   : > { %1892 = vpow2.f32 %v540_v45  ;;  %v552_v54 = vmul.f32 1.442695, %v514_v47  ;;  %v554_v55 = vmul.f32 1.442695, %v515_v48  ;;  %v445_v58 = vmul.f32 %v1616_v52, %v2128_v5  ;;  %1807 = vmatpush3.bf16.msra.mxu0 %v1889_v33 }
  0x1d   : > { %1894 = vpow2.f32 %v542_v46  ;;  %v1620_v59 = vunpack.c.l.bf16 %v1746_v43  ;;  %v1621_v60 = vunpack.c.h.bf16 %v1746_v43  ;;  %v1624_v61 = vunpack.c.l.bf16 %v1747_v44  ;;  %1857 = vmatpush3.bf16.msra.mxu1 %v1889_v33  ;;  %1808 = vmatprep.subr.bf16.mxu0 %v1890_v56 }
  0x1e   : > { %1896 = vpow2.f32 %v544_v49  ;;  %v1625_v62 = vunpack.c.h.bf16 %v1747_v44  ;;  %v446_v63 = vmul.f32 %v1617_v57, %v2128_v5  ;;  %v2193_v0 = vadd.f32 %v2135_v10, %v445_v58  ;;  %1850 = vmatprep.subr.bf16.mxu1 %v1890_v56 }
  0x1f   : > { %1898 = vpow2.f32 %v546_v50  ;;  %v447_v1 = vmul.f32 %v1620_v59, %v2128_v5  ;;  %v448_v2 = vmul.f32 %v1621_v60, %v2128_v5  ;;  %v449_v3 = vmul.f32 %v1624_v61, %v2128_v5 }
  0x20   : > { %1900 = vpow2.f32 %v548_v51  ;;  %v450_v4 = vmul.f32 %v1625_v62, %v2128_v5  ;;  %v2203_v7 = vadd.f32 %v2135_v10, %v446_v63  ;;  %v516_v8 = vmin.f32 %v2193_v0, 20.0  ;;  %1809 = vmatpush3.bf16.msra.mxu0 %v1890_v56 }
  0x21   : > { %1902 = vpow2.f32 %v550_v53  ;;  %v2207_v9 = vadd.f32 %v2135_v10, %v447_v1  ;;  %v2211_v12 = vadd.f32 %v2135_v10, %v448_v2  ;;  %v2214_v13 = vadd.f32 %v2135_v10, %v449_v3  ;;  %1858 = vmatpush3.bf16.msra.mxu1 %v1890_v56  ;;  %1810 = vmatprep.subr.bf16.mxu0 %v1891_v6 }
  0x22   : > { %1904 = vpow2.f32 %v552_v54  ;;  %v2217_v14 = vadd.f32 %v2135_v10, %v450_v4  ;;  %v517_v15 = vmin.f32 %v2203_v7, 20.0  ;;  %v556_v16 = vmul.f32 1.442695, %v516_v8  ;;  %1851 = vmatprep.subr.bf16.mxu1 %v1891_v6 }
  0x23   : > { %1906 = vpow2.f32 %v554_v55  ;;  %v518_v17 = vmin.f32 %v2207_v9, 20.0  ;;  %v519_v18 = vmin.f32 %v2211_v12, 20.0  ;;  %v520_v19 = vmin.f32 %v2214_v13, 20.0 }
  0x24   : > { %v521_v20 = vmin.f32 %v2217_v14, 20.0  ;;  %v1628_v21 = vunpack.c.l.bf16 %v1748_v11  ;;  %1908 = vpow2.f32 %v556_v16  ;;  %v558_v23 = vmul.f32 1.442695, %v517_v15  ;;  %1811 = vmatpush3.bf16.msra.mxu0 %v1891_v6 }
  0x25   : > { %v560_v24 = vmul.f32 1.442695, %v518_v17  ;;  %v1629_v27 = vunpack.c.h.bf16 %v1748_v11  ;;  %v562_v33 = vmul.f32 1.442695, %v519_v18  ;;  %v564_v34 = vmul.f32 1.442695, %v520_v19  ;;  %1859 = vmatpush3.bf16.msra.mxu1 %v1891_v6 }
  0x26   : > { %v1893_v28 = vpop.eup %1892  ;;  %v2227_v35 = vmul.f32 1.442695, %v521_v20  ;;  %v451_v38 = vmul.f32 %v1628_v21, %v2128_v5  ;;  %1910 = vpow2.f32 %v558_v23  ;;  %v1632_v42 = vunpack.c.l.bf16 %v2225_v22 }
  0x27   : > { %v1895_v39 = vpop.eup %1894  ;;  %v604_v40 = vadd.f32 2.0, %v1893_v28  ;;  %v452_v41 = vmul.f32 %v1629_v27, %v2128_v5  ;;  %1912 = vpow2.f32 %v560_v24  ;;  %v1633_v46 = vunpack.c.h.bf16 %v2225_v22 }
  0x28   : > { %v1897_v43 = vpop.eup %1896  ;;  %v605_v44 = vadd.f32 2.0, %v1895_v39  ;;  %v2233_v45 = vadd.f32 %v2135_v10, %v451_v38  ;;  %1914 = vpow2.f32 %v562_v33 }
  0x29   : > { %v1899_v47 = vpop.eup %1898  ;;  %v636_v48 = vmul.f32 %v1893_v28, %v604_v40  ;;  %v606_v49 = vadd.f32 2.0, %v1897_v43  ;;  %v2237_v50 = vadd.f32 %v2135_v10, %v452_v41  ;;  %1916 = vpow2.f32 %v564_v34 }
  0x2a   : > { %v1901_v51 = vpop.eup %1900  ;;  %v637_v52 = vmul.f32 %v1895_v39, %v605_v44  ;;  %v607_v53 = vadd.f32 2.0, %v1899_v47  ;;  %v522_v54 = vmin.f32 %v2233_v45, 20.0 }
  0x2b   : > { %v1903_v55 = vpop.eup %1902  ;;  %v2241_v56 = vmul.f32 %v636_v48, %v2148_v25  ;;  %v700_v57 = vadd.f32 2.0, %v636_v48  ;;  %v638_v58 = vmul.f32 %v1897_v43, %v606_v49  ;;  %v608_v59 = vadd.f32 2.0, %v1901_v51 }
  0x2c   : > { %v1905_v60 = vpop.eup %1904  ;;  %v2244_v61 = vmul.f32 %v637_v52, %v2151_v26  ;;  %v701_v62 = vadd.f32 2.0, %v637_v52  ;;  %v639_v63 = vmul.f32 %v1899_v47, %v607_v53  ;;  %v609_v1 = vadd.f32 2.0, %v1903_v55 }
  0x2d   : > { %v1907_v2 = vpop.eup %1906  ;;  %1918 = vrcp.f32 %v700_v57  ;;  %v2247_v3 = vmul.f32 %v638_v58, %v2156_v29  ;;  %v702_v4 = vadd.f32 2.0, %v638_v58  ;;  %v640_v6 = vmul.f32 %v1901_v51, %v608_v59 }
  0x2e   : > { %1920 = vrcp.f32 %v701_v62  ;;  %v2250_v25 = vmul.f32 %v639_v63, %v2159_v30  ;;  %v703_v8 = vadd.f32 2.0, %v639_v63  ;;  %v641_v11 = vmul.f32 %v1903_v55, %v609_v1  ;;  %v1909_v15 = vpop.eup %1908  ;;  %v2275_v55 = vld [vmem:[%s342_s13] ss:$0 sm:$0xff] }
  0x2f   : > { %1922 = vrcp.f32 %v702_v4  ;;  %v2253_v26 = vmul.f32 %v640_v6, %v2162_v31  ;;  %v704_v16 = vadd.f32 2.0, %v640_v6  ;;  %v610_v17 = vadd.f32 2.0, %v1905_v60 }
  0x30   : > { %1924 = vrcp.f32 %v703_v8  ;;  %v2256_v18 = vmul.f32 %v641_v11, %v2165_v32  ;;  %v705_v29 = vadd.f32 2.0, %v641_v11  ;;  %v611_v19 = vadd.f32 2.0, %v1907_v2  ;;  %v1911_v20 = vpop.eup %1910 }
  0x31   : > { %1926 = vrcp.f32 %v704_v16  ;;  %v642_v30 = vmul.f32 %v1905_v60, %v610_v17  ;;  %v612_v21 = vadd.f32 2.0, %v1909_v15  ;;  %v523_v23 = vmin.f32 %v2237_v50, 20.0  ;;  %v1913_v24 = vpop.eup %1912 }
  0x32   : > { %1928 = vrcp.f32 %v705_v29  ;;  %v643_v27 = vmul.f32 %v1907_v2, %v611_v19  ;;  %v613_v31 = vadd.f32 2.0, %v1911_v20  ;;  %v568_v28 = vmul.f32 1.442695, %v522_v54  ;;  %v1915_v33 = vpop.eup %1914  ;;  %v1750_v29 = vld [vmem:[%s2119_s14 + $0x48] sm:$0xff]  }
  0x33   : > { %v2260_v34 = vmul.f32 %v642_v30, %v2173_v36  ;;  %v706_v32 = vadd.f32 2.0, %v642_v30  ;;  %v644_v38 = vmul.f32 %v1909_v15, %v612_v21  ;;  %v614_v39 = vadd.f32 2.0, %v1913_v24  ;;  %v1917_v40 = vpop.eup %1916 }
  0x34   : > { %v2267_v41 = vmul.f32 %v643_v27, %v2176_v37  ;;  %v707_v43 = vadd.f32 2.0, %v643_v27  ;;  %v645_v44 = vmul.f32 %v1911_v20, %v613_v31  ;;  %v615_v47 = vadd.f32 2.0, %v1915_v33 }
  0x35   : > { %1930 = vrcp.f32 %v706_v32  ;;  %v2270_v48 = vmul.f32 %v644_v38, %v2193_v0  ;;  %v708_v36 = vadd.f32 2.0, %v644_v38  ;;  %v646_v49 = vmul.f32 %v1913_v24, %v614_v39 }
  0x36   : > { %1932 = vrcp.f32 %v707_v43  ;;  %v2273_v51 = vmul.f32 %v645_v44, %v2203_v7  ;;  %v709_v52 = vadd.f32 2.0, %v645_v44  ;;  %v647_v53 = vmul.f32 %v1915_v33, %v615_v47 }
  0x37   : > { %v1919_v54 = vpop.eup %1918  ;;  %1934 = vrcp.f32 %v708_v36  ;;  %v2278_v37 = vmul.f32 %v646_v49, %v2207_v9  ;;  %v710_v57 = vadd.f32 2.0, %v646_v49  ;;  %v616_v58 = vadd.f32 2.0, %v1917_v40 }
  0x38   : > { %v1921_v59 = vpop.eup %1920  ;;  %v764_v0 = vmul.f32 %v1919_v54, %v2241_v56  ;;  %1936 = vrcp.f32 %v709_v52  ;;  %v2282_v60 = vmul.f32 %v647_v53, %v2211_v12  ;;  %v711_v7 = vadd.f32 2.0, %v647_v53 }
  0x39   : > { %v1923_v62 = vpop.eup %1922  ;;  %v765_v63 = vmul.f32 %v1921_v59, %v2244_v61  ;;  %1938 = vrcp.f32 %v710_v57  ;;  %v648_v1 = vmul.f32 %v1917_v40, %v616_v58  ;;  %v570_v2 = vmul.f32 1.442695, %v523_v23 }
  0x3a   : > { %v1925_v4 = vpop.eup %1924  ;;  %v803_v9 = vmul.f32 %v2275_v55, %v764_v0  ;;  %v766_v6 = vmul.f32 %v1923_v62, %v2247_v3  ;;  %1940 = vrcp.f32 %v711_v7  ;;  %v453_v56 = vmul.f32 %v1632_v42, %v2128_v5 }
  0x3b   : > { %v1927_v12 = vpop.eup %1926  ;;  %v804_v8 = vmul.f32 %v2275_v55, %v765_v63  ;;  %v767_v61 = vmul.f32 %v1925_v4, %v2250_v25  ;;  %1942 = vpow2.f32 %v2227_v35  ;;  %v2294_v11 = vmul.f32 %v648_v1, %v2214_v13  ;;  %v2302_v25 = vld [vmem:[%s2119_s14 + $0x50] sm:$0xff]  }
  0x3c   : > { %v1929_v15 = vpop.eup %1928  ;;  %v805_v16 = vmul.f32 %v2275_v55, %v766_v6  ;;  %v768_v3 = vmul.f32 %v1927_v12, %v2253_v26  ;;  %v712_v17 = vadd.f32 2.0, %v648_v1  ;;  %1944 = vpow2.f32 %v568_v28 }
  0x3d   : > { %v835_v42 = vpack.c.bf16 %v804_v8, %v803_v9  ;;  %v806_v19 = vmul.f32 %v2275_v55, %v767_v61  ;;  %v769_v20 = vmul.f32 %v1929_v15, %v2256_v18  ;;  %1946 = vpow2.f32 %v570_v2 }
  0x3e   : > { %v807_v35 = vmul.f32 %v2275_v55, %v768_v3  ;;  %1948 = vrcp.f32 %v712_v17  ;;  %v454_v13 = vmul.f32 %v1633_v46, %v2128_v5  ;;  %v2309_v26 = vadd.f32 %v2135_v10, %v453_v56 }
  0x3f   : > { %v1931_v30 = vpop.eup %1930  ;;  %1812 = vmatprep.mubr.bf16.mxu0 %v835_v42  ;;  %v836_v21 = vpack.c.bf16 %v806_v19, %v805_v16  ;;  %v808_v23 = vmul.f32 %v2275_v55, %v769_v20  ;;  %v1636_v24 = vunpack.c.l.bf16 %v1750_v29  ;;  %v1637_v18 = vunpack.c.h.bf16 %v1750_v29  ;;  %v1752_v20 = vld [vmem:[%s2119_s14 + $0x58] sm:$0xff]  }
  0x40   : > { %v1933_v27 = vpop.eup %1932  ;;  %v770_v31 = vmul.f32 %v1931_v30, %v2260_v34  ;;  %v2314_v28 = vadd.f32 %v2135_v10, %v454_v13  ;;  %v524_v33 = vmin.f32 %v2309_v26, 20.0  ;;  %v1640_v22 = vunpack.c.l.bf16 %v2302_v25 }
  0x41   : > { %v1935_v46 = vpop.eup %1934  ;;  %1813 = vmatmul.mubr.bf16.vlgmr.msra.gmra.mrb[0].mxu0 %v836_v21  ;;  %v837_v32 = vpack.c.bf16 %v808_v23, %v807_v35  ;;  %v771_v38 = vmul.f32 %v1933_v27, %v2267_v41  ;;  %v455_v39 = vmul.f32 %v1636_v24, %v2128_v5  ;;  %v456_v40 = vmul.f32 %v1637_v18, %v2128_v5  ;;  %v1753_v23 = vld [vmem:[%s2119_s14 + $0x60] sm:$0xff]  }
  0x42   : > { %v1937_v43 = vpop.eup %1936  ;;  %v809_v44 = vmul.f32 %v2275_v55, %v770_v31  ;;  %v772_v34 = vmul.f32 %v1935_v46, %v2270_v48  ;;  %v525_v47 = vmin.f32 %v2314_v28, 20.0  ;;  %v572_v36 = vmul.f32 1.442695, %v524_v33 }
  0x43   : > { %v1939_v49 = vpop.eup %1938  ;;  %1816 = vmatprep.mubr.bf16.mxu0 %v837_v32  ;;  %v810_v52 = vmul.f32 %v2275_v55, %v771_v38  ;;  %v773_v53 = vmul.f32 %v1937_v43, %v2273_v51  ;;  %v2327_v41 = vadd.f32 %v2135_v10, %v455_v39  ;;  %v2330_v54 = vadd.f32 %v2135_v10, %v456_v40 }
  0x44   : > { %v1941_v57 = vpop.eup %1940  ;;  %v811_v58 = vmul.f32 %v2275_v55, %v772_v34  ;;  %v774_v48 = vmul.f32 %v1939_v49, %v2278_v37  ;;  %1950 = vpow2.f32 %v572_v36  ;;  %v574_v59 = vmul.f32 1.442695, %v525_v47 }
  0x45   : > { %v1943_v0 = vpop.eup %1942  ;;  %v838_v7 = vpack.c.bf16 %v810_v52, %v809_v44  ;;  %v812_v62 = vmul.f32 %v2275_v55, %v773_v53  ;;  %v775_v63 = vmul.f32 %v1941_v57, %v2282_v60  ;;  %v526_v51 = vmin.f32 %v2327_v41, 20.0 }
  0x46   : > { %v1945_v1 = vpop.eup %1944  ;;  %v813_v2 = vmul.f32 %v2275_v55, %v774_v48  ;;  %v617_v4 = vadd.f32 2.0, %v1943_v0  ;;  %1952 = vpow2.f32 %v574_v59  ;;  %v527_v9 = vmin.f32 %v2330_v54, 20.0 }
  0x47   : > { %v1947_v6 = vpop.eup %1946  ;;  %v839_v56 = vpack.c.bf16 %v812_v62, %v811_v58  ;;  %v814_v37 = vmul.f32 %v2275_v55, %v775_v63  ;;  %v618_v12 = vadd.f32 2.0, %v1945_v1  ;;  %v576_v8 = vmul.f32 1.442695, %v526_v51 }
  0x48   : > { %v1949_v61 = vpop.eup %1948  ;;  %v649_v15 = vmul.f32 %v1943_v0, %v617_v4  ;;  %v619_v16 = vadd.f32 2.0, %v1947_v6  ;;  %v578_v60 = vmul.f32 1.442695, %v527_v9  ;;  %v1641_v3 = vunpack.c.h.bf16 %v2302_v25  ;;  %v1754_v0 = vld [vmem:[%s2119_s14 + $0x68] sm:$0xff]  }
  0x49   : > { %1817 = vmatmul.mubr.bf16.gmra.mrb[4].mxu0 %v838_v7  ;;  %v776_v17 = vmul.f32 %v1949_v61, %v2294_v11  ;;  %v650_v29 = vmul.f32 %v1945_v1, %v618_v12  ;;  %1954 = vpow2.f32 %v576_v8  ;;  %v840_v35 = vpack.c.bf16 %v814_v37, %v813_v2 }
  0x4a   : > { %1820 = vmatprep.mubr.bf16.mxu0 %v839_v56  ;;  %v713_v42 = vadd.f32 2.0, %v649_v15  ;;  %v651_v19 = vmul.f32 %v1947_v6, %v619_v16  ;;  %1956 = vpow2.f32 %v578_v60  ;;  %v681_v13 = vmul.f32 %v649_v15, %v2217_v14 }
  0x4b   : > { %v714_v30 = vadd.f32 2.0, %v650_v29  ;;  %v457_v21 = vmul.f32 %v1640_v22, %v2128_v5  ;;  %v2347_v25 = vmul.f32 %v2275_v55, %v776_v17  ;;  %v458_v11 = vmul.f32 %v1641_v3, %v2128_v5 }
  0x4c   : > { %1958 = vrcp.f32 %v713_v42  ;;  %v715_v24 = vadd.f32 2.0, %v651_v19  ;;  %v1644_v27 = vunpack.c.l.bf16 %v1752_v20  ;;  %v1645_v31 = vunpack.c.h.bf16 %v1752_v20 }
  0x4d   : > { %1960 = vrcp.f32 %v714_v30  ;;  %v2351_v18 = vadd.f32 %v2135_v10, %v457_v21  ;;  %v2354_v14 = vadd.f32 %v2135_v10, %v458_v11  ;;  %v1648_v22 = vunpack.c.l.bf16 %v1753_v23 }
  0x4e   : > { %v1951_v33 = vpop.eup %1950  ;;  %1962 = vrcp.f32 %v715_v24  ;;  %v1649_v46 = vunpack.c.h.bf16 %v1753_v23  ;;  %v459_v39 = vmul.f32 %v1644_v27, %v2128_v5  ;;  %v460_v40 = vmul.f32 %v1645_v31, %v2128_v5  ;;  %v1755_v23 = vld [vmem:[%s2119_s14 + $0x70] sm:$0xff]  }
  0x4f   : > { %v620_v32 = vadd.f32 2.0, %v1951_v33  ;;  %v528_v38 = vmin.f32 %v2351_v18, 20.0  ;;  %v682_v44 = vmul.f32 %v650_v29, %v2233_v45  ;;  %v529_v34 = vmin.f32 %v2354_v14, 20.0 }
  0x50   : > { %v1953_v43 = vpop.eup %1952  ;;  %v461_v47 = vmul.f32 %v1648_v22, %v2128_v5  ;;  %v462_v36 = vmul.f32 %v1649_v46, %v2128_v5  ;;  %v2364_v57 = vadd.f32 %v2135_v10, %v459_v39  ;;  %v683_v58 = vmul.f32 %v651_v19, %v2237_v50 }
  0x51   : > { %1821 = vmatmul.mubr.bf16.gmra.mrb[8].mxu0 %v840_v35  ;;  %v621_v49 = vadd.f32 2.0, %v1953_v43  ;;  %v652_v52 = vmul.f32 %v1951_v33, %v620_v32  ;;  %v580_v53 = vmul.f32 1.442695, %v528_v38  ;;  %v582_v48 = vmul.f32 1.442695, %v529_v34  ;;  %v2390_v38 = vld [vmem:[%s2119_s14 + $0x78] sm:$0xff]  }
  0x52   : > { %v2368_v59 = vadd.f32 %v2135_v10, %v460_v40  ;;  %v2371_v45 = vadd.f32 %v2135_v10, %v461_v47  ;;  %v2375_v51 = vadd.f32 %v2135_v10, %v462_v36  ;;  %v530_v50 = vmin.f32 %v2364_v57, 20.0 }
  0x53   : > { %v1955_v7 = vpop.eup %1954  ;;  %v653_v62 = vmul.f32 %v1953_v43, %v621_v49  ;;  %v716_v63 = vadd.f32 2.0, %v652_v52  ;;  %1964 = vpow2.f32 %v580_v53  ;;  %v1652_v56 = vunpack.c.l.bf16 %v1754_v0 }
  0x54   : > { %v1957_v1 = vpop.eup %1956  ;;  %v622_v2 = vadd.f32 2.0, %v1955_v7  ;;  %1966 = vpow2.f32 %v582_v48  ;;  %v531_v4 = vmin.f32 %v2368_v59, 20.0  ;;  %v684_v12 = vmul.f32 %v652_v52, %v2309_v26 }
  0x55   : > { %v717_v9 = vadd.f32 2.0, %v653_v62  ;;  %1968 = vrcp.f32 %v716_v63  ;;  %v623_v6 = vadd.f32 2.0, %v1957_v1  ;;  %v584_v61 = vmul.f32 1.442695, %v530_v50 }
  0x56   : > { %v1959_v37 = vpop.eup %1958  ;;  %v654_v8 = vmul.f32 %v1955_v7, %v622_v2  ;;  %v532_v15 = vmin.f32 %v2371_v45, 20.0  ;;  %v533_v17 = vmin.f32 %v2375_v51, 20.0  ;;  %v586_v20 = vmul.f32 1.442695, %v531_v4 }
  0x57   : > { %v1961_v16 = vpop.eup %1960  ;;  %v777_v60 = vmul.f32 %v1959_v37, %v681_v13  ;;  %1970 = vrcp.f32 %v717_v9  ;;  %v655_v3 = vmul.f32 %v1957_v1, %v623_v6  ;;  %v685_v26 = vmul.f32 %v653_v62, %v2314_v28 }
  0x58   : > { %v1963_v29 = vpop.eup %1962  ;;  %v778_v42 = vmul.f32 %v1961_v16, %v682_v44  ;;  %v718_v19 = vadd.f32 2.0, %v654_v8  ;;  %1972 = vpow2.f32 %v584_v61  ;;  %v588_v13 = vmul.f32 1.442695, %v532_v15 }
  0x59   : > { %v816_v35 = vmul.f32 %v2275_v55, %v777_v60  ;;  %v779_v30 = vmul.f32 %v1963_v29, %v683_v58  ;;  %v719_v21 = vadd.f32 2.0, %v655_v3  ;;  %v590_v11 = vmul.f32 1.442695, %v533_v17 }
  0x5a   : > { %v817_v24 = vmul.f32 %v2275_v55, %v778_v42  ;;  %1974 = vrcp.f32 %v718_v19  ;;  %v1653_v33 = vunpack.c.h.bf16 %v1754_v0  ;;  %v463_v22 = vmul.f32 %v1652_v56, %v2128_v5 }
  0x5b   : > { %v841_v27 = vpack.c.bf16 %v816_v35, %v2347_v25  ;;  %v818_v31 = vmul.f32 %v2275_v55, %v779_v30  ;;  %1976 = vrcp.f32 %v719_v21  ;;  %v1656_v46 = vunpack.c.l.bf16 %v1755_v23 }
  0x5c   : > { %1978 = vpow2.f32 %v586_v20  ;;  %v1657_v32 = vunpack.c.h.bf16 %v1755_v23  ;;  %v686_v40 = vmul.f32 %v654_v8, %v2327_v41  ;;  %v464_v43 = vmul.f32 %v1653_v33, %v2128_v5 }
  0x5d   : > { %v1965_v28 = vpop.eup %1964  ;;  %1824 = vmatprep.mubr.bf16.mxu0 %v841_v27  ;;  %v842_v39 = vpack.c.bf16 %v818_v31, %v817_v24  ;;  %1980 = vpow2.f32 %v588_v13  ;;  %v2395_v34 = vadd.f32 %v2135_v10, %v463_v22  ;;  %v465_v47 = vmul.f32 %v1656_v46, %v2128_v5 }
  0x5e   : > { %v1967_v25 = vpop.eup %1966  ;;  %v624_v44 = vadd.f32 2.0, %v1965_v28  ;;  %1982 = vpow2.f32 %v590_v11  ;;  %v2399_v52 = vadd.f32 %v2135_v10, %v464_v43  ;;  %v466_v53 = vmul.f32 %v1657_v32, %v2128_v5 }
  0x5f   : > { %v1969_v36 = vpop.eup %1968  ;;  %1825 = vmatmul.mubr.bf16.gmra.mrb[12].mxu0 %v842_v39  ;;  %v625_v49 = vadd.f32 2.0, %v1967_v25  ;;  %v1660_v41 = vunpack.c.l.bf16 %v2390_v38  ;;  %v534_v0 = vmin.f32 %v2395_v34, 20.0  ;;  %v2405_v7 = vadd.f32 %v2135_v10, %v465_v47 }
  0x60   : > { %v780_v58 = vmul.f32 %v1969_v36, %v684_v12  ;;  %v656_v48 = vmul.f32 %v1965_v28, %v624_v44  ;;  %v687_v63 = vmul.f32 %v655_v3, %v2330_v54  ;;  %v535_v2 = vmin.f32 %v2399_v52, 20.0 }
  0x61   : > { %v1971_v62 = vpop.eup %1970  ;;  %v657_v1 = vmul.f32 %v1967_v25, %v625_v49  ;;  %v2410_v50 = vadd.f32 %v2135_v10, %v466_v53  ;;  %v1661_v37 = vunpack.c.h.bf16 %v2390_v38  ;;  %v592_v61 = vmul.f32 1.442695, %v534_v0 }
  0x62   : > { %v1973_v4 = vpop.eup %1972  ;;  %v781_v9 = vmul.f32 %v1971_v62, %v685_v26  ;;  %v819_v6 = vmul.f32 %v2275_v55, %v780_v58  ;;  %v720_v56 = vadd.f32 2.0, %v656_v48  ;;  %v467_v15 = vmul.f32 %v1660_v41, %v2128_v5 }
  0x63   : > { %v721_v12 = vadd.f32 2.0, %v657_v1  ;;  %v626_v8 = vadd.f32 2.0, %v1973_v4  ;;  %v594_v60 = vmul.f32 1.442695, %v535_v2  ;;  %v536_v3 = vmin.f32 %v2405_v7, 20.0 }
  0x64   : > { %v1975_v16 = vpop.eup %1974  ;;  %v820_v54 = vmul.f32 %v2275_v55, %v781_v9  ;;  %1984 = vrcp.f32 %v720_v56  ;;  %v537_v19 = vmin.f32 %v2410_v50, 20.0  ;;  %v468_v32 = vmul.f32 %v1661_v37, %v2128_v5 }
  0x65   : > { %v1977_v17 = vpop.eup %1976  ;;  %v782_v29 = vmul.f32 %v1975_v16, %v686_v40  ;;  %1986 = vrcp.f32 %v721_v12  ;;  %v658_v42 = vmul.f32 %v1973_v4, %v626_v8  ;;  %v596_v26 = vmul.f32 1.442695, %v536_v3 }
  0x66   : > { %v1979_v20 = vpop.eup %1978  ;;  %v843_v35 = vpack.c.bf16 %v820_v54, %v819_v6  ;;  %v783_v30 = vmul.f32 %v1977_v17, %v687_v63  ;;  %1988 = vpow2.f32 %v592_v61  ;;  %v598_v33 = vmul.f32 1.442695, %v537_v19 }
  0x67   : > { %v1981_v21 = vpop.eup %1980  ;;  %v821_v23 = vmul.f32 %v2275_v55, %v782_v29  ;;  %v627_v24 = vadd.f32 2.0, %v1979_v20  ;;  %v722_v13 = vadd.f32 2.0, %v658_v42  ;;  %1990 = vpow2.f32 %v594_v60 }
  0x68   : > { %v1983_v11 = vpop.eup %1982  ;;  %1828 = vmatprep.mubr.bf16.mxu1 %v843_v35  ;;  %v822_v27 = vmul.f32 %v2275_v55, %v783_v30  ;;  %v628_v31 = vadd.f32 2.0, %v1981_v21  ;;  %v2422_v39 = vadd.f32 %v2135_v10, %v467_v15  ;;  %v688_v40 = vmul.f32 %v656_v48, %v2351_v18 }
  0x69   : > { %v659_v22 = vmul.f32 %v1979_v20, %v627_v24  ;;  %1992 = vrcp.f32 %v722_v13  ;;  %v629_v46 = vadd.f32 2.0, %v1983_v11  ;;  %v689_v44 = vmul.f32 %v657_v1, %v2354_v14 }
  0x6a   : > { %v844_v38 = vpack.c.bf16 %v822_v27, %v821_v23  ;;  %v660_v28 = vmul.f32 %v1981_v21, %v628_v31  ;;  %1994 = vpow2.f32 %v596_v26  ;;  %v2427_v36 = vadd.f32 %v2135_v10, %v468_v32 }
  0x6b   : > { %v723_v43 = vadd.f32 2.0, %v659_v22  ;;  %v661_v25 = vmul.f32 %v1983_v11, %v629_v46  ;;  %1996 = vpow2.f32 %v598_v33  ;;  %v538_v5 = vmin.f32 %v2422_v39, 20.0 }
  0x6c   : > { %1829 = vmatmul.mubr.bf16.vlgmr.msra.gmra.mrb[0].mxu1 %v844_v38  ;;  %v724_v47 = vadd.f32 2.0, %v660_v28  ;;  %v539_v41 = vmin.f32 %v2427_v36, 20.0  ;;  %v690_v14 = vmul.f32 %v658_v42, %v2364_v57  ;;  %v691_v8 = vmul.f32 %v659_v22, %v2368_v59 }
  0x6d   : > { %1998 = vrcp.f32 %v723_v43  ;;  %v725_v49 = vadd.f32 2.0, %v661_v25  ;;  %v600_v58 = vmul.f32 1.442695, %v538_v5  ;;  %v692_v57 = vmul.f32 %v660_v28, %v2371_v45 }
  0x6e   : > { %v1985_v53 = vpop.eup %1984  ;;  %2000 = vrcp.f32 %v724_v47  ;;  %v602_v63 = vmul.f32 1.442695, %v539_v41  ;;  %v693_v3 = vmul.f32 %v661_v25, %v2375_v51 }
  0x6f   : > { %v1987_v18 = vpop.eup %1986  ;;  %v784_v48 = vmul.f32 %v1985_v53, %v688_v40  ;;  %2002 = vrcp.f32 %v725_v49 }
  0x70   : > { %v1989_v0 = vpop.eup %1988  ;;  %v785_v62 = vmul.f32 %v1987_v18, %v689_v44  ;;  %2004 = vpow2.f32 %v600_v58 }
  0x71   : > { %v823_v10 = vmul.f32 %v2275_v55, %v784_v48  ;;  %v630_v1 = vadd.f32 2.0, %v1989_v0  ;;  %v1991_v2 = vpop.eup %1990  ;;  %2006 = vpow2.f32 %v602_v63 }
  0x72   : > { %v824_v4 = vmul.f32 %v2275_v55, %v785_v62  ;;  %v631_v6 = vadd.f32 2.0, %v1991_v2 }
  0x73   : > { %v1993_v9 = vpop.eup %1992  ;;  %v662_v56 = vmul.f32 %v1989_v0, %v630_v1 }
  0x74   : > { %v1995_v37 = vpop.eup %1994  ;;  %v845_v12 = vpack.c.bf16 %v824_v4, %v823_v10  ;;  %v786_v61 = vmul.f32 %v1993_v9, %v690_v14  ;;  %v663_v16 = vmul.f32 %v1991_v2, %v631_v6 }
  0x75   : > { %v1997_v15 = vpop.eup %1996  ;;  %v726_v54 = vadd.f32 2.0, %v662_v56  ;;  %v632_v60 = vadd.f32 2.0, %v1995_v37  ;;  %v694_v28 = vmul.f32 %v662_v56, %v2395_v34 }
  0x76   : > { %1832 = vmatprep.mubr.bf16.mxu1 %v845_v12  ;;  %v633_v17 = vadd.f32 2.0, %v1997_v15  ;;  %v727_v42 = vadd.f32 2.0, %v663_v16  ;;  %v825_v30 = vmul.f32 %v2275_v55, %v786_v61  ;;  %v695_v25 = vmul.f32 %v663_v16, %v2399_v52 }
  0x77   : > { %v1999_v29 = vpop.eup %1998  ;;  %2008 = vrcp.f32 %v726_v54  ;;  %v664_v19 = vmul.f32 %v1995_v37, %v632_v60 }
  0x78   : > { %v2001_v20 = vpop.eup %2000  ;;  %v787_v35 = vmul.f32 %v1999_v29, %v691_v8  ;;  %v665_v59 = vmul.f32 %v1997_v15, %v633_v17  ;;  %2010 = vrcp.f32 %v727_v42 }
  0x79   : > { %v2003_v26 = vpop.eup %2002  ;;  %v788_v21 = vmul.f32 %v2001_v20, %v692_v57  ;;  %v728_v45 = vadd.f32 2.0, %v664_v19  ;;  %v696_v49 = vmul.f32 %v664_v19, %v2405_v7 }
  0x7a   : > { %v2005_v23 = vpop.eup %2004  ;;  %v826_v24 = vmul.f32 %v2275_v55, %v787_v35  ;;  %v789_v13 = vmul.f32 %v2003_v26, %v693_v3  ;;  %v729_v11 = vadd.f32 2.0, %v665_v59  ;;  %v697_v41 = vmul.f32 %v665_v59, %v2410_v50 }
  0x7b   : > { %v827_v51 = vmul.f32 %v2275_v55, %v788_v21  ;;  %2012 = vrcp.f32 %v728_v45  ;;  %v634_v27 = vadd.f32 2.0, %v2005_v23  ;;  %v2007_v31 = vpop.eup %2006 }
  0x7c   : > { %v846_v33 = vpack.c.bf16 %v826_v24, %v825_v30  ;;  %v828_v22 = vmul.f32 %v2275_v55, %v789_v13  ;;  %2014 = vrcp.f32 %v729_v11  ;;  %v635_v46 = vadd.f32 2.0, %v2007_v31 }
  0x7d   : > { %v666_v32 = vmul.f32 %v2005_v23, %v634_v27 }
  0x7e   : > { %1833 = vmatmul.mubr.bf16.gmra.mrb[4].mxu1 %v846_v33  ;;  %v847_v38 = vpack.c.bf16 %v828_v22, %v827_v51  ;;  %v667_v40 = vmul.f32 %v2007_v31, %v635_v46 }
  0x7f   : > { %v730_v43 = vadd.f32 2.0, %v666_v32  ;;  %v698_v10 = vmul.f32 %v666_v32, %v2422_v39 }
  0x80   : > { %1836 = vmatprep.mubr.bf16.mxu1 %v847_v38  ;;  %v731_v47 = vadd.f32 2.0, %v667_v40  ;;  %v699_v50 = vmul.f32 %v667_v40, %v2427_v36 }
  0x81   : > { %v2009_v44 = vpop.eup %2008  ;;  %2016 = vrcp.f32 %v730_v43 }
  0x82   : > { %v790_v5 = vmul.f32 %v2009_v44, %v694_v28  ;;  %v2011_v53 = vpop.eup %2010  ;;  %2018 = vrcp.f32 %v731_v47 }
  0x83   : > { %v791_v58 = vmul.f32 %v2011_v53, %v695_v25 }
  0x84   : > { %v829_v18 = vmul.f32 %v2275_v55, %v790_v5 }
  0x85   : > { %v2013_v48 = vpop.eup %2012  ;;  %v830_v0 = vmul.f32 %v2275_v55, %v791_v58 }
  0x86   : > { %v2015_v34 = vpop.eup %2014  ;;  %v792_v62 = vmul.f32 %v2013_v48, %v696_v49 }
  0x87   : > { %v793_v14 = vmul.f32 %v2015_v34, %v697_v41  ;;  %v848_v52 = vpack.c.bf16 %v830_v0, %v829_v18 }
  0x88   : > { %v831_v63 = vmul.f32 %v2275_v55, %v792_v62 }
  0x89   : > { %v832_v7 = vmul.f32 %v2275_v55, %v793_v14  ;;  %1837 = vmatmul.mubr.bf16.gmra.mrb[8].mxu1 %v848_v52 }
  0x8b   : > { %v2017_v1 = vpop.eup %2016  ;;  %v849_v2 = vpack.c.bf16 %v832_v7, %v831_v63 }
  0x8c   : > { %v794_v4 = vmul.f32 %v2017_v1, %v698_v10  ;;  %v2019_v9 = vpop.eup %2018 }
  0x8d   : > { %1840 = vmatprep.mubr.bf16.mxu1 %v849_v2  ;;  %v795_v6 = vmul.f32 %v2019_v9, %v699_v50 }
  0x8e   : > { %v833_v56 = vmul.f32 %v2275_v55, %v794_v4 }
  0x8f   : > { %v834_v37 = vmul.f32 %v2275_v55, %v795_v6 }
  0x91   : > { %v850_v12 = vpack.c.bf16 %v834_v37, %v833_v56 }
  0x93   : > { %1841 = vmatmul.mubr.bf16.gmra.mrb[12].mxu1 %v850_v12 }
 0x114   : > { %v1814_v8 = vpop.f32.mrb[0].mxu0 }
 0x115   : > { %v949_v39 = vpop.f32.mrb[1].mxu0  ;;  %v1276_v55 = vmul.f32 %v1814_v8, %v1814_v8 }
 0x116   : > { %v1815_v36 = vpop.f32.mrb[2].mxu0  ;;  %v1274_v57 = vmul.f32 %v949_v39, %v949_v39 }
 0x117   : > { %v1670_v61 = vpack.c.bf16 %v1815_v36, %v1814_v8  ;;  %v952_v15 = vpop.f32.mrb[3].mxu0  ;;  %v1277_v29 = vmul.f32 %v1815_v36, %v1815_v36 }
 0x118   : > { %v1665_v16 = vpack.c.bf16 %v952_v15, %v949_v39  ;;  %v1236_v54 = vadd.f32 %v952_v15, %v949_v39  ;;  %v1275_v60 = vmul.f32 %v952_v15, %v952_v15 }
 0x119   : > { %1757 = vst [vmem:[%s2458_s16 + $0x8] sm:$0xff] %v1670_v61  }
 0x11a   : > { %1666 = vst [vmem:[%s2458_s16] sm:$0xff] %v1665_v16   ;;  %v1237_v3 = vadd.f32 %v1814_v8, %v1236_v54  ;;  %v1306_v17 = vadd.f32 %v1275_v60, %v1274_v57 }
 0x11c   : > { %v1307_v42 = vadd.f32 %v1306_v17, %v1276_v55  ;;  %v1818_v19 = vpop.f32.mrb[4].mxu0  ;;  %v1238_v20 = vadd.f32 %v1815_v36, %v1237_v3 }
 0x11d   : > { %v965_v35 = vpop.f32.mrb[5].mxu0  ;;  %v1280_v27 = vmul.f32 %v1818_v19, %v1818_v19 }
 0x11e   : > { %v1239_v30 = vadd.f32 %v1238_v20, %v965_v35  ;;  %v1278_v59 = vmul.f32 %v965_v35, %v965_v35  ;;  %v1308_v26 = vadd.f32 %v1307_v42, %v1277_v29  ;;  %v1819_v21 = vpop.f32.mrb[6].mxu0 }
 0x11f   : > { %v1680_v45 = vpack.c.bf16 %v1819_v21, %v1818_v19  ;;  %v968_v23 = vpop.f32.mrb[7].mxu0  ;;  %v1281_v22 = vmul.f32 %v1819_v21, %v1819_v21 }
 0x120   : > { %v1309_v24 = vadd.f32 %v1308_v26, %v1278_v59  ;;  %v1675_v13 = vpack.c.bf16 %v968_v23, %v965_v35  ;;  %v1240_v11 = vadd.f32 %v1239_v30, %v968_v23  ;;  %v1279_v51 = vmul.f32 %v968_v23, %v968_v23 }
 0x121   : > { %1759 = vst [vmem:[%s2458_s16 + $0x18] sm:$0xff] %v1680_v45  }
 0x122   : > { %1758 = vst [vmem:[%s2458_s16 + $0x10] sm:$0xff] %v1675_v13   ;;  %v1241_v31 = vadd.f32 %v1818_v19, %v1240_v11  ;;  %v1310_v33 = vadd.f32 %v1309_v24, %v1279_v51 }
 0x124   : > { %v1311_v46 = vadd.f32 %v1310_v33, %v1280_v27  ;;  %v1822_v32 = vpop.f32.mrb[8].mxu0  ;;  %v1242_v38 = vadd.f32 %v1819_v21, %v1241_v31 }
 0x125   : > { %v981_v28 = vpop.f32.mrb[9].mxu0  ;;  %v1284_v18 = vmul.f32 %v1822_v32, %v1822_v32 }
 0x126   : > { %v1243_v40 = vadd.f32 %v1242_v38, %v981_v28  ;;  %v1282_v43 = vmul.f32 %v981_v28, %v981_v28  ;;  %v1312_v25 = vadd.f32 %v1311_v46, %v1281_v22  ;;  %v1823_v44 = vpop.f32.mrb[10].mxu0 }
 0x127   : > { %v1690_v47 = vpack.c.bf16 %v1823_v44, %v1822_v32  ;;  %v984_v5 = vpop.f32.mrb[11].mxu0  ;;  %v1285_v0 = vmul.f32 %v1823_v44, %v1823_v44 }
 0x128   : > { %v1313_v49 = vadd.f32 %v1312_v25, %v1282_v43  ;;  %v1685_v53 = vpack.c.bf16 %v984_v5, %v981_v28  ;;  %v1244_v41 = vadd.f32 %v1243_v40, %v984_v5  ;;  %v1283_v58 = vmul.f32 %v984_v5, %v984_v5 }
 0x129   : > { %1761 = vst [vmem:[%s2458_s16 + $0x28] sm:$0xff] %v1690_v47  }
 0x12a   : > { %1760 = vst [vmem:[%s2458_s16 + $0x20] sm:$0xff] %v1685_v53   ;;  %v1245_v48 = vadd.f32 %v1822_v32, %v1244_v41  ;;  %v1314_v34 = vadd.f32 %v1313_v49, %v1283_v58 }
 0x12c   : > { %v1315_v62 = vadd.f32 %v1314_v34, %v1284_v18  ;;  %v1246_v14 = vadd.f32 %v1823_v44, %v1245_v48 }
 0x12e   : > { %v1316_v52 = vadd.f32 %v1315_v62, %v1285_v0 }
 0x132   : > { %v1826_v63 = vpop.f32.mrb[12].mxu0 }
 0x133   : > { %v997_v10 = vpop.f32.mrb[13].mxu0  ;;  %v1288_v12 = vmul.f32 %v1826_v63, %v1826_v63 }
 0x134   : > { %v1247_v7 = vadd.f32 %v1246_v14, %v997_v10  ;;  %v1286_v50 = vmul.f32 %v997_v10, %v997_v10  ;;  %v1827_v1 = vpop.f32.mrb[14].mxu0 }
 0x135   : > { %v1700_v2 = vpack.c.bf16 %v1827_v1, %v1826_v63  ;;  %v1000_v4 = vpop.f32.mrb[15].mxu0  ;;  %v1289_v36 = vmul.f32 %v1827_v1, %v1827_v1 }
 0x136   : > { %v1317_v9 = vadd.f32 %v1316_v52, %v1286_v50  ;;  %v1695_v6 = vpack.c.bf16 %v1000_v4, %v997_v10  ;;  %v1248_v56 = vadd.f32 %v1247_v7, %v1000_v4  ;;  %v1287_v37 = vmul.f32 %v1000_v4, %v1000_v4 }
 0x137   : > { %1763 = vst [vmem:[%s2458_s16 + $0x38] sm:$0xff] %v1700_v2  }
 0x138   : > { %1762 = vst [vmem:[%s2458_s16 + $0x30] sm:$0xff] %v1695_v6   ;;  %v1249_v8 = vadd.f32 %v1826_v63, %v1248_v56  ;;  %v1318_v39 = vadd.f32 %v1317_v9, %v1287_v37 }
 0x13a   : > { %v1319_v61 = vadd.f32 %v1318_v39, %v1288_v12  ;;  %v1250_v15 = vadd.f32 %v1827_v1, %v1249_v8 }
 0x13c   : > { %v1320_v57 = vadd.f32 %v1319_v61, %v1289_v36 }
 0x13f   : > { %v1830_v16 = vpop.f32.mrb[0].mxu1 }
 0x140   : > { %v1013_v54 = vpop.f32.mrb[1].mxu1  ;;  %v1292_v30 = vmul.f32 %v1830_v16, %v1830_v16 }
 0x141   : > { %v1251_v60 = vadd.f32 %v1250_v15, %v1013_v54  ;;  %v1290_v55 = vmul.f32 %v1013_v54, %v1013_v54  ;;  %v1831_v3 = vpop.f32.mrb[2].mxu1 }
 0x142   : > { %v1710_v17 = vpack.c.bf16 %v1831_v3, %v1830_v16  ;;  %v1016_v29 = vpop.f32.mrb[3].mxu1  ;;  %v1293_v21 = vmul.f32 %v1831_v3, %v1831_v3 }
 0x143   : > { %v1321_v42 = vadd.f32 %v1320_v57, %v1290_v55  ;;  %v1705_v19 = vpack.c.bf16 %v1016_v29, %v1013_v54  ;;  %v1252_v20 = vadd.f32 %v1251_v60, %v1016_v29  ;;  %v1291_v35 = vmul.f32 %v1016_v29, %v1016_v29 }
 0x144   : > { %1765 = vst [vmem:[%s2458_s16 + $0x48] sm:$0xff] %v1710_v17  }
 0x145   : > { %1764 = vst [vmem:[%s2458_s16 + $0x40] sm:$0xff] %v1705_v19   ;;  %v1253_v59 = vadd.f32 %v1830_v16, %v1252_v20  ;;  %v1322_v26 = vadd.f32 %v1321_v42, %v1291_v35 }
 0x147   : > { %v1323_v45 = vadd.f32 %v1322_v26, %v1292_v30  ;;  %v1254_v23 = vadd.f32 %v1831_v3, %v1253_v59 }
 0x149   : > { %v1324_v24 = vadd.f32 %v1323_v45, %v1293_v21 }
 0x151   : > { %v1834_v13 = vpop.f32.mrb[4].mxu1 }
 0x152   : > { %v1029_v11 = vpop.f32.mrb[5].mxu1  ;;  %v1296_v40 = vmul.f32 %v1834_v13, %v1834_v13 }
 0x153   : > { %v1255_v51 = vadd.f32 %v1254_v23, %v1029_v11  ;;  %v1294_v27 = vmul.f32 %v1029_v11, %v1029_v11  ;;  %v1835_v31 = vpop.f32.mrb[6].mxu1 }
 0x154   : > { %v1720_v33 = vpack.c.bf16 %v1835_v31, %v1834_v13  ;;  %v1032_v22 = vpop.f32.mrb[7].mxu1  ;;  %v1297_v44 = vmul.f32 %v1835_v31, %v1835_v31 }
 0x155   : > { %v1325_v46 = vadd.f32 %v1324_v24, %v1294_v27  ;;  %v1715_v32 = vpack.c.bf16 %v1032_v22, %v1029_v11  ;;  %v1256_v38 = vadd.f32 %v1255_v51, %v1032_v22  ;;  %v1295_v28 = vmul.f32 %v1032_v22, %v1032_v22 }
 0x156   : > { %1767 = vst [vmem:[%s2458_s16 + $0x58] sm:$0xff] %v1720_v33  }
 0x157   : > { %1766 = vst [vmem:[%s2458_s16 + $0x50] sm:$0xff] %v1715_v32   ;;  %v1257_v43 = vadd.f32 %v1834_v13, %v1256_v38  ;;  %v1326_v25 = vadd.f32 %v1325_v46, %v1295_v28 }
 0x159   : > { %v1327_v47 = vadd.f32 %v1326_v25, %v1296_v40  ;;  %v1258_v5 = vadd.f32 %v1835_v31, %v1257_v43 }
 0x15b   : > { %v1328_v49 = vadd.f32 %v1327_v47, %v1297_v44 }
 0x15c   : > { %v1838_v53 = vpop.f32.mrb[8].mxu1 }
 0x15d   : > { %v1045_v41 = vpop.f32.mrb[9].mxu1  ;;  %v1300_v10 = vmul.f32 %v1838_v53, %v1838_v53 }
 0x15e   : > { %v1259_v58 = vadd.f32 %v1258_v5, %v1045_v41  ;;  %v1298_v18 = vmul.f32 %v1045_v41, %v1045_v41  ;;  %v1839_v48 = vpop.f32.mrb[10].mxu1 }
 0x15f   : > { %v1730_v34 = vpack.c.bf16 %v1839_v48, %v1838_v53  ;;  %v1048_v0 = vpop.f32.mrb[11].mxu1  ;;  %v1301_v1 = vmul.f32 %v1839_v48, %v1839_v48 }
 0x160   : > { %v1329_v62 = vadd.f32 %v1328_v49, %v1298_v18  ;;  %v1725_v14 = vpack.c.bf16 %v1048_v0, %v1045_v41  ;;  %v1260_v52 = vadd.f32 %v1259_v58, %v1048_v0  ;;  %v1299_v63 = vmul.f32 %v1048_v0, %v1048_v0 }
 0x161   : > { %1769 = vst [vmem:[%s2458_s16 + $0x68] sm:$0xff] %v1730_v34  }
 0x162   : > { %1768 = vst [vmem:[%s2458_s16 + $0x60] sm:$0xff] %v1725_v14   ;;  %v1261_v7 = vadd.f32 %v1838_v53, %v1260_v52  ;;  %v1330_v50 = vadd.f32 %v1329_v62, %v1299_v63 }
 0x164   : > { %v1331_v2 = vadd.f32 %v1330_v50, %v1300_v10  ;;  %v1262_v4 = vadd.f32 %v1839_v48, %v1261_v7 }
 0x166   : > { %v1842_v9 = vpop.f32.mrb[12].mxu1  ;;  %v1332_v6 = vadd.f32 %v1331_v2, %v1301_v1 }
 0x167   : > { %v1061_v56 = vpop.f32.mrb[13].mxu1  ;;  %v1304_v54 = vmul.f32 %v1842_v9, %v1842_v9 }
 0x168   : > { %v1263_v37 = vadd.f32 %v1262_v4, %v1061_v56  ;;  %v1302_v12 = vmul.f32 %v1061_v56, %v1061_v56  ;;  %v1843_v8 = vpop.f32.mrb[14].mxu1 }
 0x169   : > { %v1740_v39 = vpack.c.bf16 %v1843_v8, %v1842_v9  ;;  %v1064_v36 = vpop.f32.mrb[15].mxu1  ;;  %v1305_v3 = vmul.f32 %v1843_v8, %v1843_v8 }
 0x16a   : > { %v1333_v61 = vadd.f32 %v1332_v6, %v1302_v12  ;;  %v1735_v15 = vpack.c.bf16 %v1064_v36, %v1061_v56  ;;  %v1264_v57 = vadd.f32 %v1263_v37, %v1064_v36  ;;  %v1303_v16 = vmul.f32 %v1064_v36, %v1064_v36 }
 0x16b   : > { %1771 = vst [vmem:[%s2458_s16 + $0x78] sm:$0xff] %v1740_v39  }
 0x16c   : > { %1770 = vst [vmem:[%s2458_s16 + $0x70] sm:$0xff] %v1735_v15   ;;  %v1265_v60 = vadd.f32 %v1842_v9, %v1264_v57  ;;  %v1334_v55 = vadd.f32 %v1333_v61, %v1303_v16 }
 0x16e   : > { %v1266_v17 = vadd.f32 %v1843_v8, %v1265_v60  ;;  %v1335_v29 = vadd.f32 %v1334_v55, %v1304_v54 }
 0x170   : > { %v1267_v42 = vrot.slane %v1266_v17, 4  ;;  %v1336_v19 = vadd.f32 %v1335_v29, %v1305_v3 }
 0x172   : > { %v1268_v20 = vadd.f32 %v1267_v42, %v1266_v17  ;;  %v1337_v35 = vrot.slane %v1336_v19, 4 }
 0x174   : > { %v1269_v30 = vrot.slane %v1268_v20, 2  ;;  %v1338_v59 = vadd.f32 %v1337_v35, %v1336_v19 }
 0x176   : > { %v1270_v26 = vadd.f32 %v1269_v30, %v1268_v20  ;;  %v1339_v21 = vrot.slane %v1338_v59, 2 }
 0x178   : > { %v1271_v45 = vrot.slane %v1270_v26, 1  ;;  %v1340_v23 = vadd.f32 %v1339_v21, %v1338_v59 }
 0x17a   : > { %v1272_v24 = vadd.f32 %v1271_v45, %v1270_v26  ;;  %v1341_v13 = vrot.slane %v1340_v23, 1 }
 0x17c   : > { %1273 = vst [vmem:[%s358_s18] sm:$0x1] %v1272_v24  ;;  %v1342_v11 = vadd.f32 %v1341_v13, %v1340_v23 }
 0x17e   : > { %1343 = vst [vmem:[%s364_s21] sm:$0x1] %v1342_v11 }
 0x17f PF: > { %s18_s26 = sadd.s32 1, %s2042_s26   ;;  %s2501_s24 = smov %s2038_s25 }
 0x180   : > { %p15_p5 = scmp.ge.s32.totalorder %s18_s26, 4   ;;  %s2502_s25 = smov %s2504_s27 }
 0x182   :  { %17 = sbr.rel (!%p15_p5) target bundleno = 2 (0x2), region = 97 }

// kernel: mbconv_forward.4
= control target key start
LH: loop header
LB: loop body
LE: loop exit
PB: predicated region body
PF: predicated region fallthrough
CT: control target
= control target key end

     0   :  { %s1994_s18 = smov 0   ;;  %s1996_s19 = smov 0   ;;  %s2660_s0 = inlined_call_operand.vmem [shape: f32[2,18,18,128], index: 0, kind: input, shape index: {}]   ;;  %s2661_s1 = inlined_call_operand.vmem [shape: f32[2,2,2,18,128], index: 1, kind: input, shape index: {}]   ;;  %s2662_s2 = inlined_call_operand.vmem [shape: f32[9,128], index: 2, kind: input, shape index: {}]   ;;  %s2663_s3 = inlined_call_operand.vmem [shape: bf16[2,256,128], index: 3, kind: output, shape index: {0}]   ;;  %s2664_s4 = inlined_call_operand.vmem [shape: f32[2,2,1,128], index: 4, kind: output, shape index: {1}]   ;;  %s2665_s5 = inlined_call_operand.vmem [shape: f32[2,2,1,128], index: 5, kind: output, shape index: {2}]  }
   0x1   :  { %s1998_s20 = smov 0   ;;  %s2000_s21 = smov 0  }
   0x2   :  { %s2002_s22 = smov 0  }
   0x3 LB: > { %s25_s23 = sadd.s32 1, %s1954_s20  ;;  %s28_s24 = sadd.s32 1, %s1958_s21  ;;  %s1962_s22 = sphi %s2002_s22, %s16_s22   ;;  %s1958_s21 = sphi %s2000_s21, %s2670_s21   ;;  %s1954_s20 = sphi %s1998_s20, %s2669_s20   ;;  %s1950_s19 = sphi %s1996_s19, %s2668_s19   ;;  %s1946_s18 = sphi %s1994_s18, %s2667_s18  }
   0x4   : > { %p26_p0 = scmp.ge.s32.totalorder %s25_s23, 2  ;;  %p1725_p1 = scmp.ge.s32.totalorder %s1962_s22, 1 }
   0x5   : > { %p244_p2 = scmp.lt.s32.totalorder %s1962_s22, 5 }
   0x6   : > { %s2672_s23 = smov (%p26_p0, %s25_s23), 0  ;;  %s2674_s24 = smov (!%p26_p0, %s28_s24), %s1958_s21 }
   0x7   : > { %p245_p3 = pnand %p1725_p1, %p244_p2  ;;  %p30_p4 = scmp.ge.s32.totalorder %s2674_s24, 2 }
   0x8   : > { %s1726_s25 = sshll.u32 (!%p245_p3), %s1946_s18, 3  ;;  %p315_p5 = scmp.lt.s32.totalorder (!%p245_p3), %s1950_s19, 1  ;;  %v368_v0 = vlaneseq (!%p245_p3)  ;;  %v363_v2 = vld [vmem:[%s2662_s2] sm:$0xff] (!%p245_p3)  ;;  %vm386_vm0 = vcmask (!%p245_p3), 1046528   ;;  %vm406_vm1 = vcmask (!%p245_p3), 1045504  }
   0x9   : > { %s2676_s24 = smov (%p30_p4, %s2674_s24), 0  ;;  %248 = sbr.rel (%p245_p3) target bundleno = 219 (0xdb), region = 32 }
   0xa   : > { %p317_p6 = scmp.lt.s32.totalorder (!%p245_p3), %s1726_s25, 17  ;;  %v369_v1 = vshrl.u32 (!%p245_p3), %v368_v0, 7  ;;  %s1729_s10 = sshll.u32 (!%p245_p3), %s1946_s18, 4  ;;  %v2108_v63 = vld [vmem:[%s2662_s2 + $0x8] ss:$0 sm:$0xff] (!%p245_p3) }
   0xb   : > { %p2088_p7 = scmp.lt.s32.totalorder (!%p245_p3), %s1729_s10, 31  ;;  %p332_p8 = scmp.lt.s32.totalorder (!%p245_p3), %s1946_s18, 1 }
   0xc   : > { %v370_v3 = vsub.s32 (!%p245_p3), 0, %v369_v1  ;;  %v378_v4 = vsub.s32 (!%p245_p3), 1, %v369_v1  ;;  %v398_v5 = vsub.s32 (!%p245_p3), 2, %v369_v1  ;;  %v422_v6 = vsub.s32 (!%p245_p3), 3, %v369_v1 }
   0xd   : > { %v430_v7 = vsub.s32 (!%p245_p3), 4, %v369_v1  ;;  %v449_v8 = vsub.s32 (!%p245_p3), 5, %v369_v1  ;;  %v472_v9 = vsub.s32 (!%p245_p3), 6, %v369_v1  ;;  %v480_v10 = vsub.s32 (!%p245_p3), 7, %v369_v1 }
   0xe   : > { %v2033_v11 = vrot.slane (!%p245_p3), %v363_v2, %v370_v3  ;;  %v2035_v12 = vrot.slane (!%p245_p3), %v363_v2, %v378_v4  ;;  %v2037_v13 = vrot.slane (!%p245_p3), %v363_v2, %v398_v5  ;;  %v2044_v14 = vrot.slane (!%p245_p3), %v363_v2, %v422_v6 }
   0xf   : > { %v2049_v18 = vrot.slane (!%p245_p3), %v363_v2, %v430_v7  ;;  %v2051_v19 = vrot.slane (!%p245_p3), %v363_v2, %v449_v8  ;;  %v2053_v20 = vrot.slane (!%p245_p3), %v363_v2, %v472_v9  ;;  %v2055_v21 = vrot.slane (!%p245_p3), %v363_v2, %v480_v10 }
  0x10   : > { %s2678_s19 = smov (!%p315_p5, %s1950_s19), 1  ;;  %s2680_s25 = smov (!%p317_p6, %s1726_s25), 17 }
  0x11   : > { %s1880_s26 = smul.u32 54, %s2678_s19  ;;  %s2682_s10 = smov (!%p2088_p7, %s1729_s10), 31 }
  0x12   : > { %s1879_s29 = smul.u32 3, %s2680_s25  ;;  %s1730_s14 = sshll.u32 %s2678_s19, 5 }
  0x13   : > { %s345_s15 = sadd.s32 %s1730_s14, %s2682_s10  ;;  %s2684_s18 = smov (!%p332_p8, %s1946_s18), 1 }
  0x14   : > { %s321_s30 = sadd.s32 %s1880_s26, %s1879_s29  ;;  %s1731_s16 = sshll.u32 %s345_s15, 2 }
  0x15   : > { %s1727_s6 = sshll.u32 %s321_s30, 3  ;;  %s2157_s26 = scalar_lea.vmem %s2663_s3, %s1731_s16 }
  0x16   : > { %s2042_s9 = scalar_lea.vmem %s2660_s0, %s1727_s6  ;;  %s1882_s27 = smul.u32 12, %s2678_s19 }
  0x17   : > { %v365_v15 = vld [vmem:[%s2042_s9] sm:$0xff]  ;;  %v366_v16 = vld [vmem:[%s2042_s9 + $0x8] sm:$0xff]  ;;  %v367_v17 = vld [vmem:[%s2042_s9 + $0x10] sm:$0x3]  ;;  %s1881_s28 = smul.u32 6, %s2684_s18 }
  0x18   : > { %v372_v22 = vmul.f32 %v2033_v11, %v365_v15  ;;  %v373_v23 = vmul.f32 %v2033_v11, %v366_v16  ;;  %v380_v24 = vmul.f32 %v2035_v12, %v365_v15  ;;  %v381_v25 = vmul.f32 %v2035_v12, %v366_v16  ;;  %v2066_v30 = vld [vmem:[%s2042_s9 + $0x18] sm:$0xff]  ;;  %v2069_v31 = vld [vmem:[%s2042_s9 + $0x20] sm:$0xff]  ;;  %v1736_v32 = vld [vmem:[%s2042_s9 + $0x28] sm:$0x3] }
  0x19   : > { %v382_v26 = vmul.f32 %v2035_v12, %v367_v17  ;;  %v400_v27 = vmul.f32 %v2037_v13, %v365_v15  ;;  %v401_v28 = vmul.f32 %v2037_v13, %v366_v16  ;;  %v402_v29 = vmul.f32 %v2037_v13, %v367_v17  ;;  %v2098_v57 = vld [vmem:[%s2042_s9 + $0x30] sm:$0xff]  ;;  %v1739_v61 = vld [vmem:[%s2042_s9 + $0x40] sm:$0x3]  ;;  %v2111_v4 = vld [vmem:[%s2042_s9 + $0x38] sm:$0xff]  ;;  %s2512_s29 = sadd.s32 %s1882_s27, %s1881_s28 }
  0x1a   : > { %v387_v33 = vrot.slane %v380_v24, 1  ;;  %v388_v34 = vrot.slane %v381_v25, 1  ;;  %v424_v35 = vmul.f32 %v2066_v30, %v2044_v14  ;;  %v425_v36 = vmul.f32 %v2069_v31, %v2044_v14  ;;  %s1728_s30 = sshll.u32 %s2512_s29, 3 }
  0x1b   : > { %v390_v37 = vrot.slane %v382_v26, 1  ;;  %v407_v38 = vrot.slane %v400_v27, 2  ;;  %v408_v39 = vrot.slane %v401_v28, 2  ;;  %v410_v40 = vrot.slane %v402_v29, 2  ;;  %s2535_s8 = scalar_lea.vmem %s2661_s1, %s1728_s30 }
  0x1c   : > { %v389_v41 = vsel %vm386_vm0, %v387_v33, %v388_v34  ;;  %v432_v42 = vmul.f32 %v2066_v30, %v2049_v18  ;;  %v433_v43 = vmul.f32 %v2069_v31, %v2049_v18  ;;  %v434_v44 = vmul.f32 %v1736_v32, %v2049_v18 }
  0x1d   : > { %v391_v45 = vsel %vm386_vm0, %v388_v34, %v390_v37  ;;  %v394_v46 = vadd.f32 %v389_v41, %v372_v22  ;;  %v409_v47 = vsel %vm406_vm1, %v407_v38, %v408_v39  ;;  %v411_v48 = vsel %vm406_vm1, %v408_v39, %v410_v40  ;;  %v1745_v34 = vld [vmem:[%s2042_s9 + $0x28] sm:$0x3] }
  0x1e   : > { %v395_v49 = vadd.f32 %v391_v45, %v373_v23  ;;  %v438_v50 = vrot.slane %v432_v42, 1  ;;  %v439_v51 = vrot.slane %v433_v43, 1  ;;  %v441_v52 = vrot.slane %v434_v44, 1 }
  0x1f   : > { %v414_v53 = vadd.f32 %v409_v47, %v394_v46  ;;  %v451_v54 = vmul.f32 %v2066_v30, %v2051_v19  ;;  %v452_v55 = vmul.f32 %v2069_v31, %v2051_v19  ;;  %v453_v56 = vmul.f32 %v1736_v32, %v2051_v19 }
  0x20   : > { %v415_v58 = vadd.f32 %v411_v48, %v395_v49  ;;  %v440_v59 = vsel %vm386_vm0, %v438_v50, %v439_v51  ;;  %v442_v60 = vsel %vm386_vm0, %v439_v51, %v441_v52  ;;  %v474_v62 = vmul.f32 %v2098_v57, %v2053_v20 }
  0x21   : > { %v426_v0 = vadd.f32 %v424_v35, %v414_v53  ;;  %v457_v1 = vrot.slane %v451_v54, 2  ;;  %v458_v2 = vrot.slane %v452_v55, 2  ;;  %v460_v3 = vrot.slane %v453_v56, 2 }
  0x22   : > { %v427_v5 = vadd.f32 %v425_v36, %v415_v58  ;;  %v475_v6 = vmul.f32 %v2111_v4, %v2053_v20  ;;  %v482_v7 = vmul.f32 %v2098_v57, %v2055_v21  ;;  %v483_v8 = vmul.f32 %v2111_v4, %v2055_v21 }
  0x23   : > { %v445_v9 = vadd.f32 %v440_v59, %v426_v0  ;;  %v459_v10 = vsel %vm406_vm1, %v457_v1, %v458_v2  ;;  %v461_v15 = vsel %vm406_vm1, %v458_v2, %v460_v3  ;;  %v484_v16 = vmul.f32 %v1739_v61, %v2055_v21 }
  0x24   : > { %v446_v17 = vadd.f32 %v442_v60, %v427_v5  ;;  %v488_v22 = vrot.slane %v482_v7, 1  ;;  %v489_v23 = vrot.slane %v483_v8, 1  ;;  %v501_v24 = vmul.f32 %v2108_v63, %v2098_v57  ;;  %v1748_v5 = vld [vmem:[%s2042_s9 + $0x40] sm:$0x3] }
  0x25   : > { %v464_v25 = vadd.f32 %v459_v10, %v445_v9  ;;  %v491_v26 = vrot.slane %v484_v16, 1  ;;  %v502_v27 = vmul.f32 %v2108_v63, %v2111_v4  ;;  %v503_v28 = vmul.f32 %v2108_v63, %v1739_v61 }
  0x26   : > { %v465_v29 = vadd.f32 %v461_v15, %v446_v17  ;;  %v490_v32 = vsel %vm386_vm0, %v488_v22, %v489_v23  ;;  %v507_v33 = vrot.slane %v501_v24, 2  ;;  %v547_v35 = vmul.f32 %v2066_v30, %v2033_v11 }
  0x27   : > { %v476_v36 = vadd.f32 %v474_v62, %v464_v25  ;;  %v492_v37 = vsel %vm386_vm0, %v489_v23, %v491_v26  ;;  %v508_v38 = vrot.slane %v502_v27, 2  ;;  %v510_v39 = vrot.slane %v503_v28, 2 }
  0x28   : > { %v477_v40 = vadd.f32 %v475_v6, %v465_v29  ;;  %v548_v41 = vmul.f32 %v2069_v31, %v2033_v11  ;;  %v551_v42 = vmul.f32 %v2066_v30, %v2035_v12  ;;  %v552_v43 = vmul.f32 %v2069_v31, %v2035_v12 }
  0x29   : > { %v495_v44 = vadd.f32 %v490_v32, %v476_v36  ;;  %v509_v45 = vsel %vm406_vm1, %v507_v33, %v508_v38  ;;  %v511_v46 = vsel %vm406_vm1, %v508_v38, %v510_v39  ;;  %v553_v47 = vmul.f32 %v1745_v34, %v2035_v12 }
  0x2a   : > { %v496_v48 = vadd.f32 %v492_v37, %v477_v40  ;;  %v557_v49 = vrot.slane %v551_v42, 1  ;;  %v558_v50 = vrot.slane %v552_v43, 1  ;;  %v566_v51 = vmul.f32 %v2066_v30, %v2037_v13 }
  0x2b   : > { %v514_v52 = vadd.f32 %v509_v45, %v495_v44  ;;  %v560_v53 = vrot.slane %v553_v47, 1  ;;  %v567_v54 = vmul.f32 %v2069_v31, %v2037_v13  ;;  %v568_v55 = vmul.f32 %v1745_v34, %v2037_v13 }
  0x2c   : > { %v515_v56 = vadd.f32 %v511_v46, %v496_v48  ;;  %v559_v58 = vsel %vm386_vm0, %v557_v49, %v558_v50  ;;  %v572_v59 = vrot.slane %v566_v51, 2  ;;  %v584_v60 = vmul.f32 %v2098_v57, %v2044_v14  ;;  %v2179_v48 = vld [vmem:[%s2042_s9 + $0x48] sm:$0xff]  ;;  %v2182_v49 = vld [vmem:[%s2042_s9 + $0x50] sm:$0xff] }
  0x2d   : > { %v534_v30 = vmul.f32 %v514_v52, %v514_v52  ;;  %v561_v61 = vsel %vm386_vm0, %v558_v50, %v560_v53  ;;  %v564_v62 = vadd.f32 %v559_v58, %v547_v35  ;;  %v573_v31 = vrot.slane %v567_v54, 2  ;;  %v1751_v50 = vld [vmem:[%s2042_s9 + $0x58] sm:$0x3] }
  0x2e   : > { %v1835_v0 = vpack.c.bf16 %v515_v56, %v514_v52  ;;  %v526_v1 = vadd.f32 %v515_v56, %v514_v52  ;;  %v535_v2 = vmul.f32 %v515_v56, %v515_v56  ;;  %v565_v3 = vadd.f32 %v561_v61, %v548_v41 }
  0x2f   : > { %v574_v6 = vsel %vm406_vm1, %v572_v59, %v573_v31  ;;  %v575_v7 = vrot.slane %v568_v55, 2  ;;  %v585_v8 = vmul.f32 %v2111_v4, %v2044_v14  ;;  %v588_v9 = vmul.f32 %v2098_v57, %v2049_v18 }
  0x30   : > { %1836 = vst [vmem:[%s2157_s26] sm:$0xff] %v1835_v0   ;;  %v527_v10 = vrot.slane %v526_v1, 4  ;;  %v536_v15 = vadd.f32 %v535_v2, %v534_v30  ;;  %v579_v16 = vadd.f32 %v574_v6, %v564_v62  ;;  %v589_v17 = vmul.f32 %v2111_v4, %v2049_v18 }
  0x31   : > { %v576_v22 = vsel %vm406_vm1, %v573_v31, %v575_v7  ;;  %v590_v23 = vmul.f32 %v1748_v5, %v2049_v18  ;;  %v594_v24 = vrot.slane %v588_v9, 1  ;;  %v603_v25 = vmul.f32 %v2098_v57, %v2051_v19 }
  0x32   : > { %v528_v26 = vadd.f32 %v527_v10, %v526_v1  ;;  %v537_v27 = vrot.slane %v536_v15, 4  ;;  %v580_v28 = vadd.f32 %v576_v22, %v565_v3  ;;  %v586_v29 = vadd.f32 %v584_v60, %v579_v16 }
  0x33   : > { %v595_v32 = vrot.slane %v589_v17, 1  ;;  %v597_v33 = vrot.slane %v590_v23, 1  ;;  %v604_v34 = vmul.f32 %v2111_v4, %v2051_v19  ;;  %v605_v35 = vmul.f32 %v1748_v5, %v2051_v19 }
  0x34   : > { %v529_v36 = vrot.slane %v528_v26, 2  ;;  %v538_v37 = vadd.f32 %v537_v27, %v536_v15  ;;  %v587_v38 = vadd.f32 %v585_v8, %v580_v28  ;;  %v609_v39 = vrot.slane %v603_v25, 2  ;;  %v1756_v15 = vld [vmem:[%s2042_s9 + $0x40] sm:$0x3] }
  0x35   : > { %v596_v40 = vsel %vm386_vm0, %v594_v24, %v595_v32  ;;  %v598_v41 = vsel %vm386_vm0, %v595_v32, %v597_v33  ;;  %v610_v42 = vrot.slane %v604_v34, 2  ;;  %v612_v43 = vrot.slane %v605_v35, 2 }
  0x36   : > { %v530_v44 = vadd.f32 %v529_v36, %v528_v26  ;;  %v539_v45 = vrot.slane %v538_v37, 2  ;;  %v601_v46 = vadd.f32 %v596_v40, %v586_v29  ;;  %v602_v47 = vadd.f32 %v598_v41, %v587_v38 }
  0x37   : > { %v611_v51 = vsel %vm406_vm1, %v609_v39, %v610_v42  ;;  %v613_v52 = vsel %vm406_vm1, %v610_v42, %v612_v43  ;;  %v622_v53 = vmul.f32 %v2179_v48, %v2053_v20  ;;  %v623_v54 = vmul.f32 %v2182_v49, %v2053_v20 }
  0x38   : > { %v531_v55 = vrot.slane %v530_v44, 1  ;;  %v540_v56 = vadd.f32 %v539_v45, %v538_v37  ;;  %v616_v58 = vadd.f32 %v611_v51, %v601_v46  ;;  %v617_v59 = vadd.f32 %v613_v52, %v602_v47 }
  0x39   : > { %v626_v60 = vmul.f32 %v2179_v48, %v2055_v21  ;;  %v627_v30 = vmul.f32 %v2182_v49, %v2055_v21  ;;  %v628_v61 = vmul.f32 %v1751_v50, %v2055_v21  ;;  %v641_v62 = vmul.f32 %v2179_v48, %v2108_v63 }
  0x3a   : > { %v2198_v31 = vadd.f32 %v531_v55, %v530_v44  ;;  %v541_v0 = vrot.slane %v540_v56, 1  ;;  %v624_v1 = vadd.f32 %v622_v53, %v616_v58  ;;  %v625_v2 = vadd.f32 %v623_v54, %v617_v59  ;;  %v1759_v55 = vld [vmem:[%s2042_s9 + $0x58] sm:$0x3] }
  0x3b   : > { %v632_v3 = vrot.slane %v626_v60, 1  ;;  %v633_v5 = vrot.slane %v627_v30, 1  ;;  %v635_v6 = vrot.slane %v628_v61, 1  ;;  %v642_v7 = vmul.f32 %v2182_v49, %v2108_v63 }
  0x3c   : > { %v2202_v8 = vadd.f32 %v541_v0, %v540_v56  ;;  %v643_v9 = vmul.f32 %v1751_v50, %v2108_v63  ;;  %v647_v10 = vrot.slane %v641_v62, 2  ;;  %v687_v16 = vmul.f32 %v2098_v57, %v2033_v11 }
  0x3d   : > { %v634_v17 = vsel %vm386_vm0, %v632_v3, %v633_v5  ;;  %v636_v22 = vsel %vm386_vm0, %v633_v5, %v635_v6  ;;  %v648_v23 = vrot.slane %v642_v7, 2  ;;  %v688_v24 = vmul.f32 %v2111_v4, %v2033_v11 }
  0x3e   : > { %v639_v25 = vadd.f32 %v634_v17, %v624_v1  ;;  %v640_v26 = vadd.f32 %v636_v22, %v625_v2  ;;  %v650_v27 = vrot.slane %v643_v9, 2  ;;  %v691_v28 = vmul.f32 %v2098_v57, %v2035_v12 }
  0x3f   : > { %v649_v29 = vsel %vm406_vm1, %v647_v10, %v648_v23  ;;  %v692_v32 = vmul.f32 %v2111_v4, %v2035_v12  ;;  %v693_v33 = vmul.f32 %v1756_v15, %v2035_v12  ;;  %v706_v34 = vmul.f32 %v2098_v57, %v2037_v13 }
  0x40   : > { %v651_v35 = vsel %vm406_vm1, %v648_v23, %v650_v27  ;;  %v654_v36 = vadd.f32 %v649_v29, %v639_v25  ;;  %v697_v37 = vrot.slane %v691_v28, 1  ;;  %v707_v38 = vmul.f32 %v2111_v4, %v2037_v13 }
  0x41   : > { %v655_v39 = vadd.f32 %v651_v35, %v640_v26  ;;  %v698_v40 = vrot.slane %v692_v32, 1  ;;  %v700_v41 = vrot.slane %v693_v33, 1  ;;  %v708_v42 = vmul.f32 %v1756_v15, %v2037_v13  ;;  %v2247_v33 = vld [vmem:[%s2042_s9 + $0x60] sm:$0xff] }
  0x42   : > { %v674_v43 = vmul.f32 %v654_v36, %v654_v36  ;;  %v712_v44 = vrot.slane %v706_v34, 2  ;;  %v713_v45 = vrot.slane %v707_v38, 2  ;;  %v724_v57 = vmul.f32 %v2179_v48, %v2044_v14  ;;  %v1762_v34 = vld [vmem:[%s2042_s9 + $0x70] sm:$0x3]  ;;  %v2251_v38 = vld [vmem:[%s2042_s9 + $0x68] sm:$0xff] }
  0x43   : > { %v1840_v46 = vpack.c.bf16 %v655_v39, %v654_v36  ;;  %v666_v47 = vadd.f32 %v655_v39, %v654_v36  ;;  %v675_v50 = vmul.f32 %v655_v39, %v655_v39  ;;  %v699_v51 = vsel %vm386_vm0, %v697_v37, %v698_v40 }
  0x44   : > { %v701_v4 = vsel %vm386_vm0, %v698_v40, %v700_v41  ;;  %v704_v52 = vadd.f32 %v699_v51, %v687_v16  ;;  %v714_v53 = vsel %vm406_vm1, %v712_v44, %v713_v45  ;;  %v715_v54 = vrot.slane %v708_v42, 2 }
  0x45   : > { %1872 = vst [vmem:[%s2157_s26 + $0x8] sm:$0xff] %v1840_v46   ;;  %v667_v56 = vrot.slane %v666_v47, 4  ;;  %v676_v58 = vadd.f32 %v675_v50, %v674_v43  ;;  %v705_v59 = vadd.f32 %v701_v4, %v688_v24  ;;  %v725_v60 = vmul.f32 %v2182_v49, %v2044_v14 }
  0x46   : > { %v716_v30 = vsel %vm406_vm1, %v713_v45, %v715_v54  ;;  %v719_v61 = vadd.f32 %v714_v53, %v704_v52  ;;  %v728_v62 = vmul.f32 %v2179_v48, %v2049_v18  ;;  %v729_v0 = vmul.f32 %v2182_v49, %v2049_v18 }
  0x47   : > { %v668_v1 = vadd.f32 %v667_v56, %v666_v47  ;;  %v677_v2 = vrot.slane %v676_v58, 4  ;;  %v720_v3 = vadd.f32 %v716_v30, %v705_v59  ;;  %v730_v5 = vmul.f32 %v1759_v55, %v2049_v18 }
  0x48   : > { %v726_v6 = vadd.f32 %v724_v57, %v719_v61  ;;  %v734_v7 = vrot.slane %v728_v62, 1  ;;  %v735_v9 = vrot.slane %v729_v0, 1  ;;  %v743_v10 = vmul.f32 %v2179_v48, %v2051_v19 }
  0x49   : > { %v669_v15 = vrot.slane %v668_v1, 2  ;;  %v678_v16 = vadd.f32 %v677_v2, %v676_v58  ;;  %v727_v17 = vadd.f32 %v725_v60, %v720_v3  ;;  %v737_v22 = vrot.slane %v730_v5, 1 }
  0x4a   : > { %v736_v23 = vsel %vm386_vm0, %v734_v7, %v735_v9  ;;  %v744_v24 = vmul.f32 %v2182_v49, %v2051_v19  ;;  %v745_v25 = vmul.f32 %v1759_v55, %v2051_v19  ;;  %v749_v26 = vrot.slane %v743_v10, 2 }
  0x4b   : > { %v670_v27 = vadd.f32 %v669_v15, %v668_v1  ;;  %v679_v28 = vrot.slane %v678_v16, 2  ;;  %v738_v29 = vsel %vm386_vm0, %v735_v9, %v737_v22  ;;  %v741_v32 = vadd.f32 %v736_v23, %v726_v6  ;;  %v1767_v1 = vld [vmem:[%s2042_s9 + $0x58] sm:$0x3] }
  0x4c   : > { %v742_v35 = vadd.f32 %v738_v29, %v727_v17  ;;  %v750_v36 = vrot.slane %v744_v24, 2  ;;  %v752_v37 = vrot.slane %v745_v25, 2  ;;  %v762_v39 = vmul.f32 %v2247_v33, %v2053_v20 }
  0x4d   : > { %v671_v40 = vrot.slane %v670_v27, 1  ;;  %v680_v41 = vadd.f32 %v679_v28, %v678_v16  ;;  %v763_v42 = vmul.f32 %v2251_v38, %v2053_v20  ;;  %v766_v43 = vmul.f32 %v2247_v33, %v2055_v21 }
  0x4e   : > { %v751_v44 = vsel %vm406_vm1, %v749_v26, %v750_v36  ;;  %v753_v45 = vsel %vm406_vm1, %v750_v36, %v752_v37  ;;  %v767_v57 = vmul.f32 %v2251_v38, %v2055_v21  ;;  %v768_v46 = vmul.f32 %v1762_v34, %v2055_v21 }
  0x4f   : > { %v672_v47 = vadd.f32 %v671_v40, %v670_v27  ;;  %v681_v50 = vrot.slane %v680_v41, 1  ;;  %v756_v51 = vadd.f32 %v751_v44, %v741_v32  ;;  %v757_v4 = vadd.f32 %v753_v45, %v742_v35 }
  0x50   : > { %v772_v52 = vrot.slane %v766_v43, 1  ;;  %v773_v53 = vrot.slane %v767_v57, 1  ;;  %v775_v54 = vrot.slane %v768_v46, 1  ;;  %v781_v55 = vmul.f32 %v2247_v33, %v2108_v63 }
  0x51   : > { %v2267_v56 = vadd.f32 %v672_v47, %v2198_v31  ;;  %v682_v58 = vadd.f32 %v681_v50, %v680_v41  ;;  %v764_v59 = vadd.f32 %v762_v39, %v756_v51  ;;  %v765_v60 = vadd.f32 %v763_v42, %v757_v4  ;;  %v1770_v47 = vld [vmem:[%s2042_s9 + $0x70] sm:$0x3] }
  0x52   : > { %v774_v30 = vsel %vm386_vm0, %v772_v52, %v773_v53  ;;  %v776_v61 = vsel %vm386_vm0, %v773_v53, %v775_v54  ;;  %v782_v62 = vmul.f32 %v2251_v38, %v2108_v63  ;;  %v783_v0 = vmul.f32 %v1762_v34, %v2108_v63 }
  0x53   : > { %v2276_v2 = vadd.f32 %v682_v58, %v2202_v8  ;;  %v779_v3 = vadd.f32 %v774_v30, %v764_v59  ;;  %v780_v5 = vadd.f32 %v776_v61, %v765_v60  ;;  %v787_v31 = vrot.slane %v781_v55, 2 }
  0x54   : > { %v788_v6 = vrot.slane %v782_v62, 2  ;;  %v790_v7 = vrot.slane %v783_v0, 2  ;;  %v827_v9 = vmul.f32 %v2179_v48, %v2033_v11  ;;  %v828_v10 = vmul.f32 %v2182_v49, %v2033_v11 }
  0x55   : > { %v831_v15 = vmul.f32 %v2179_v48, %v2035_v12  ;;  %v832_v16 = vmul.f32 %v2182_v49, %v2035_v12  ;;  %v833_v8 = vmul.f32 %v1767_v1, %v2035_v12  ;;  %v846_v17 = vmul.f32 %v2179_v48, %v2037_v13 }
  0x56   : > { %v789_v22 = vsel %vm406_vm1, %v787_v31, %v788_v6  ;;  %v791_v23 = vsel %vm406_vm1, %v788_v6, %v790_v7  ;;  %v847_v24 = vmul.f32 %v2182_v49, %v2037_v13  ;;  %v848_v25 = vmul.f32 %v1767_v1, %v2037_v13 }
  0x57   : > { %v794_v26 = vadd.f32 %v789_v22, %v779_v3  ;;  %v795_v27 = vadd.f32 %v791_v23, %v780_v5  ;;  %v837_v28 = vrot.slane %v831_v15, 1  ;;  %v838_v29 = vrot.slane %v832_v16, 1 }
  0x58   : > { %v840_v32 = vrot.slane %v833_v8, 1  ;;  %v852_v34 = vrot.slane %v846_v17, 2  ;;  %v853_v35 = vrot.slane %v847_v24, 2  ;;  %v855_v36 = vrot.slane %v848_v25, 2  ;;  %v2316_v8 = vld [vmem:[%s2042_s9 + $0x78] sm:$0xff]  ;;  %v2320_v24 = vld [vmem:[%s2042_s9 + $0x80] sm:$0xff] }
  0x59   : > { %v1845_v48 = vpack.c.bf16 %v795_v27, %v794_v26  ;;  %v806_v37 = vadd.f32 %v795_v27, %v794_v26  ;;  %v814_v39 = vmul.f32 %v794_v26, %v794_v26  ;;  %v815_v40 = vmul.f32 %v795_v27, %v795_v27 }
  0x5a   : > { %v839_v41 = vsel %vm386_vm0, %v837_v28, %v838_v29  ;;  %v841_v49 = vsel %vm386_vm0, %v838_v29, %v840_v32  ;;  %v854_v42 = vsel %vm406_vm1, %v852_v34, %v853_v35  ;;  %v856_v43 = vsel %vm406_vm1, %v853_v35, %v855_v36  ;;  %v1773_v29 = vld [vmem:[%s2042_s9 + $0x88] sm:$0x3] }
  0x5b   : > { %1873 = vst [vmem:[%s2157_s26 + $0x10] sm:$0xff] %v1845_v48   ;;  %v807_v44 = vrot.slane %v806_v37, 4  ;;  %v816_v45 = vadd.f32 %v815_v40, %v814_v39  ;;  %v844_v57 = vadd.f32 %v839_v41, %v827_v9  ;;  %v845_v46 = vadd.f32 %v841_v49, %v828_v10 }
  0x5c   : > { %v864_v50 = vmul.f32 %v2247_v33, %v2044_v14  ;;  %v865_v51 = vmul.f32 %v2251_v38, %v2044_v14  ;;  %v868_v4 = vmul.f32 %v2247_v33, %v2049_v18  ;;  %v869_v52 = vmul.f32 %v2251_v38, %v2049_v18 }
  0x5d   : > { %v808_v53 = vadd.f32 %v807_v44, %v806_v37  ;;  %v817_v54 = vrot.slane %v816_v45, 4  ;;  %v859_v55 = vadd.f32 %v854_v42, %v844_v57  ;;  %v860_v58 = vadd.f32 %v856_v43, %v845_v46 }
  0x5e   : > { %v870_v59 = vmul.f32 %v1770_v47, %v2049_v18  ;;  %v874_v60 = vrot.slane %v868_v4, 1  ;;  %v875_v30 = vrot.slane %v869_v52, 1  ;;  %v883_v61 = vmul.f32 %v2247_v33, %v2051_v19 }
  0x5f   : > { %v809_v62 = vrot.slane %v808_v53, 2  ;;  %v818_v0 = vadd.f32 %v817_v54, %v816_v45  ;;  %v866_v1 = vadd.f32 %v864_v50, %v859_v55  ;;  %v867_v3 = vadd.f32 %v865_v51, %v860_v58 }
  0x60   : > { %v876_v5 = vsel %vm386_vm0, %v874_v60, %v875_v30  ;;  %v877_v31 = vrot.slane %v870_v59, 1  ;;  %v884_v6 = vmul.f32 %v2251_v38, %v2051_v19  ;;  %v885_v7 = vmul.f32 %v1770_v47, %v2051_v19 }
  0x61   : > { %v810_v9 = vadd.f32 %v809_v62, %v808_v53  ;;  %v819_v10 = vrot.slane %v818_v0, 2  ;;  %v881_v15 = vadd.f32 %v876_v5, %v866_v1  ;;  %v889_v16 = vrot.slane %v883_v61, 2  ;;  %v1778_v53 = vld [vmem:[%s2042_s9 + $0x70] sm:$0x3] }
  0x62   : > { %v878_v17 = vsel %vm386_vm0, %v875_v30, %v877_v31  ;;  %v890_v22 = vrot.slane %v884_v6, 2  ;;  %v892_v23 = vrot.slane %v885_v7, 2  ;;  %v902_v25 = vmul.f32 %v2316_v8, %v2053_v20 }
  0x63   : > { %v811_v26 = vrot.slane %v810_v9, 1  ;;  %v820_v27 = vadd.f32 %v819_v10, %v818_v0  ;;  %v882_v28 = vadd.f32 %v878_v17, %v867_v3  ;;  %v903_v32 = vmul.f32 %v2320_v24, %v2053_v20 }
  0x64   : > { %v891_v34 = vsel %vm406_vm1, %v889_v16, %v890_v22  ;;  %v893_v35 = vsel %vm406_vm1, %v890_v22, %v892_v23  ;;  %v906_v36 = vmul.f32 %v2316_v8, %v2055_v21  ;;  %v907_v48 = vmul.f32 %v2320_v24, %v2055_v21 }
  0x65   : > { %v812_v37 = vadd.f32 %v811_v26, %v810_v9  ;;  %v821_v39 = vrot.slane %v820_v27, 1  ;;  %v896_v40 = vadd.f32 %v891_v34, %v881_v15  ;;  %v897_v41 = vadd.f32 %v893_v35, %v882_v28 }
  0x66   : > { %v908_v49 = vmul.f32 %v1773_v29, %v2055_v21  ;;  %v912_v42 = vrot.slane %v906_v36, 1  ;;  %v913_v43 = vrot.slane %v907_v48, 1  ;;  %v921_v44 = vmul.f32 %v2316_v8, %v2108_v63 }
  0x67   : > { %v2337_v45 = vadd.f32 %v812_v37, %v2267_v56  ;;  %v822_v57 = vadd.f32 %v821_v39, %v820_v27  ;;  %v904_v46 = vadd.f32 %v902_v25, %v896_v40  ;;  %v905_v47 = vadd.f32 %v903_v32, %v897_v41  ;;  %v1781_v37 = vld [vmem:[%s2042_s9 + $0x88] sm:$0x3] }
  0x68   : > { %v914_v50 = vsel %vm386_vm0, %v912_v42, %v913_v43  ;;  %v915_v51 = vrot.slane %v908_v49, 1  ;;  %v922_v4 = vmul.f32 %v2320_v24, %v2108_v63  ;;  %v923_v52 = vmul.f32 %v1773_v29, %v2108_v63 }
  0x69   : > { %v2345_v54 = vadd.f32 %v822_v57, %v2276_v2  ;;  %v919_v55 = vadd.f32 %v914_v50, %v904_v46  ;;  %v927_v58 = vrot.slane %v921_v44, 2  ;;  %v967_v56 = vmul.f32 %v2247_v33, %v2033_v11 }
  0x6a   : > { %v916_v59 = vsel %vm386_vm0, %v913_v43, %v915_v51  ;;  %v928_v60 = vrot.slane %v922_v4, 2  ;;  %v930_v30 = vrot.slane %v923_v52, 2  ;;  %v968_v61 = vmul.f32 %v2251_v38, %v2033_v11 }
  0x6b   : > { %v920_v62 = vadd.f32 %v916_v59, %v905_v47  ;;  %v971_v0 = vmul.f32 %v2247_v33, %v2035_v12  ;;  %v972_v2 = vmul.f32 %v2251_v38, %v2035_v12  ;;  %v973_v1 = vmul.f32 %v1778_v53, %v2035_v12 }
  0x6c   : > { %v929_v3 = vsel %vm406_vm1, %v927_v58, %v928_v60  ;;  %v931_v5 = vsel %vm406_vm1, %v928_v60, %v930_v30  ;;  %v986_v31 = vmul.f32 %v2247_v33, %v2037_v13  ;;  %v987_v6 = vmul.f32 %v2251_v38, %v2037_v13  ;;  %v2385_v30 = vld [vmem:[%s2042_s9 + $0x90] sm:$0xff] }
  0x6d   : > { %v934_v7 = vadd.f32 %v929_v3, %v919_v55  ;;  %v935_v9 = vadd.f32 %v931_v5, %v920_v62  ;;  %v977_v10 = vrot.slane %v971_v0, 1  ;;  %v978_v15 = vrot.slane %v972_v2, 1 }
  0x6e   : > { %v980_v16 = vrot.slane %v973_v1, 1  ;;  %v988_v17 = vmul.f32 %v1778_v53, %v2037_v13  ;;  %v992_v22 = vrot.slane %v986_v31, 2  ;;  %v993_v23 = vrot.slane %v987_v6, 2 }
  0x6f   : > { %v1850_v25 = vpack.c.bf16 %v935_v9, %v934_v7  ;;  %v946_v26 = vadd.f32 %v935_v9, %v934_v7  ;;  %v954_v27 = vmul.f32 %v934_v7, %v934_v7  ;;  %v955_v28 = vmul.f32 %v935_v9, %v935_v9 }
  0x70   : > { %v979_v33 = vsel %vm386_vm0, %v977_v10, %v978_v15  ;;  %v981_v29 = vsel %vm386_vm0, %v978_v15, %v980_v16  ;;  %v994_v38 = vsel %vm406_vm1, %v992_v22, %v993_v23  ;;  %v995_v32 = vrot.slane %v988_v17, 2  ;;  %v2392_v15 = vld [vmem:[%s2042_s9 + $0x98] sm:$0xff]  ;;  %v1784_v16 = vld [vmem:[%s2042_s9 + $0xa0] sm:$0x3] }
  0x71   : > { %1874 = vst [vmem:[%s2157_s26 + $0x18] sm:$0xff] %v1850_v25   ;;  %v947_v34 = vrot.slane %v946_v26, 4  ;;  %v956_v35 = vadd.f32 %v955_v28, %v954_v27  ;;  %v984_v36 = vadd.f32 %v979_v33, %v967_v56  ;;  %v985_v48 = vadd.f32 %v981_v29, %v968_v61 }
  0x72   : > { %v996_v39 = vsel %vm406_vm1, %v993_v23, %v995_v32  ;;  %v1004_v40 = vmul.f32 %v2316_v8, %v2044_v14  ;;  %v1005_v41 = vmul.f32 %v2320_v24, %v2044_v14  ;;  %v1008_v49 = vmul.f32 %v2316_v8, %v2049_v18 }
  0x73   : > { %v948_v42 = vadd.f32 %v947_v34, %v946_v26  ;;  %v957_v43 = vrot.slane %v956_v35, 4  ;;  %v999_v44 = vadd.f32 %v994_v38, %v984_v36  ;;  %v1000_v57 = vadd.f32 %v996_v39, %v985_v48 }
  0x74   : > { %v1009_v46 = vmul.f32 %v2320_v24, %v2049_v18  ;;  %v1010_v47 = vmul.f32 %v1781_v37, %v2049_v18  ;;  %v1014_v50 = vrot.slane %v1008_v49, 1  ;;  %v1023_v51 = vmul.f32 %v2316_v8, %v2051_v19 }
  0x75   : > { %v949_v4 = vrot.slane %v948_v42, 2  ;;  %v958_v52 = vadd.f32 %v957_v43, %v956_v35  ;;  %v1006_v53 = vadd.f32 %v1004_v40, %v999_v44  ;;  %v1007_v55 = vadd.f32 %v1005_v41, %v1000_v57  ;;  %v1789_v44 = vld [vmem:[%s2042_s9 + $0x88] sm:$0x3] }
  0x76   : > { %v1015_v58 = vrot.slane %v1009_v46, 1  ;;  %v1017_v56 = vrot.slane %v1010_v47, 1  ;;  %v1024_v59 = vmul.f32 %v2320_v24, %v2051_v19  ;;  %v1025_v60 = vmul.f32 %v1781_v37, %v2051_v19 }
  0x77   : > { %v950_v61 = vadd.f32 %v949_v4, %v948_v42  ;;  %v959_v62 = vrot.slane %v958_v52, 2  ;;  %v1029_v0 = vrot.slane %v1023_v51, 2  ;;  %v1042_v2 = vmul.f32 %v2385_v30, %v2053_v20 }
  0x78   : > { %v1016_v1 = vsel %vm386_vm0, %v1014_v50, %v1015_v58  ;;  %v1018_v3 = vsel %vm386_vm0, %v1015_v58, %v1017_v56  ;;  %v1030_v5 = vrot.slane %v1024_v59, 2  ;;  %v1032_v31 = vrot.slane %v1025_v60, 2 }
  0x79   : > { %v951_v6 = vrot.slane %v950_v61, 1  ;;  %v960_v7 = vadd.f32 %v959_v62, %v958_v52  ;;  %v1021_v9 = vadd.f32 %v1016_v1, %v1006_v53  ;;  %v1022_v10 = vadd.f32 %v1018_v3, %v1007_v55 }
  0x7a   : > { %v1031_v17 = vsel %vm406_vm1, %v1029_v0, %v1030_v5  ;;  %v1033_v22 = vsel %vm406_vm1, %v1030_v5, %v1032_v31  ;;  %v1043_v23 = vmul.f32 %v2392_v15, %v2053_v20  ;;  %v1046_v25 = vmul.f32 %v2385_v30, %v2055_v21 }
  0x7b   : > { %v952_v26 = vadd.f32 %v951_v6, %v950_v61  ;;  %v961_v27 = vrot.slane %v960_v7, 1  ;;  %v1036_v28 = vadd.f32 %v1031_v17, %v1021_v9  ;;  %v1037_v33 = vadd.f32 %v1033_v22, %v1022_v10 }
  0x7c   : > { %v1047_v29 = vmul.f32 %v2392_v15, %v2055_v21  ;;  %v1048_v38 = vmul.f32 %v1784_v16, %v2055_v21  ;;  %v1052_v32 = vrot.slane %v1046_v25, 1  ;;  %v1061_v34 = vmul.f32 %v2385_v30, %v2108_v63 }
  0x7d   : > { %v2407_v35 = vadd.f32 %v952_v26, %v2337_v45  ;;  %v962_v36 = vadd.f32 %v961_v27, %v960_v7  ;;  %v1044_v48 = vadd.f32 %v1042_v2, %v1036_v28  ;;  %v1045_v37 = vadd.f32 %v1043_v23, %v1037_v33 }
  0x7e   : > { %v1053_v39 = vrot.slane %v1047_v29, 1  ;;  %v1055_v40 = vrot.slane %v1048_v38, 1  ;;  %v1062_v41 = vmul.f32 %v2392_v15, %v2108_v63  ;;  %v1063_v49 = vmul.f32 %v1784_v16, %v2108_v63 }
  0x7f   : > { %v2413_v42 = vadd.f32 %v962_v36, %v2345_v54  ;;  %v1067_v43 = vrot.slane %v1061_v34, 2  ;;  %v1107_v57 = vmul.f32 %v2316_v8, %v2033_v11  ;;  %v1108_v45 = vmul.f32 %v2320_v24, %v2033_v11 }
  0x80   : > { %v1054_v46 = vsel %vm386_vm0, %v1052_v32, %v1053_v39  ;;  %v1056_v47 = vsel %vm386_vm0, %v1053_v39, %v1055_v40  ;;  %v1068_v50 = vrot.slane %v1062_v41, 2  ;;  %v1070_v51 = vrot.slane %v1063_v49, 2 }
  0x81   : > { %v1059_v4 = vadd.f32 %v1054_v46, %v1044_v48  ;;  %v1060_v52 = vadd.f32 %v1056_v47, %v1045_v37  ;;  %v1111_v54 = vmul.f32 %v2316_v8, %v2035_v12  ;;  %v1112_v53 = vmul.f32 %v2320_v24, %v2035_v12 }
  0x82   : > { %v1069_v55 = vsel %vm406_vm1, %v1067_v43, %v1068_v50  ;;  %v1071_v58 = vsel %vm406_vm1, %v1068_v50, %v1070_v51  ;;  %v1113_v56 = vmul.f32 %v1789_v44, %v2035_v12  ;;  %v1126_v59 = vmul.f32 %v2316_v8, %v2037_v13 }
  0x83   : > { %v1074_v60 = vadd.f32 %v1069_v55, %v1059_v4  ;;  %v1075_v61 = vadd.f32 %v1071_v58, %v1060_v52  ;;  %v1117_v62 = vrot.slane %v1111_v54, 1  ;;  %v1118_v0 = vrot.slane %v1112_v53, 1  ;;  %v2455_v54 = vld [vmem:[%s2042_s9 + $0xa8] sm:$0xff] }
  0x84   : > { %v1120_v2 = vrot.slane %v1113_v56, 1  ;;  %v1127_v1 = vmul.f32 %v2320_v24, %v2037_v13  ;;  %v1128_v3 = vmul.f32 %v1789_v44, %v2037_v13  ;;  %v1132_v5 = vrot.slane %v1126_v59, 2  ;;  %v1792_v24 = vld [vmem:[%s2042_s9 + $0xa0] sm:$0x3] }
  0x85   : > { %v1855_v31 = vpack.c.bf16 %v1075_v61, %v1074_v60  ;;  %v1086_v6 = vadd.f32 %v1075_v61, %v1074_v60  ;;  %v1094_v7 = vmul.f32 %v1074_v60, %v1074_v60  ;;  %v1095_v9 = vmul.f32 %v1075_v61, %v1075_v61 }
  0x86   : > { %v1119_v10 = vsel %vm386_vm0, %v1117_v62, %v1118_v0  ;;  %v1121_v8 = vsel %vm386_vm0, %v1118_v0, %v1120_v2  ;;  %v1133_v16 = vrot.slane %v1127_v1, 2  ;;  %v1135_v17 = vrot.slane %v1128_v3, 2  ;;  %v2462_v0 = vld [vmem:[%s2042_s9 + $0xb0] sm:$0xff]  ;;  %v1795_v2 = vld [vmem:[%s2042_s9 + $0xb8] sm:$0x3] }
  0x87   : > { %1875 = vst [vmem:[%s2157_s26 + $0x20] sm:$0xff] %v1855_v31   ;;  %v1087_v22 = vrot.slane %v1086_v6, 4  ;;  %v1096_v23 = vadd.f32 %v1095_v9, %v1094_v7  ;;  %v1124_v25 = vadd.f32 %v1119_v10, %v1107_v57  ;;  %v1125_v26 = vadd.f32 %v1121_v8, %v1108_v45 }
  0x88   : > { %v1134_v27 = vsel %vm406_vm1, %v1132_v5, %v1133_v16  ;;  %v1136_v28 = vsel %vm406_vm1, %v1133_v16, %v1135_v17  ;;  %v1144_v33 = vmul.f32 %v2385_v30, %v2044_v14  ;;  %v1145_v29 = vmul.f32 %v2392_v15, %v2044_v14 }
  0x89   : > { %v1088_v38 = vadd.f32 %v1087_v22, %v1086_v6  ;;  %v1097_v32 = vrot.slane %v1096_v23, 4  ;;  %v1139_v34 = vadd.f32 %v1134_v27, %v1124_v25  ;;  %v1140_v36 = vadd.f32 %v1136_v28, %v1125_v26 }
  0x8a   : > { %v1148_v48 = vmul.f32 %v2385_v30, %v2049_v18  ;;  %v1149_v37 = vmul.f32 %v2392_v15, %v2049_v18  ;;  %v1150_v39 = vmul.f32 %v1792_v24, %v2049_v18  ;;  %v1163_v40 = vmul.f32 %v2385_v30, %v2051_v19 }
  0x8b   : > { %v1089_v41 = vrot.slane %v1088_v38, 2  ;;  %v1098_v49 = vadd.f32 %v1097_v32, %v1096_v23  ;;  %v1146_v43 = vadd.f32 %v1144_v33, %v1139_v34  ;;  %v1147_v44 = vadd.f32 %v1145_v29, %v1140_v36  ;;  %v1800_v34 = vld [vmem:[%s2042_s9 + $0xa0] sm:$0x3] }
  0x8c   : > { %v1154_v57 = vrot.slane %v1148_v48, 1  ;;  %v1155_v45 = vrot.slane %v1149_v37, 1  ;;  %v1157_v46 = vrot.slane %v1150_v39, 1  ;;  %v1164_v47 = vmul.f32 %v2392_v15, %v2051_v19 }
  0x8d   : > { %v1090_v50 = vadd.f32 %v1089_v41, %v1088_v38  ;;  %v1099_v51 = vrot.slane %v1098_v49, 2  ;;  %v1165_v4 = vmul.f32 %v1792_v24, %v2051_v19  ;;  %v1169_v52 = vrot.slane %v1163_v40, 2 }
  0x8e   : > { %v1156_v53 = vsel %vm386_vm0, %v1154_v57, %v1155_v45  ;;  %v1158_v55 = vsel %vm386_vm0, %v1155_v45, %v1157_v46  ;;  %v1170_v58 = vrot.slane %v1164_v47, 2  ;;  %v1182_v56 = vmul.f32 %v2455_v54, %v2053_v20 }
  0x8f   : > { %v1091_v59 = vrot.slane %v1090_v50, 1  ;;  %v1100_v60 = vadd.f32 %v1099_v51, %v1098_v49  ;;  %v1161_v61 = vadd.f32 %v1156_v53, %v1146_v43  ;;  %v1162_v62 = vadd.f32 %v1158_v55, %v1147_v44 }
  0x90   : > { %v1171_v1 = vsel %vm406_vm1, %v1169_v52, %v1170_v58  ;;  %v1172_v3 = vrot.slane %v1165_v4, 2  ;;  %v1183_v5 = vmul.f32 %v2462_v0, %v2053_v20  ;;  %v1186_v31 = vmul.f32 %v2455_v54, %v2055_v21 }
  0x91   : > { %v1092_v6 = vadd.f32 %v1091_v59, %v1090_v50  ;;  %v1101_v7 = vrot.slane %v1100_v60, 1  ;;  %v1176_v9 = vadd.f32 %v1171_v1, %v1161_v61  ;;  %v1187_v10 = vmul.f32 %v2462_v0, %v2055_v21 }
  0x92   : > { %v1173_v8 = vsel %vm406_vm1, %v1170_v58, %v1172_v3  ;;  %v1188_v16 = vmul.f32 %v1795_v2, %v2055_v21  ;;  %v1192_v17 = vrot.slane %v1186_v31, 1  ;;  %v1201_v22 = vmul.f32 %v2455_v54, %v2108_v63  ;;  %v1803_v31 = vld [vmem:[%s2042_s9 + $0xb8] sm:$0x3] }
  0x93   : > { %v2478_v23 = vadd.f32 %v1092_v6, %v2407_v35  ;;  %v1102_v25 = vadd.f32 %v1101_v7, %v1100_v60  ;;  %v1177_v26 = vadd.f32 %v1173_v8, %v1162_v62  ;;  %v1184_v24 = vadd.f32 %v1182_v56, %v1176_v9 }
  0x94   : > { %v1193_v27 = vrot.slane %v1187_v10, 1  ;;  %v1195_v28 = vrot.slane %v1188_v16, 1  ;;  %v1202_v33 = vmul.f32 %v2462_v0, %v2108_v63  ;;  %v1203_v29 = vmul.f32 %v1795_v2, %v2108_v63 }
  0x95   : > { %v2489_v38 = vadd.f32 %v1102_v25, %v2413_v42  ;;  %v1185_v35 = vadd.f32 %v1183_v5, %v1177_v26  ;;  %v1207_v32 = vrot.slane %v1201_v22, 2  ;;  %v1247_v36 = vmul.f32 %v2385_v30, %v2033_v11 }
  0x96   : > { %v1194_v48 = vsel %vm386_vm0, %v1192_v17, %v1193_v27  ;;  %v1196_v37 = vsel %vm386_vm0, %v1193_v27, %v1195_v28  ;;  %v1208_v39 = vrot.slane %v1202_v33, 2  ;;  %v1210_v40 = vrot.slane %v1203_v29, 2 }
  0x97   : > { %v1199_v41 = vadd.f32 %v1194_v48, %v1184_v24  ;;  %v1200_v49 = vadd.f32 %v1196_v37, %v1185_v35  ;;  %v1248_v63 = vmul.f32 %v2392_v15, %v2033_v11  ;;  %v1251_v42 = vmul.f32 %v2385_v30, %v2035_v12 }
  0x98   : > { %v1209_v43 = vsel %vm406_vm1, %v1207_v32, %v1208_v39  ;;  %v1211_v44 = vsel %vm406_vm1, %v1208_v39, %v1210_v40  ;;  %v1252_v57 = vmul.f32 %v2392_v15, %v2035_v12  ;;  %v1253_v45 = vmul.f32 %v1800_v34, %v2035_v12 }
  0x99   : > { %v1214_v46 = vadd.f32 %v1209_v43, %v1199_v41  ;;  %v1215_v47 = vadd.f32 %v1211_v44, %v1200_v49  ;;  %v1257_v50 = vrot.slane %v1251_v42, 1  ;;  %v1266_v51 = vmul.f32 %v2385_v30, %v2037_v13 }
  0x9a   : > { %v1258_v4 = vrot.slane %v1252_v57, 1  ;;  %v1260_v52 = vrot.slane %v1253_v45, 1  ;;  %v1267_v53 = vmul.f32 %v2392_v15, %v2037_v13  ;;  %v1268_v55 = vmul.f32 %v1800_v34, %v2037_v13 }
  0x9b   : > { %v1860_v58 = vpack.c.bf16 %v1215_v47, %v1214_v46  ;;  %v1226_v56 = vadd.f32 %v1215_v47, %v1214_v46  ;;  %v1234_v59 = vmul.f32 %v1214_v46, %v1214_v46  ;;  %v1235_v60 = vmul.f32 %v1215_v47, %v1215_v47  ;;  %v2543_v47 = vld [vmem:[%s2535_s8] sm:$0xff] }
  0x9c   : > { %v1259_v61 = vsel %vm386_vm0, %v1257_v50, %v1258_v4  ;;  %v1261_v62 = vsel %vm386_vm0, %v1258_v4, %v1260_v52  ;;  %v1272_v30 = vrot.slane %v1266_v51, 2  ;;  %v1273_v2 = vrot.slane %v1267_v53, 2  ;;  %v2546_v50 = vld [vmem:[%s2535_s8 + $0x8] sm:$0xff]  ;;  %v1320_v51 = vld [vmem:[%s2535_s8 + $0x10] sm:$0x3] }
  0x9d   : > { %1876 = vst [vmem:[%s2157_s26 + $0x28] sm:$0xff] %v1860_v58   ;;  %v1227_v1 = vrot.slane %v1226_v56, 4  ;;  %v1236_v3 = vadd.f32 %v1235_v60, %v1234_v59  ;;  %v1264_v15 = vadd.f32 %v1259_v61, %v1247_v36  ;;  %v1265_v5 = vadd.f32 %v1261_v62, %v1248_v63 }
  0x9e   : > { %v1274_v6 = vsel %vm406_vm1, %v1272_v30, %v1273_v2  ;;  %v1275_v7 = vrot.slane %v1268_v55, 2  ;;  %v1284_v9 = vmul.f32 %v2455_v54, %v2044_v14  ;;  %v1285_v10 = vmul.f32 %v2462_v0, %v2044_v14 }
  0x9f   : > { %v1228_v8 = vadd.f32 %v1227_v1, %v1226_v56  ;;  %v1237_v16 = vrot.slane %v1236_v3, 4  ;;  %v1279_v17 = vadd.f32 %v1274_v6, %v1264_v15  ;;  %v1288_v22 = vmul.f32 %v2455_v54, %v2049_v18 }
  0xa0   : > { %v1276_v25 = vsel %vm406_vm1, %v1273_v2, %v1275_v7  ;;  %v1289_v26 = vmul.f32 %v2462_v0, %v2049_v18  ;;  %v1290_v24 = vmul.f32 %v1803_v31, %v2049_v18  ;;  %v1303_v27 = vmul.f32 %v2455_v54, %v2051_v19  ;;  %v2563_v2 = vld [vmem:[%s2662_s2 + $0x8] ss:$0 sm:$0xff] }
  0xa1   : > { %v1229_v28 = vrot.slane %v1228_v8, 2  ;;  %v1238_v33 = vadd.f32 %v1237_v16, %v1236_v3  ;;  %v1280_v29 = vadd.f32 %v1276_v25, %v1265_v5  ;;  %v1286_v35 = vadd.f32 %v1284_v9, %v1279_v17  ;;  %v1808_v25 = vld [vmem:[%s2042_s9 + $0xb8] sm:$0x3]  ;;  %s1732_s9 = sshll.u32 %s2678_s19, 1 }
  0xa2   : > { %v1294_v32 = vrot.slane %v1288_v22, 1  ;;  %v1295_v34 = vrot.slane %v1289_v26, 1  ;;  %v1297_v36 = vrot.slane %v1290_v24, 1  ;;  %v1304_v48 = vmul.f32 %v2462_v0, %v2051_v19  ;;  %s354_s12 = sadd.s32 %s1732_s9, %s2684_s18 }
  0xa3   : > { %v1230_v37 = vadd.f32 %v1229_v28, %v1228_v8  ;;  %v1239_v39 = vrot.slane %v1238_v33, 2  ;;  %v1287_v40 = vadd.f32 %v1285_v10, %v1280_v29  ;;  %v1305_v41 = vmul.f32 %v1803_v31, %v2051_v19  ;;  %s355_s15 = scalar_lea.vmem %s2664_s4, %s354_s12  ;;  %s362_s25 = scalar_lea.vmem %s2665_s5, %s354_s12 }
  0xa4   : > { %v1296_v49 = vsel %vm386_vm0, %v1294_v32, %v1295_v34  ;;  %v1298_v63 = vsel %vm386_vm0, %v1295_v34, %v1297_v36  ;;  %v1309_v42 = vrot.slane %v1303_v27, 2  ;;  %v1310_v43 = vrot.slane %v1304_v48, 2 }
  0xa5   : > { %v1231_v44 = vrot.slane %v1230_v37, 1  ;;  %v1240_v57 = vadd.f32 %v1239_v39, %v1238_v33  ;;  %v1301_v45 = vadd.f32 %v1296_v49, %v1286_v35  ;;  %v1302_v46 = vadd.f32 %v1298_v63, %v1287_v40 }
  0xa6   : > { %v1311_v4 = vsel %vm406_vm1, %v1309_v42, %v1310_v43  ;;  %v1312_v52 = vrot.slane %v1305_v41, 2  ;;  %v1321_v53 = vmul.f32 %v2543_v47, %v2053_v20  ;;  %v1322_v55 = vmul.f32 %v2546_v50, %v2053_v20 }
  0xa7   : > { %v1232_v58 = vadd.f32 %v1231_v44, %v1230_v37  ;;  %v1241_v56 = vrot.slane %v1240_v57, 1  ;;  %v1316_v59 = vadd.f32 %v1311_v4, %v1301_v45  ;;  %v1325_v60 = vmul.f32 %v2543_v47, %v2055_v21 }
  0xa8   : > { %v1313_v61 = vsel %vm406_vm1, %v1310_v43, %v1312_v52  ;;  %v1326_v62 = vmul.f32 %v2546_v50, %v2055_v21  ;;  %v1327_v30 = vmul.f32 %v1320_v51, %v2055_v21  ;;  %v1340_v1 = vmul.f32 %v2563_v2, %v2543_v47 }
  0xa9   : > { %v2568_v3 = vadd.f32 %v1232_v58, %v2478_v23  ;;  %v1242_v15 = vadd.f32 %v1241_v56, %v1240_v57  ;;  %v1317_v5 = vadd.f32 %v1313_v61, %v1302_v46  ;;  %v1323_v31 = vadd.f32 %v1321_v53, %v1316_v59  ;;  %v1422_v56 = vld [vmem:[%s2535_s8 + $0x10] sm:$0x3] }
  0xaa   : > { %v1331_v6 = vrot.slane %v1325_v60, 1  ;;  %v1332_v7 = vrot.slane %v1326_v62, 1  ;;  %v1334_v9 = vrot.slane %v1327_v30, 1  ;;  %v1341_v10 = vmul.f32 %v2563_v2, %v2546_v50 }
  0xab   : > { %v2573_v8 = vadd.f32 %v1242_v15, %v2489_v38  ;;  %v1324_v16 = vadd.f32 %v1322_v55, %v1317_v5  ;;  %v1342_v17 = vmul.f32 %v2563_v2, %v1320_v51  ;;  %v1346_v22 = vrot.slane %v1340_v1, 2 }
  0xac   : > { %v1333_v23 = vsel %vm386_vm0, %v1331_v6, %v1332_v7  ;;  %v1335_v26 = vsel %vm386_vm0, %v1332_v7, %v1334_v9  ;;  %v1347_v24 = vrot.slane %v1341_v10, 2  ;;  %v1386_v27 = vmul.f32 %v2455_v54, %v2033_v11  ;;  %v1809_v10 = vld [vmem:[%s2535_s8 + $0x18] sm:$0xff] }
  0xad   : > { %v1338_v28 = vadd.f32 %v1333_v23, %v1323_v31  ;;  %v1339_v33 = vadd.f32 %v1335_v26, %v1324_v16  ;;  %v1349_v29 = vrot.slane %v1342_v17, 2  ;;  %v1387_v38 = vmul.f32 %v2462_v0, %v2033_v11 }
  0xae   : > { %v1348_v35 = vsel %vm406_vm1, %v1346_v22, %v1347_v24  ;;  %v1390_v32 = vmul.f32 %v2455_v54, %v2035_v12  ;;  %v1391_v34 = vmul.f32 %v2462_v0, %v2035_v12  ;;  %v1392_v36 = vmul.f32 %v1808_v25, %v2035_v12 }
  0xaf   : > { %v1350_v48 = vsel %vm406_vm1, %v1347_v24, %v1349_v29  ;;  %v1353_v37 = vadd.f32 %v1348_v35, %v1338_v28  ;;  %v1405_v39 = vmul.f32 %v2455_v54, %v2037_v13  ;;  %v1406_v40 = vmul.f32 %v2462_v0, %v2037_v13 }
  0xb0   : > { %v1354_v11 = vadd.f32 %v1350_v48, %v1339_v33  ;;  %v1396_v41 = vrot.slane %v1390_v32, 1  ;;  %v1397_v49 = vrot.slane %v1391_v34, 1  ;;  %v1399_v63 = vrot.slane %v1392_v36, 1 }
  0xb1   : > { %v1373_v42 = vmul.f32 %v1353_v37, %v1353_v37  ;;  %v1407_v43 = vmul.f32 %v1808_v25, %v2037_v13  ;;  %v1411_v44 = vrot.slane %v1405_v39, 2  ;;  %v1412_v12 = vrot.slane %v1406_v40, 2 }
  0xb2   : > { %v1865_v57 = vpack.c.bf16 %v1354_v11, %v1353_v37  ;;  %v1365_v45 = vadd.f32 %v1354_v11, %v1353_v37  ;;  %v1374_v46 = vmul.f32 %v1354_v11, %v1354_v11  ;;  %v1398_v51 = vsel %vm386_vm0, %v1396_v41, %v1397_v49  ;;  %v1811_v37 = vld [vmem:[%s2535_s8 + $0x28] sm:$0x3] }
  0xb3   : > { %v1400_v54 = vsel %vm386_vm0, %v1397_v49, %v1399_v63  ;;  %v1403_v4 = vadd.f32 %v1398_v51, %v1386_v27  ;;  %v1413_v0 = vsel %vm406_vm1, %v1411_v44, %v1412_v12  ;;  %v1414_v52 = vrot.slane %v1407_v43, 2  ;;  %v1810_v27 = vld [vmem:[%s2535_s8 + $0x20] sm:$0xff] }
  0xb4   : > { %1877 = vst [vmem:[%s2157_s26 + $0x30] sm:$0xff] %v1865_v57   ;;  %v1366_v53 = vrot.slane %v1365_v45, 4  ;;  %v1375_v55 = vadd.f32 %v1374_v46, %v1373_v42  ;;  %v1404_v58 = vadd.f32 %v1400_v54, %v1387_v38  ;;  %v1423_v13 = vmul.f32 %v2543_v47, %v2044_v14 }
  0xb5   : > { %v1415_v59 = vsel %vm406_vm1, %v1412_v12, %v1414_v52  ;;  %v1418_v60 = vadd.f32 %v1413_v0, %v1403_v4  ;;  %v1424_v61 = vmul.f32 %v2546_v50, %v2044_v14  ;;  %v1427_v62 = vmul.f32 %v2543_v47, %v2049_v18 }
  0xb6   : > { %v1367_v30 = vadd.f32 %v1366_v53, %v1365_v45  ;;  %v1376_v1 = vrot.slane %v1375_v55, 4  ;;  %v1419_v15 = vadd.f32 %v1415_v59, %v1404_v58  ;;  %v1428_v5 = vmul.f32 %v2546_v50, %v2049_v18 }
  0xb7   : > { %v1425_v31 = vadd.f32 %v1423_v13, %v1418_v60  ;;  %v1429_v6 = vmul.f32 %v1422_v56, %v2049_v18  ;;  %v1433_v7 = vrot.slane %v1427_v62, 1  ;;  %v1442_v9 = vmul.f32 %v2543_v47, %v2051_v19 }
  0xb8   : > { %v1368_v16 = vrot.slane %v1367_v30, 2  ;;  %v1377_v14 = vadd.f32 %v1376_v1, %v1375_v55  ;;  %v1426_v17 = vadd.f32 %v1424_v61, %v1419_v15  ;;  %v1434_v22 = vrot.slane %v1428_v5, 1 }
  0xb9   : > { %v1436_v25 = vrot.slane %v1429_v6, 1  ;;  %v1443_v23 = vmul.f32 %v2546_v50, %v2051_v19  ;;  %v1444_v26 = vmul.f32 %v1422_v56, %v2051_v19  ;;  %v1448_v24 = vrot.slane %v1442_v9, 2 }
  0xba   : > { %v1369_v28 = vadd.f32 %v1368_v16, %v1367_v30  ;;  %v1378_v18 = vrot.slane %v1377_v14, 2  ;;  %v1435_v33 = vsel %vm386_vm0, %v1433_v7, %v1434_v22  ;;  %v1461_v47 = vmul.f32 %v1809_v10, %v2053_v20 }
  0xbb   : > { %v1437_v29 = vsel %vm386_vm0, %v1434_v22, %v1436_v25  ;;  %v1440_v38 = vadd.f32 %v1435_v33, %v1425_v31  ;;  %v1449_v35 = vrot.slane %v1443_v23, 2  ;;  %v1451_v32 = vrot.slane %v1444_v26, 2 }
  0xbc   : > { %v1370_v34 = vrot.slane %v1369_v28, 1  ;;  %v1379_v36 = vadd.f32 %v1378_v18, %v1377_v14  ;;  %v1441_v48 = vadd.f32 %v1437_v29, %v1426_v17  ;;  %v1462_v50 = vmul.f32 %v1810_v27, %v2053_v20 }
  0xbd   : > { %v1450_v19 = vsel %vm406_vm1, %v1448_v24, %v1449_v35  ;;  %v1452_v39 = vsel %vm406_vm1, %v1449_v35, %v1451_v32  ;;  %v1465_v40 = vmul.f32 %v1809_v10, %v2055_v21  ;;  %v1466_v11 = vmul.f32 %v1810_v27, %v2055_v21 }
  0xbe   : > { %v1371_v41 = vadd.f32 %v1370_v34, %v1369_v28  ;;  %v1380_v49 = vrot.slane %v1379_v36, 1  ;;  %v1455_v63 = vadd.f32 %v1450_v19, %v1440_v38  ;;  %v1456_v42 = vadd.f32 %v1452_v39, %v1441_v48 }
  0xbf   : > { %v1467_v43 = vmul.f32 %v1811_v37, %v2055_v21  ;;  %v1471_v44 = vrot.slane %v1465_v40, 1  ;;  %v1472_v12 = vrot.slane %v1466_v11, 1  ;;  %v1480_v57 = vmul.f32 %v2563_v2, %v1809_v10 }
  0xc0   : > { %v1372_v20 = vadd.f32 %v1371_v41, %v2568_v3  ;;  %v1381_v45 = vadd.f32 %v1380_v49, %v1379_v36  ;;  %v1463_v46 = vadd.f32 %v1461_v47, %v1455_v63  ;;  %v1464_v51 = vadd.f32 %v1462_v50, %v1456_v42 }
  0xc1   : > { %v1473_v54 = vsel %vm386_vm0, %v1471_v44, %v1472_v12  ;;  %v1474_v4 = vrot.slane %v1467_v43, 1  ;;  %v1481_v0 = vmul.f32 %v2563_v2, %v1810_v27  ;;  %v1482_v52 = vmul.f32 %v2563_v2, %v1811_v37 }
  0xc2   : > { %v1382_v53 = vadd.f32 %v1381_v45, %v2573_v8  ;;  %v1478_v21 = vadd.f32 %v1473_v54, %v1463_v46  ;;  %v1486_v55 = vrot.slane %v1480_v57, 2 }
  0xc3   : > { %v1475_v58 = vsel %vm386_vm0, %v1472_v12, %v1474_v4  ;;  %v1487_v56 = vrot.slane %v1481_v0, 2  ;;  %v1489_v13 = vrot.slane %v1482_v52, 2 }
  0xc4   : > { %v1479_v3 = vadd.f32 %v1475_v58, %v1464_v51 }
  0xc5   : > { %v1488_v59 = vsel %vm406_vm1, %v1486_v55, %v1487_v56  ;;  %v1490_v60 = vsel %vm406_vm1, %v1487_v56, %v1489_v13 }
  0xc6   : > { %v1493_v61 = vadd.f32 %v1488_v59, %v1478_v21  ;;  %v1494_v62 = vadd.f32 %v1490_v60, %v1479_v3 }
  0xc8   : > { %v1870_v30 = vpack.c.bf16 %v1494_v62, %v1493_v61  ;;  %v1505_v2 = vadd.f32 %v1494_v62, %v1493_v61  ;;  %v1513_v1 = vmul.f32 %v1493_v61, %v1493_v61  ;;  %v1514_v15 = vmul.f32 %v1494_v62, %v1494_v62 }
  0xca   : > { %1878 = vst [vmem:[%s2157_s26 + $0x38] sm:$0xff] %v1870_v30   ;;  %v1506_v8 = vrot.slane %v1505_v2, 4  ;;  %v1515_v5 = vadd.f32 %v1514_v15, %v1513_v1 }
  0xcc   : > { %v1507_v31 = vadd.f32 %v1506_v8, %v1505_v2  ;;  %v1516_v6 = vrot.slane %v1515_v5, 4 }
  0xce   : > { %v1508_v7 = vrot.slane %v1507_v31, 2  ;;  %v1517_v9 = vadd.f32 %v1516_v6, %v1515_v5 }
  0xd0   : > { %v1509_v10 = vadd.f32 %v1508_v7, %v1507_v31  ;;  %v1518_v16 = vrot.slane %v1517_v9, 2 }
  0xd2   : > { %v1510_v14 = vrot.slane %v1509_v10, 1  ;;  %v1519_v17 = vadd.f32 %v1518_v16, %v1517_v9 }
  0xd4   : > { %v1511_v22 = vadd.f32 %v1510_v14, %v1509_v10  ;;  %v1520_v25 = vrot.slane %v1519_v17, 1 }
  0xd6   : > { %v1512_v23 = vadd.f32 %v1511_v22, %v1372_v20  ;;  %v1521_v26 = vadd.f32 %v1520_v25, %v1519_v17 }
  0xd8   : > { %v1522_v24 = vadd.f32 %v1521_v26, %v1382_v53  ;;  %1523 = vst [vmem:[%s355_s15] sm:$0x1] %v1512_v23 }
  0xda   : > { %1524 = vst [vmem:[%s362_s25] sm:$0x1] %v1522_v24 }
  0xdb PF: > { %s16_s22 = sadd.s32 1, %s1962_s22   ;;  %s2667_s18 = smov %s1954_s20 }
  0xdc   : > { %p13_p9 = scmp.ge.s32.totalorder %s16_s22, 6   ;;  %s2668_s19 = smov %s1958_s21 }
  0xdd   : > { %s2669_s20 = smov %s2672_s23  ;;  %s2670_s21 = smov %s2676_s24 }
  0xde   :  { %15 = sbr.rel (!%p13_p9) target bundleno = 3 (0x3), region = 97 }

</bundles_post_ra>
